<compile_context>
chip_gen: v5e
topology: v5e:2x2
jax: 0.10.0
libtpu: 0.0.40
codegen_flags: <defaults>
</compile_context>

<pallas_src>
import functools
import re

import jax
import jax.numpy as jnp
from jax.experimental import pallas as pl
from jax.experimental.pallas import tpu as pltpu


# ---------------------------------------------------------------------------
# Hardware introspection (generation-aware tiling).
# ---------------------------------------------------------------------------
def _tpu_generation():
    """Best-effort TPU generation (5 -> v5e, 6 -> v6e, 7 -> v7x, 0 -> unknown)."""
    try:
        kind = jax.devices()[0].device_kind.lower()
    except Exception:
        return 0
    m = re.search(r"v(\d+)", kind)
    if m:
        return int(m.group(1))
    m = re.search(r"(\d+)", kind)
    return int(m.group(1)) if m else 0


def _vmem_capacity_bytes(gen):
    try:
        return int(pltpu.get_tpu_info().vmem_capacity_bytes)
    except Exception:
        return (64 if gen >= 7 else 128) * 1024 * 1024


# ---------------------------------------------------------------------------
# Kernel
# ---------------------------------------------------------------------------
def _head_kernel(*refs, pool_sizes, out_spatial, chan_offsets, nb, act_func,
                 bf16_pool, fuse_matmul):
    """Fused per-pathway stride-1 avg-pool + linear + activation + spatial mean.

    refs = (*pathway_refs, w_ref, b_ref, out_ref)
      pathway_refs[p] : (Nb, T_p, H_p, W_p, C_p) bf16 VMEM block
      w_ref           : (C_total, Kp) bf16, W^T with 1/(kt*kh*kw) folded in
      b_ref           : (1, Kp) f32, padded class lanes hold -1e30
      out_ref         : (Nb, Kp) f32 output block
    """
    n_path = len(pool_sizes)
    path_refs = refs[:n_path]
    w_ref, b_ref, out_ref = refs[n_path], refs[n_path + 1], refs[n_path + 2]

    To, Ho, Wo = out_spatial
    S = To * Ho * Wo
    Kp = out_ref.shape[-1]
    acc_dtype = jnp.bfloat16 if bf16_pool else jnp.float32

    pooled_parts = []
    for p in range(n_path):
        x = path_refs[p][...]                              # (Nb, T, H, W, Cp) bf16
        cp = x.shape[-1]
        if x.dtype != acc_dtype:
            x = x.astype(acc_dtype)

        if S == 1:
            # Global (adaptive) pool fast path: plain reductions, no shifted
            # adds and no (Nb*S, Cp) reshape / epilogue-mean layout churn.
            pooled = x.sum(axis=1).sum(axis=1).sum(axis=1)             # (Nb, Cp)
        else:
            kt, kh, kw = pool_sizes[p]
            # Separable stride-1 sum pool (VALID).
            acc = x[:, 0:To]
            for dt in range(1, kt):
                acc = acc + x[:, dt:dt + To]
            acc_h = acc[:, :, 0:Ho]
            for dh in range(1, kh):
                acc_h = acc_h + acc[:, :, dh:dh + Ho]
            acc_w = acc_h[:, :, :, 0:Wo]
            for dw in range(1, kw):
                acc_w = acc_w + acc_h[:, :, :, dw:dw + Wo]             # (Nb,To,Ho,Wo,Cp)
            pooled = acc_w.reshape(nb * S, cp)
        pooled_parts.append(pooled.astype(jnp.bfloat16))

    # 1/(kt*kh*kw) is already folded into the weight rows at trace time.
    if fuse_matmul or n_path == 1:
        feats = (pooled_parts[0] if n_path == 1
                 else jnp.concatenate(pooled_parts, axis=-1))          # (M, C_total)
        logits = jnp.dot(feats, w_ref[...], preferred_element_type=jnp.float32)
    else:
        # Every pathway already fills the MXU depth -> skip the concat copy.
        logits = None
        for p, pooled in enumerate(pooled_parts):
            off = chan_offsets[p]
            cp = pooled.shape[-1]
            part = jnp.dot(pooled, w_ref[off:off + cp, :],
                           preferred_element_type=jnp.float32)
            logits = part if logits is None else logits + part

    # Bias (padded class lanes carry -1e30) added once via implicit broadcast.
    logits = logits + b_ref[...]

    if act_func == "softmax":
        m = jnp.max(logits, axis=-1, keepdims=True)
        e = jnp.exp(logits - m)
        probs = e * pl.reciprocal(jnp.sum(e, axis=-1, keepdims=True), approx=True)
    else:  # 'sigmoid'
        probs = jax.nn.sigmoid(logits)

    if S == 1:
        out_ref[...] = probs.astype(out_ref.dtype)
    else:
        out_ref[...] = jnp.mean(probs.reshape(nb, S, Kp), axis=1).astype(out_ref.dtype)


# ---------------------------------------------------------------------------
# Batch-block selection
# ---------------------------------------------------------------------------
def _pick_batch_block(n, s, per_sample_bytes, budget_bytes, max_nb=None):
    """Largest divisor of n whose per-step working set fits the VMEM budget,
    preferring blocks whose matmul M dimension (nb * s) is sublane-aligned."""
    cap = max(1, int(budget_bytes // max(per_sample_bytes, 1)))
    cap = min(cap, n, 4096)
    if max_nb is not None:
        cap = max(1, min(cap, max_nb))
    divisors = [d for d in range(1, cap + 1) if n % d == 0]
    best = divisors[-1]
    aligned = [d for d in divisors if (d * s) % 8 == 0]
    if aligned and aligned[-1] * 2 >= best:
        return aligned[-1]
    return best


# ---------------------------------------------------------------------------
# Wrapper
# ---------------------------------------------------------------------------
def resnet_basic_head(inputs_nthwc, weight, bias, pool_size, act_func="softmax"):
    """Run the head on channel-last inputs.

    Args:
      inputs_nthwc: list of p arrays, each (N, T_p, H_p, W_p, C_p).
      weight: (num_classes, sum(dim_in))  -- nn.Linear weight
      bias:   (num_classes,)              -- nn.Linear bias
      pool_size: list of p entries; (kt, kh, kw) or None (adaptive -> global)
      act_func: 'softmax' or 'sigmoid'
    Returns:
      (N, num_classes) float32
    """
    n_path = len(inputs_nthwc)
    assert len(pool_size) == n_path, "pathway dimensions are not consistent."
    assert act_func in ("softmax", "sigmoid")

    N = int(inputs_nthwc[0].shape[0])
    K = int(weight.shape[0])

    # Activations stay bf16 end-to-end (storage + MXU input dtype).
    inputs_bf16 = [x if x.dtype == jnp.bfloat16 else x.astype(jnp.bfloat16)
                   for x in inputs_nthwc]

    pool_sizes, out_spatials, chan_offsets, chans = [], [], [], []
    off = 0
    for p in range(n_path):
        _, T, H, W, C = (int(d) for d in inputs_bf16[p].shape)
        ps = pool_size[p]
        if ps is None:                    # AdaptiveAvgPool3d((1,1,1)) == global mean
            ps = (T, H, W)
        ps = tuple(int(k) for k in ps)
        pool_sizes.append(ps)
        out_spatials.append((T - ps[0] + 1, H - ps[1] + 1, W - ps[2] + 1))
        chan_offsets.append(off)
        chans.append(C)
        off += C
    c_total = off
    assert len(set(out_spatials)) == 1, "pathway pooled spatial sizes must match"
    out_spatial = out_spatials[0]
    S = out_spatial[0] * out_spatial[1] * out_spatial[2]
    assert tuple(weight.shape) == (K, c_total)

    # Classes padded to a lane-dense multiple of 128.
    Kp = max(128, ((K + 127) // 128) * 128)

    # W^T with the per-pathway 1/(kt*kh*kw) pooling scale folded into its rows.
    w_t = jnp.asarray(weight, jnp.float32).T                          # (C_total, K)
    scales = jnp.concatenate([
        jnp.full((c,), 1.0 / float(kt * kh * kw), jnp.float32)
        for c, (kt, kh, kw) in zip(chans, pool_sizes)])
    w_t = w_t * scales[:, None]
    w_pad = jnp.pad(w_t, ((0, 0), (0, Kp - K))).astype(jnp.bfloat16)

    # Bias stays f32; padded class lanes get -1e30 so softmax ignores them.
    b_pad = jnp.concatenate([
        jnp.asarray(bias, jnp.float32).reshape(K),
        jnp.full((Kp - K,), -1e30, jnp.float32)]).reshape(1, Kp)

    # ---- generation-aware tiling ------------------------------------------
    gen = _tpu_generation()
    bf16_pool = gen >= 6                        # v6e/v7x VPU has bf16 ALUs; v5e does not
    total_vmem = _vmem_capacity_bytes(gen)
    path_buffers = 3 if (0 < gen < 6) else None    # deeper pipeline on HBM-bound v5e
    in_buf_count = path_buffers if path_buffers is not None else 2
    acc_elt = 2 if bf16_pool else 4

    per_sample = 0
    for x in inputs_bf16:
        _, T, H, W, C = (int(d) for d in x.shape)
        e = T * H * W * C
        per_sample += e * 2 * in_buf_count        # pipelined bf16 input copies
        per_sample += e * acc_elt * 2             # separable-pool temporaries
    per_sample += S * c_total * 2                 # pooled bf16 features
    per_sample += S * Kp * 4 * 3                  # logits / exp / probs (f32)
    per_sample += Kp * 4 * 2                      # output block (double-buffered)

    fixed = c_total * Kp * 2 + Kp * 4 * 2         # resident weight + bias
    budget = min(32 * 1024 * 1024, total_vmem // 4)
    budget = max(budget - fixed, per_sample)

    max_nb = max(1, N // 2) if gen >= 7 else None    # keep both v7x TensorCores busy
    Nb = _pick_batch_block(N, S, per_sample, budget, max_nb=max_nb)

    vmem_limit = int(min(total_vmem * 3 // 4, 100 * 1024 * 1024))

    # Keep per-pathway dots only if every pathway already fills the MXU depth.
    fuse_matmul = not (n_path > 1 and all(c % 128 == 0 and c >= 128 for c in chans))

    kernel = functools.partial(
        _head_kernel,
        pool_sizes=tuple(pool_sizes),
        out_spatial=out_spatial,
        chan_offsets=tuple(chan_offsets),
        nb=Nb,
        act_func=act_func,
        bf16_pool=bf16_pool,
        fuse_matmul=fuse_matmul,
    )

    in_bytes = sum(2 * N * int(x.shape[1]) * int(x.shape[2]) * int(x.shape[3]) * int(x.shape[4])
                   for x in inputs_bf16)
    cost = pl.CostEstimate(
        flops=int(2 * N * S * c_total * Kp + 3 * (in_bytes // 2)),
        transcendentals=int(N * S * Kp),
        bytes_accessed=int(in_bytes + c_total * Kp * 2 + Kp * 4 + N * Kp * 4),
    )

    def _build_specs(use_pipeline_mode):
        in_specs = []
        for p in range(n_path):
            shape = (Nb,) + tuple(int(d) for d in inputs_bf16[p].shape[1:])
            if use_pipeline_mode and path_buffers is not None:
                in_specs.append(pl.BlockSpec(shape, lambda n: (n, 0, 0, 0, 0),
                                             pipeline_mode=pl.Buffered(path_buffers)))
            else:
                in_specs.append(pl.BlockSpec(shape, lambda n: (n, 0, 0, 0, 0)))
        if use_pipeline_mode:
            # Constant index_map -> resident; single-buffer to reclaim VMEM.
            in_specs.append(pl.BlockSpec((c_total, Kp), lambda n: (0, 0),
                                         pipeline_mode=pl.Buffered(1)))
            in_specs.append(pl.BlockSpec((1, Kp), lambda n: (0, 0),
                                         pipeline_mode=pl.Buffered(1)))
        else:
            in_specs.append(pl.BlockSpec((c_total, Kp), lambda n: (0, 0)))
            in_specs.append(pl.BlockSpec((1, Kp), lambda n: (0, 0)))
        return in_specs

    def _run(use_pipeline_mode):
        call = pl.pallas_call(
            kernel,
            out_shape=jax.ShapeDtypeStruct((N, Kp), jnp.float32),
            grid_spec=pltpu.PrefetchScalarGridSpec(
                num_scalar_prefetch=0,
                grid=(N // Nb,),
                in_specs=_build_specs(use_pipeline_mode),
                out_specs=pl.BlockSpec((Nb, Kp), lambda n: (n, 0)),
            ),
            compiler_params=pltpu.CompilerParams(
                dimension_semantics=("parallel",),
                vmem_limit_bytes=vmem_limit),
            cost_estimate=cost,
        )
        return call(*inputs_bf16, w_pad, b_pad)

    try:
        out = jax.block_until_ready(_run(True))
    except Exception:
        # pipeline_mode / pl.Buffered not supported by this jax build: fall
        # back to default double-buffering (identical numerics).
        out = jax.block_until_ready(_run(False))

    return out[:, :K]


def resnet_basic_head_ncthw(inputs_ncthw, weight, bias, pool_size,
                            act_func="softmax"):
    """Adapter for callers holding PyTorch-layout (N, C, T, H, W) tensors."""
    inputs_cl = [jnp.transpose(x, (0, 2, 3, 4, 1)) for x in inputs_ncthw]
    return resnet_basic_head(inputs_cl, weight, bias, pool_size, act_func)


# ---------------------------------------------------------------------------
# Pure-JAX reference (matches the PyTorch eval-mode forward)
# ---------------------------------------------------------------------------
def _reference(inputs_nthwc, weight, bias, pool_size, act_func="softmax"):
    pooled = []
    for x, ps in zip(inputs_nthwc, pool_size):
        x = x.astype(jnp.float32)
        _, T, H, W, _ = x.shape
        if ps is None:
            ps = (T, H, W)
        window = (1,) + tuple(int(k) for k in ps) + (1,)
        s = jax.lax.reduce_window(x, 0.0, jax.lax.add, window, (1,) * 5, "VALID")
        pooled.append(s / float(ps[0] * ps[1] * ps[2]))
    x = jnp.concatenate(pooled, axis=-1)                  # (N, T', H', W', C)
    x = x @ jnp.asarray(weight, jnp.float32).T + jnp.asarray(bias, jnp.float32)
    if act_func == "softmax":
        x = jax.nn.softmax(x, axis=-1)
    else:
        x = jax.nn.sigmoid(x)
    x = x.mean(axis=(1, 2, 3))
    return x.reshape(x.shape[0], -1)


if __name__ == "__main__":
    key = jax.random.PRNGKey(0)
    k0, k1, k2, k3, kw, kb = jax.random.split(key, 6)

    N = 2
    num_classes = 10
    dim_in = [4, 8]
    weight = 0.05 * jax.random.normal(kw, (num_classes, sum(dim_in)), jnp.float32)
    bias = 0.01 * jax.random.normal(kb, (num_classes,), jnp.float32)

    # Config A: explicit stride-1 AvgPool3d windows (S' > 1), softmax.
    T, H, W = 4, 6, 6
    pool_a = [(2, 3, 3), (2, 3, 3)]
    inputs_a = [
        jax.random.normal(k0, (N, T, H, W, dim_in[0]), jnp.float32).astype(jnp.bfloat16),
        jax.random.normal(k1, (N, T, H, W, dim_in[1]), jnp.float32).astype(jnp.bfloat16),
    ]
    out_a = jax.block_until_ready(resnet_basic_head(inputs_a, weight, bias, pool_a, "softmax"))
    ref_a = _reference(inputs_a, weight, bias, pool_a, "softmax")
    assert out_a.shape == (N, num_classes)
    err_a = float(jnp.max(jnp.abs(out_a - ref_a)))
    assert err_a < 3e-3, ("config A (softmax, pooled)", err_a)

    # Config B: adaptive global pool (pool_size=None -> S' == 1 fast path),
    # SlowFast-style pathways with different temporal extents, softmax.
    pool_b = [None, None]
    inputs_b = [
        jax.random.normal(k2, (N, 4, 6, 6, dim_in[0]), jnp.float32).astype(jnp.bfloat16),
        jax.random.normal(k3, (N, 8, 6, 6, dim_in[1]), jnp.float32).astype(jnp.bfloat16),
    ]
    out_b = jax.block_until_ready(resnet_basic_head(inputs_b, weight, bias, pool_b, "softmax"))
    ref_b = _reference(inputs_b, weight, bias, pool_b, "softmax")
    assert out_b.shape == (N, num_classes)
    err_b = float(jnp.max(jnp.abs(out_b - ref_b)))
    assert err_b < 3e-3, ("config B (softmax, global pool)", err_b)

    # Config C: sigmoid activation on the pooled config.
    out_c = jax.block_until_ready(resnet_basic_head(inputs_a, weight, bias, pool_a, "sigmoid"))
    ref_c = _reference(inputs_a, weight, bias, pool_a, "sigmoid")
    err_c = float(jnp.max(jnp.abs(out_c - ref_c)))
    assert err_c < 3e-3, ("config C (sigmoid, pooled)", err_c)

    # TODO(synk): training-mode path (dropout > 0, no activation/spatial mean)
    # is not implemented; dropout_rate=0.0 eval-mode semantics only.
    print("KERNEL_OK")
</pallas_src>

<mosaic_0001>
module attributes {stable_mosaic.version = 11 : i64} {
  func.func @_head_kernel(%arg0: i32, %arg1: memref<2x4x6x6x4xbf16, #tpu.memory_space<vmem>>, %arg2: memref<2x4x6x6x8xbf16, #tpu.memory_space<vmem>>, %arg3: memref<12x128xbf16, #tpu.memory_space<vmem>>, %arg4: memref<1x128xf32, #tpu.memory_space<vmem>>, %arg5: memref<2x128xf32, #tpu.memory_space<vmem>>) attributes {dimension_semantics = [#tpu.dimension_semantics<parallel>], iteration_bounds = array<i64: 1>, scalar_prefetch = 0 : i64, scratch_operands = 0 : i64, tpu.core_type = #tpu.core_type<tc>, window_params = [{transform_indices = @transform_0, window_bounds = array<i64: 2, 4, 6, 6, 4>}, {transform_indices = @transform_1, window_bounds = array<i64: 2, 4, 6, 6, 8>}, {pipeline_mode = #tpu.pipeline_mode<synchronous>, transform_indices = @transform_2, window_bounds = array<i64: 12, 128>}, {pipeline_mode = #tpu.pipeline_mode<synchronous>, transform_indices = @transform_3, window_bounds = array<i64: 1, 128>}, {transform_indices = @transform_4, window_bounds = array<i64: 2, 128>}]} {
    %c0 = arith.constant 0 : index
    %c0_0 = arith.constant 0 : index
    %c0_1 = arith.constant 0 : index
    %c0_2 = arith.constant 0 : index
    %c0_3 = arith.constant 0 : index
    %0 = vector.load %arg1[%c0, %c0_0, %c0_1, %c0_2, %c0_3] : memref<2x4x6x6x4xbf16, #tpu.memory_space<vmem>>, vector<2x4x6x6x4xbf16>
    %1 = arith.extf %0 : vector<2x4x6x6x4xbf16> to vector<2x4x6x6x4xf32>
    %2 = vector.extract_strided_slice %1 {offsets = [0, 0, 0, 0, 0], sizes = [2, 3, 6, 6, 4], strides = [1, 1, 1, 1, 1]} : vector<2x4x6x6x4xf32> to vector<2x3x6x6x4xf32>
    %3 = vector.extract_strided_slice %1 {offsets = [0, 1, 0, 0, 0], sizes = [2, 3, 6, 6, 4], strides = [1, 1, 1, 1, 1]} : vector<2x4x6x6x4xf32> to vector<2x3x6x6x4xf32>
    %4 = arith.addf %2, %3 : vector<2x3x6x6x4xf32>
    %5 = vector.extract_strided_slice %4 {offsets = [0, 0, 0, 0, 0], sizes = [2, 3, 4, 6, 4], strides = [1, 1, 1, 1, 1]} : vector<2x3x6x6x4xf32> to vector<2x3x4x6x4xf32>
    %6 = vector.extract_strided_slice %4 {offsets = [0, 0, 1, 0, 0], sizes = [2, 3, 4, 6, 4], strides = [1, 1, 1, 1, 1]} : vector<2x3x6x6x4xf32> to vector<2x3x4x6x4xf32>
    %7 = arith.addf %5, %6 : vector<2x3x4x6x4xf32>
    %8 = vector.extract_strided_slice %4 {offsets = [0, 0, 2, 0, 0], sizes = [2, 3, 4, 6, 4], strides = [1, 1, 1, 1, 1]} : vector<2x3x6x6x4xf32> to vector<2x3x4x6x4xf32>
    %9 = arith.addf %7, %8 : vector<2x3x4x6x4xf32>
    %10 = vector.extract_strided_slice %9 {offsets = [0, 0, 0, 0, 0], sizes = [2, 3, 4, 4, 4], strides = [1, 1, 1, 1, 1]} : vector<2x3x4x6x4xf32> to vector<2x3x4x4x4xf32>
    %11 = vector.extract_strided_slice %9 {offsets = [0, 0, 0, 1, 0], sizes = [2, 3, 4, 4, 4], strides = [1, 1, 1, 1, 1]} : vector<2x3x4x6x4xf32> to vector<2x3x4x4x4xf32>
    %12 = arith.addf %10, %11 : vector<2x3x4x4x4xf32>
    %13 = vector.extract_strided_slice %9 {offsets = [0, 0, 0, 2, 0], sizes = [2, 3, 4, 4, 4], strides = [1, 1, 1, 1, 1]} : vector<2x3x4x6x4xf32> to vector<2x3x4x4x4xf32>
    %14 = arith.addf %12, %13 : vector<2x3x4x4x4xf32>
    %15 = vector.shape_cast %14 : vector<2x3x4x4x4xf32> to vector<96x4xf32>
    %16 = arith.truncf %15 : vector<96x4xf32> to vector<96x4xbf16>
    %c0_4 = arith.constant 0 : index
    %c0_5 = arith.constant 0 : index
    %c0_6 = arith.constant 0 : index
    %c0_7 = arith.constant 0 : index
    %c0_8 = arith.constant 0 : index
    %17 = vector.load %arg2[%c0_4, %c0_5, %c0_6, %c0_7, %c0_8] : memref<2x4x6x6x8xbf16, #tpu.memory_space<vmem>>, vector<2x4x6x6x8xbf16>
    %18 = arith.extf %17 : vector<2x4x6x6x8xbf16> to vector<2x4x6x6x8xf32>
    %19 = vector.extract_strided_slice %18 {offsets = [0, 0, 0, 0, 0], sizes = [2, 3, 6, 6, 8], strides = [1, 1, 1, 1, 1]} : vector<2x4x6x6x8xf32> to vector<2x3x6x6x8xf32>
    %20 = vector.extract_strided_slice %18 {offsets = [0, 1, 0, 0, 0], sizes = [2, 3, 6, 6, 8], strides = [1, 1, 1, 1, 1]} : vector<2x4x6x6x8xf32> to vector<2x3x6x6x8xf32>
    %21 = arith.addf %19, %20 : vector<2x3x6x6x8xf32>
    %22 = vector.extract_strided_slice %21 {offsets = [0, 0, 0, 0, 0], sizes = [2, 3, 4, 6, 8], strides = [1, 1, 1, 1, 1]} : vector<2x3x6x6x8xf32> to vector<2x3x4x6x8xf32>
    %23 = vector.extract_strided_slice %21 {offsets = [0, 0, 1, 0, 0], sizes = [2, 3, 4, 6, 8], strides = [1, 1, 1, 1, 1]} : vector<2x3x6x6x8xf32> to vector<2x3x4x6x8xf32>
    %24 = arith.addf %22, %23 : vector<2x3x4x6x8xf32>
    %25 = vector.extract_strided_slice %21 {offsets = [0, 0, 2, 0, 0], sizes = [2, 3, 4, 6, 8], strides = [1, 1, 1, 1, 1]} : vector<2x3x6x6x8xf32> to vector<2x3x4x6x8xf32>
    %26 = arith.addf %24, %25 : vector<2x3x4x6x8xf32>
    %27 = vector.extract_strided_slice %26 {offsets = [0, 0, 0, 0, 0], sizes = [2, 3, 4, 4, 8], strides = [1, 1, 1, 1, 1]} : vector<2x3x4x6x8xf32> to vector<2x3x4x4x8xf32>
    %28 = vector.extract_strided_slice %26 {offsets = [0, 0, 0, 1, 0], sizes = [2, 3, 4, 4, 8], strides = [1, 1, 1, 1, 1]} : vector<2x3x4x6x8xf32> to vector<2x3x4x4x8xf32>
    %29 = arith.addf %27, %28 : vector<2x3x4x4x8xf32>
    %30 = vector.extract_strided_slice %26 {offsets = [0, 0, 0, 2, 0], sizes = [2, 3, 4, 4, 8], strides = [1, 1, 1, 1, 1]} : vector<2x3x4x6x8xf32> to vector<2x3x4x4x8xf32>
    %31 = arith.addf %29, %30 : vector<2x3x4x4x8xf32>
    %32 = vector.shape_cast %31 : vector<2x3x4x4x8xf32> to vector<96x8xf32>
    %33 = arith.truncf %32 : vector<96x8xf32> to vector<96x8xbf16>
    %34 = tpu.concatenate %16, %33 in 1 : vector<96x4xbf16>, vector<96x8xbf16> -> vector<96x12xbf16>
    %c0_9 = arith.constant 0 : index
    %c0_10 = arith.constant 0 : index
    %35 = vector.load %arg3[%c0_9, %c0_10] : memref<12x128xbf16, #tpu.memory_space<vmem>>, vector<12x128xbf16>
    %cst = arith.constant dense<0.000000e+00> : vector<96x128xf32>
    %36 = tpu.matmul %34, %35, %cst {dimension_numbers = #tpu.dot_dimension_numbers<[1], [0], [0], [1], [0, 0, 1, 1], [], []>} : vector<96x12xbf16>, vector<12x128xbf16>, vector<96x128xf32> -> vector<96x128xf32>
    %c0_11 = arith.constant 0 : index
    %c0_12 = arith.constant 0 : index
    %37 = vector.load %arg4[%c0_11, %c0_12] : memref<1x128xf32, #tpu.memory_space<vmem>>, vector<1x128xf32>
    %38 = vector.broadcast %37 : vector<1x128xf32> to vector<96x128xf32>
    %39 = arith.addf %36, %38 : vector<96x128xf32>
    %cst_13 = arith.constant dense<0xFF800000> : vector<96xf32>
    %40 = vector.multi_reduction <maximumf>, %39, %cst_13 [1] : vector<96x128xf32> to vector<96xf32>
    %41 = vector.shape_cast %40 : vector<96xf32> to vector<96x1xf32>
    %42 = vector.broadcast %41 : vector<96x1xf32> to vector<96x128xf32>
    %43 = arith.subf %39, %42 : vector<96x128xf32>
    %44 = math.exp %43 : vector<96x128xf32>
    %cst_14 = arith.constant dense<0.000000e+00> : vector<96xf32>
    %45 = vector.multi_reduction <add>, %44, %cst_14 [1] : vector<96x128xf32> to vector<96xf32>
    %46 = vector.shape_cast %45 : vector<96xf32> to vector<96x1xf32>
    %47 = tpu.reciprocal %46 {approx = true} : vector<96x1xf32> -> vector<96x1xf32>
    %48 = vector.broadcast %47 : vector<96x1xf32> to vector<96x128xf32>
    %49 = arith.mulf %44, %48 : vector<96x128xf32>
    %50 = vector.shape_cast %49 : vector<96x128xf32> to vector<2x48x128xf32>
    %cst_15 = arith.constant dense<0.000000e+00> : vector<2x128xf32>
    %51 = vector.multi_reduction <add>, %50, %cst_15 [1] : vector<2x48x128xf32> to vector<2x128xf32>
    %cst_16 = arith.constant 4.800000e+01 : f32
    %52 = vector.broadcast %cst_16 : f32 to vector<2x128xf32>
    %53 = arith.divf %51, %52 : vector<2x128xf32>
    %c0_17 = arith.constant 0 : index
    %c0_18 = arith.constant 0 : index
    %54 = vector.load %arg5[%c0_17, %c0_18] : memref<2x128xf32, #tpu.memory_space<vmem>>, vector<2x128xf32>
    tpu.vector_store %arg5[%c0_17, %c0_18], %53 {strides = array<i32>} : memref<2x128xf32, #tpu.memory_space<vmem>>, vector<2x128xf32>,
    return
  }
  func.func @transform_0(%arg0: i32) -> (i32, i32, i32, i32, i32) {
    %c0_i32 = arith.constant 0 : i32
    %c0_i32_0 = arith.constant 0 : i32
    %c0_i32_1 = arith.constant 0 : i32
    %c0_i32_2 = arith.constant 0 : i32
    %c0_i32_3 = arith.constant 0 : i32
    return %arg0, %c0_i32, %c0_i32_0, %c0_i32_1, %c0_i32_2 : i32, i32, i32, i32, i32
  }
  func.func @transform_1(%arg0: i32) -> (i32, i32, i32, i32, i32) {
    %c0_i32 = arith.constant 0 : i32
    %c0_i32_0 = arith.constant 0 : i32
    %c0_i32_1 = arith.constant 0 : i32
    %c0_i32_2 = arith.constant 0 : i32
    %c0_i32_3 = arith.constant 0 : i32
    return %arg0, %c0_i32, %c0_i32_0, %c0_i32_1, %c0_i32_2 : i32, i32, i32, i32, i32
  }
  func.func @transform_2(%arg0: i32) -> (i32, i32) {
    %c0_i32 = arith.constant 0 : i32
    %c0_i32_0 = arith.constant 0 : i32
    %c0_i32_1 = arith.constant 0 : i32
    return %c0_i32, %c0_i32_0 : i32, i32
  }
  func.func @transform_3(%arg0: i32) -> (i32, i32) {
    %c0_i32 = arith.constant 0 : i32
    %c0_i32_0 = arith.constant 0 : i32
    %c0_i32_1 = arith.constant 0 : i32
    return %c0_i32, %c0_i32_0 : i32, i32
  }
  func.func @transform_4(%arg0: i32) -> (i32, i32) {
    %c0_i32 = arith.constant 0 : i32
    %c0_i32_0 = arith.constant 0 : i32
    return %arg0, %c0_i32 : i32, i32
  }
}

module attributes {stable_mosaic.version = 11 : i64} {
  func.func @_head_kernel(%arg0: i32, %arg1: memref<2x4x6x6x4xbf16, #tpu.memory_space<vmem>>, %arg2: memref<2x4x6x6x8xbf16, #tpu.memory_space<vmem>>, %arg3: memref<12x128xbf16, #tpu.memory_space<vmem>>, %arg4: memref<1x128xf32, #tpu.memory_space<vmem>>, %arg5: memref<2x128xf32, #tpu.memory_space<vmem>>) attributes {dimension_semantics = [#tpu.dimension_semantics<parallel>], iteration_bounds = array<i64: 1>, scalar_prefetch = 0 : i64, scratch_operands = 0 : i64, tpu.core_type = #tpu.core_type<tc>, window_params = [{transform_indices = @transform_0, window_bounds = array<i64: 2, 4, 6, 6, 4>}, {transform_indices = @transform_1, window_bounds = array<i64: 2, 4, 6, 6, 8>}, {pipeline_mode = #tpu.pipeline_mode<synchronous>, transform_indices = @transform_2, window_bounds = array<i64: 12, 128>}, {pipeline_mode = #tpu.pipeline_mode<synchronous>, transform_indices = @transform_3, window_bounds = array<i64: 1, 128>}, {transform_indices = @transform_4, window_bounds = array<i64: 2, 128>}]} {
    %c0 = arith.constant 0 : index
    %c0_0 = arith.constant 0 : index
    %c0_1 = arith.constant 0 : index
    %c0_2 = arith.constant 0 : index
    %c0_3 = arith.constant 0 : index
    %0 = vector.load %arg1[%c0, %c0_0, %c0_1, %c0_2, %c0_3] : memref<2x4x6x6x4xbf16, #tpu.memory_space<vmem>>, vector<2x4x6x6x4xbf16>
    %1 = arith.extf %0 : vector<2x4x6x6x4xbf16> to vector<2x4x6x6x4xf32>
    %2 = vector.extract_strided_slice %1 {offsets = [0, 0, 0, 0, 0], sizes = [2, 3, 6, 6, 4], strides = [1, 1, 1, 1, 1]} : vector<2x4x6x6x4xf32> to vector<2x3x6x6x4xf32>
    %3 = vector.extract_strided_slice %1 {offsets = [0, 1, 0, 0, 0], sizes = [2, 3, 6, 6, 4], strides = [1, 1, 1, 1, 1]} : vector<2x4x6x6x4xf32> to vector<2x3x6x6x4xf32>
    %4 = arith.addf %2, %3 : vector<2x3x6x6x4xf32>
    %5 = vector.extract_strided_slice %4 {offsets = [0, 0, 0, 0, 0], sizes = [2, 3, 4, 6, 4], strides = [1, 1, 1, 1, 1]} : vector<2x3x6x6x4xf32> to vector<2x3x4x6x4xf32>
    %6 = vector.extract_strided_slice %4 {offsets = [0, 0, 1, 0, 0], sizes = [2, 3, 4, 6, 4], strides = [1, 1, 1, 1, 1]} : vector<2x3x6x6x4xf32> to vector<2x3x4x6x4xf32>
    %7 = arith.addf %5, %6 : vector<2x3x4x6x4xf32>
    %8 = vector.extract_strided_slice %4 {offsets = [0, 0, 2, 0, 0], sizes = [2, 3, 4, 6, 4], strides = [1, 1, 1, 1, 1]} : vector<2x3x6x6x4xf32> to vector<2x3x4x6x4xf32>
    %9 = arith.addf %7, %8 : vector<2x3x4x6x4xf32>
    %10 = vector.extract_strided_slice %9 {offsets = [0, 0, 0, 0, 0], sizes = [2, 3, 4, 4, 4], strides = [1, 1, 1, 1, 1]} : vector<2x3x4x6x4xf32> to vector<2x3x4x4x4xf32>
    %11 = vector.extract_strided_slice %9 {offsets = [0, 0, 0, 1, 0], sizes = [2, 3, 4, 4, 4], strides = [1, 1, 1, 1, 1]} : vector<2x3x4x6x4xf32> to vector<2x3x4x4x4xf32>
    %12 = arith.addf %10, %11 : vector<2x3x4x4x4xf32>
    %13 = vector.extract_strided_slice %9 {offsets = [0, 0, 0, 2, 0], sizes = [2, 3, 4, 4, 4], strides = [1, 1, 1, 1, 1]} : vector<2x3x4x6x4xf32> to vector<2x3x4x4x4xf32>
    %14 = arith.addf %12, %13 : vector<2x3x4x4x4xf32>
    %15 = vector.shape_cast %14 : vector<2x3x4x4x4xf32> to vector<96x4xf32>
    %16 = arith.truncf %15 : vector<96x4xf32> to vector<96x4xbf16>
    %c0_4 = arith.constant 0 : index
    %c0_5 = arith.constant 0 : index
    %c0_6 = arith.constant 0 : index
    %c0_7 = arith.constant 0 : index
    %c0_8 = arith.constant 0 : index
    %17 = vector.load %arg2[%c0_4, %c0_5, %c0_6, %c0_7, %c0_8] : memref<2x4x6x6x8xbf16, #tpu.memory_space<vmem>>, vector<2x4x6x6x8xbf16>
    %18 = arith.extf %17 : vector<2x4x6x6x8xbf16> to vector<2x4x6x6x8xf32>
    %19 = vector.extract_strided_slice %18 {offsets = [0, 0, 0, 0, 0], sizes = [2, 3, 6, 6, 8], strides = [1, 1, 1, 1, 1]} : vector<2x4x6x6x8xf32> to vector<2x3x6x6x8xf32>
    %20 = vector.extract_strided_slice %18 {offsets = [0, 1, 0, 0, 0], sizes = [2, 3, 6, 6, 8], strides = [1, 1, 1, 1, 1]} : vector<2x4x6x6x8xf32> to vector<2x3x6x6x8xf32>
    %21 = arith.addf %19, %20 : vector<2x3x6x6x8xf32>
    %22 = vector.extract_strided_slice %21 {offsets = [0, 0, 0, 0, 0], sizes = [2, 3, 4, 6, 8], strides = [1, 1, 1, 1, 1]} : vector<2x3x6x6x8xf32> to vector<2x3x4x6x8xf32>
    %23 = vector.extract_strided_slice %21 {offsets = [0, 0, 1, 0, 0], sizes = [2, 3, 4, 6, 8], strides = [1, 1, 1, 1, 1]} : vector<2x3x6x6x8xf32> to vector<2x3x4x6x8xf32>
    %24 = arith.addf %22, %23 : vector<2x3x4x6x8xf32>
    %25 = vector.extract_strided_slice %21 {offsets = [0, 0, 2, 0, 0], sizes = [2, 3, 4, 6, 8], strides = [1, 1, 1, 1, 1]} : vector<2x3x6x6x8xf32> to vector<2x3x4x6x8xf32>
    %26 = arith.addf %24, %25 : vector<2x3x4x6x8xf32>
    %27 = vector.extract_strided_slice %26 {offsets = [0, 0, 0, 0, 0], sizes = [2, 3, 4, 4, 8], strides = [1, 1, 1, 1, 1]} : vector<2x3x4x6x8xf32> to vector<2x3x4x4x8xf32>
    %28 = vector.extract_strided_slice %26 {offsets = [0, 0, 0, 1, 0], sizes = [2, 3, 4, 4, 8], strides = [1, 1, 1, 1, 1]} : vector<2x3x4x6x8xf32> to vector<2x3x4x4x8xf32>
    %29 = arith.addf %27, %28 : vector<2x3x4x4x8xf32>
    %30 = vector.extract_strided_slice %26 {offsets = [0, 0, 0, 2, 0], sizes = [2, 3, 4, 4, 8], strides = [1, 1, 1, 1, 1]} : vector<2x3x4x6x8xf32> to vector<2x3x4x4x8xf32>
    %31 = arith.addf %29, %30 : vector<2x3x4x4x8xf32>
    %32 = vector.shape_cast %31 : vector<2x3x4x4x8xf32> to vector<96x8xf32>
    %33 = arith.truncf %32 : vector<96x8xf32> to vector<96x8xbf16>
    %34 = tpu.concatenate %16, %33 in 1 : vector<96x4xbf16>, vector<96x8xbf16> -> vector<96x12xbf16>
    %c0_9 = arith.constant 0 : index
    %c0_10 = arith.constant 0 : index
    %35 = vector.load %arg3[%c0_9, %c0_10] : memref<12x128xbf16, #tpu.memory_space<vmem>>, vector<12x128xbf16>
    %cst = arith.constant dense<0.000000e+00> : vector<96x128xf32>
    %36 = tpu.matmul %34, %35, %cst {dimension_numbers = #tpu.dot_dimension_numbers<[1], [0], [0], [1], [0, 0, 1, 1], [], []>} : vector<96x12xbf16>, vector<12x128xbf16>, vector<96x128xf32> -> vector<96x128xf32>
    %c0_11 = arith.constant 0 : index
    %c0_12 = arith.constant 0 : index
    %37 = vector.load %arg4[%c0_11, %c0_12] : memref<1x128xf32, #tpu.memory_space<vmem>>, vector<1x128xf32>
    %38 = vector.broadcast %37 : vector<1x128xf32> to vector<96x128xf32>
    %39 = arith.addf %36, %38 : vector<96x128xf32>
    %cst_13 = arith.constant dense<0xFF800000> : vector<96xf32>
    %40 = vector.multi_reduction <maximumf>, %39, %cst_13 [1] : vector<96x128xf32> to vector<96xf32>
    %41 = vector.shape_cast %40 : vector<96xf32> to vector<96x1xf32>
    %42 = vector.broadcast %41 : vector<96x1xf32> to vector<96x128xf32>
    %43 = arith.subf %39, %42 : vector<96x128xf32>
    %44 = math.exp %43 : vector<96x128xf32>
    %cst_14 = arith.constant dense<0.000000e+00> : vector<96xf32>
    %45 = vector.multi_reduction <add>, %44, %cst_14 [1] : vector<96x128xf32> to vector<96xf32>
    %46 = vector.shape_cast %45 : vector<96xf32> to vector<96x1xf32>
    %47 = tpu.reciprocal %46 {approx = true} : vector<96x1xf32> -> vector<96x1xf32>
    %48 = vector.broadcast %47 : vector<96x1xf32> to vector<96x128xf32>
    %49 = arith.mulf %44, %48 : vector<96x128xf32>
    %50 = vector.shape_cast %49 : vector<96x128xf32> to vector<2x48x128xf32>
    %cst_15 = arith.constant dense<0.000000e+00> : vector<2x128xf32>
    %51 = vector.multi_reduction <add>, %50, %cst_15 [1] : vector<2x48x128xf32> to vector<2x128xf32>
    %cst_16 = arith.constant 4.800000e+01 : f32
    %52 = vector.broadcast %cst_16 : f32 to vector<2x128xf32>
    %53 = arith.divf %51, %52 : vector<2x128xf32>
    %c0_17 = arith.constant 0 : index
    %c0_18 = arith.constant 0 : index
    %54 = vector.load %arg5[%c0_17, %c0_18] : memref<2x128xf32, #tpu.memory_space<vmem>>, vector<2x128xf32>
    tpu.vector_store %arg5[%c0_17, %c0_18], %53 {strides = array<i32>} : memref<2x128xf32, #tpu.memory_space<vmem>>, vector<2x128xf32>,
    return
  }
  func.func @transform_0(%arg0: i32) -> (i32, i32, i32, i32, i32) {
    %c0_i32 = arith.constant 0 : i32
    %c0_i32_0 = arith.constant 0 : i32
    %c0_i32_1 = arith.constant 0 : i32
    %c0_i32_2 = arith.constant 0 : i32
    %c0_i32_3 = arith.constant 0 : i32
    return %arg0, %c0_i32, %c0_i32_0, %c0_i32_1, %c0_i32_2 : i32, i32, i32, i32, i32
  }
  func.func @transform_1(%arg0: i32) -> (i32, i32, i32, i32, i32) {
    %c0_i32 = arith.constant 0 : i32
    %c0_i32_0 = arith.constant 0 : i32
    %c0_i32_1 = arith.constant 0 : i32
    %c0_i32_2 = arith.constant 0 : i32
    %c0_i32_3 = arith.constant 0 : i32
    return %arg0, %c0_i32, %c0_i32_0, %c0_i32_1, %c0_i32_2 : i32, i32, i32, i32, i32
  }
  func.func @transform_2(%arg0: i32) -> (i32, i32) {
    %c0_i32 = arith.constant 0 : i32
    %c0_i32_0 = arith.constant 0 : i32
    %c0_i32_1 = arith.constant 0 : i32
    return %c0_i32, %c0_i32_0 : i32, i32
  }
  func.func @transform_3(%arg0: i32) -> (i32, i32) {
    %c0_i32 = arith.constant 0 : i32
    %c0_i32_0 = arith.constant 0 : i32
    %c0_i32_1 = arith.constant 0 : i32
    return %c0_i32, %c0_i32_0 : i32, i32
  }
  func.func @transform_4(%arg0: i32) -> (i32, i32) {
    %c0_i32 = arith.constant 0 : i32
    %c0_i32_0 = arith.constant 0 : i32
    return %arg0, %c0_i32 : i32, i32
  }
}

</mosaic_0001>

<bundles_post_ra>
// kernel: tpu_custom_call.1
= control target key start
LH: loop header
LB: loop body
LE: loop exit
PB: predicated region body
PF: predicated region fallthrough
CT: control target
= control target key end

     0   :  { %s2144_s0 = inlined_call_operand.vmem [shape: bf16[2,4,6,6,4], index: 0, kind: input, shape index: {}]   ;;  %s2145_s1 = inlined_call_operand.vmem [shape: bf16[2,4,6,6,8], index: 1, kind: input, shape index: {}]   ;;  %s2146_s2 = inlined_call_operand.vmem [shape: bf16[12,128], index: 2, kind: input, shape index: {}]   ;;  %s2147_s3 = inlined_call_operand.vmem [shape: f32[1,128], index: 3, kind: input, shape index: {}]   ;;  %s2148_s4 = inlined_call_operand.hbm [shape: f32[2,128], index: 4, kind: output, shape index: {}]  }
   0x1   :  { %v1341_v0 = vld [vmem:[%s2144_s0 + $0x18] sm:$0x7]  ;;  %v1346_v1 = vld [vmem:[%s2144_s0 + $0x1c] sm:$0x7]  ;;  %v1351_v2 = vld [vmem:[%s2144_s0 + $0x20] sm:$0x7] }
   0x2   :  { %v1356_v3 = vld [vmem:[%s2144_s0 + $0x24] sm:$0x7]  ;;  %v1361_v4 = vld [vmem:[%s2144_s0 + $0x30] sm:$0x7]  ;;  %v1366_v5 = vld [vmem:[%s2144_s0 + $0x34] sm:$0x7]  ;;  %v2151_v17 = vunpack.c.l.bf16 %v1341_v0  ;;  %v2150_v18 = vunpack.c.l.bf16 %v1346_v1  ;;  %v2149_v19 = vunpack.c.l.bf16 %v1351_v2 }
   0x3   :  { %v1371_v6 = vld [vmem:[%s2144_s0 + $0x38] sm:$0x7]  ;;  %v1376_v7 = vld [vmem:[%s2144_s0 + $0x3c] sm:$0x7]  ;;  %v1381_v8 = vld [vmem:[%s2144_s0 + $0x40] sm:$0x7]  ;;  %v2161_v23 = vunpack.c.l.bf16 %v1356_v3  ;;  %v79_v24 = vunpack.c.l.bf16 %v1361_v4  ;;  %v80_v25 = vunpack.c.l.bf16 %v1366_v5 }
   0x4   :  { %v37_v9 = vld [vmem:[%s2144_s0 + $0x48] sm:$0x7]  ;;  %v38_v10 = vld [vmem:[%s2144_s0 + $0x4c] sm:$0x7]  ;;  %v39_v11 = vld [vmem:[%s2144_s0 + $0x50] sm:$0x7]  ;;  %v81_v26 = vunpack.c.l.bf16 %v1371_v6  ;;  %v82_v30 = vunpack.c.l.bf16 %v1376_v7  ;;  %v83_v31 = vunpack.c.l.bf16 %v1381_v8 }
   0x5   :  { %v40_v12 = vld [vmem:[%s2144_s0 + $0x54] sm:$0x7]  ;;  %v41_v13 = vld [vmem:[%s2144_s0 + $0x58] sm:$0x7]  ;;  %v1406_v15 = vld [vmem:[%s2144_s0 + $0x7c] sm:$0x7]  ;;  %v85_v32 = vunpack.c.l.bf16 %v37_v9  ;;  %v86_v33 = vunpack.c.l.bf16 %v38_v10  ;;  %v87_v37 = vunpack.c.l.bf16 %v39_v11 }
   0x6   :  { %v1401_v14 = vld [vmem:[%s2144_s0 + $0x78] sm:$0x7]  ;;  %v1411_v16 = vld [vmem:[%s2144_s0 + $0x80] sm:$0x7]  ;;  %v1419_v20 = vld [vmem:[%s2144_s0 + $0x90] sm:$0x7]  ;;  %v88_v38 = vunpack.c.l.bf16 %v40_v12  ;;  %v89_v39 = vunpack.c.l.bf16 %v41_v13  ;;  %v98_v45 = vunpack.c.l.bf16 %v1406_v15 }
   0x7   :  { %v1424_v21 = vld [vmem:[%s2144_s0 + $0x94] sm:$0x7]  ;;  %v1429_v22 = vld [vmem:[%s2144_s0 + $0x98] sm:$0x7]  ;;  %v1438_v27 = vld [vmem:[%s2144_s0 + $0x9c] sm:$0x7]  ;;  %v97_v40 = vunpack.c.l.bf16 %v1401_v14  ;;  %v2157_v41 = vunpack.c.l.bf16 %v1419_v20  ;;  %v99_v46 = vunpack.c.l.bf16 %v1411_v16 }
   0x8   :  { %v1443_v28 = vld [vmem:[%s2144_s0 + $0xa0] sm:$0x7]  ;;  %v1448_v29 = vld [vmem:[%s2144_s0 + $0xa4] sm:$0x7]  ;;  %v1460_v35 = vld [vmem:[%s2144_s0 + $0x88] sm:$0x7]  ;;  %v2156_v42 = vunpack.c.l.bf16 %v1424_v21  ;;  %v2155_v43 = vunpack.c.l.bf16 %v1429_v22  ;;  %v2154_v44 = vunpack.c.l.bf16 %v1438_v27 }
   0x9   :  { %v1455_v34 = vld [vmem:[%s2144_s0 + $0x84] sm:$0x7]  ;;  %v1465_v36 = vld [vmem:[%s2144_s0 + $0x8c] sm:$0x7]  ;;  %v2153_v47 = vunpack.c.l.bf16 %v1443_v28  ;;  %v2152_v48 = vunpack.c.l.bf16 %v1448_v29 }
   0xa   :  { %9 = vsyncpa [#allocation3], 0  ;;  %v1479_v49 = vld [vmem:[%s2144_s0 + $0x28] sm:$0x7]  ;;  %v42_v50 = vld [vmem:[%s2144_s0 + $0x5c] sm:$0x7]  ;;  %v100_v51 = vunpack.c.l.bf16 %v1455_v34  ;;  %v2159_v52 = vunpack.c.l.bf16 %v1460_v35  ;;  %v2158_v53 = vunpack.c.l.bf16 %v1465_v36  ;;  %v127_v54 = vadd.f32 %v85_v32, %v79_v24 }
   0xb   :  { %v128_v55 = vadd.f32 %v86_v33, %v80_v25  ;;  %v129_v56 = vadd.f32 %v87_v37, %v81_v26  ;;  %v130_v57 = vadd.f32 %v88_v38, %v82_v30  ;;  %v131_v58 = vadd.f32 %v89_v39, %v83_v31  ;;  %v36_v59 = vld [vmem:[%s2144_s0 + $0x44] sm:$0x7]  ;;  %v1518_v8 = vld [vmem:[%s2144_s0 + $0x2c] sm:$0x7]  ;;  %v43_v13 = vld [vmem:[%s2144_s0 + $0x60] sm:$0x7] }
   0xc   :  { %v139_v60 = vadd.f32 %v2157_v41, %v97_v40  ;;  %v140_v61 = vadd.f32 %v2156_v42, %v98_v45  ;;  %v141_v62 = vadd.f32 %v2155_v43, %v99_v46  ;;  %v142_v63 = vadd.f32 %v2154_v44, %v100_v51  ;;  %v44_v32 = vld [vmem:[%s2144_s0 + $0x64] sm:$0x7]  ;;  %v64_v14 = vld [vmem:[%s2144_s0 + $0xb4] sm:$0x7]  ;;  %v65_v15 = vld [vmem:[%s2144_s0 + $0xb8] sm:$0x7] }
   0xd   :  { %v2160_v4 = vunpack.c.l.bf16 %v1479_v49  ;;  %v90_v5 = vunpack.c.l.bf16 %v42_v50  ;;  %v143_v6 = vadd.f32 %v2153_v47, %v2159_v52  ;;  %v144_v7 = vadd.f32 %v2152_v48, %v2158_v53  ;;  %v47_v48 = vld [vmem:[%s2144_s0 + $0x70] sm:$0x7]  ;;  %s1310_s16 = smov 4   ;;  %s1207_s5 = sshll.u32 %s2148_s4, 4  ;;  %s1208_s5 = int_to_ptr.hbm [resolvable:$true] %s1207_s5 }
   0xe   :  { %v84_v9 = vunpack.c.l.bf16 %v36_v59  ;;  %v121_v10 = vadd.f32 %v79_v24, %v2151_v17  ;;  %v122_v11 = vadd.f32 %v80_v25, %v2150_v18  ;;  %v123_v12 = vadd.f32 %v81_v26, %v2149_v19  ;;  %v45_v24 = vld [vmem:[%s2144_s0 + $0x68] sm:$0x7]  ;;  %v46_v25 = vld [vmem:[%s2144_s0 + $0x6c] sm:$0x7] }
   0xf   :  { %v159_v33 = vadd.f32 %v128_v55, %v127_v54  ;;  %v160_v37 = vadd.f32 %v129_v56, %v128_v55  ;;  %v161_v38 = vadd.f32 %v130_v57, %v129_v56  ;;  %v162_v39 = vadd.f32 %v131_v58, %v130_v57 }
  0x10   :  { %v2172_v26 = vunpack.c.l.bf16 %v1518_v8  ;;  %v124_v50 = vadd.f32 %v82_v30, %v2161_v23  ;;  %v125_v59 = vadd.f32 %v83_v31, %v2160_v4  ;;  %v132_v54 = vadd.f32 %v90_v5, %v84_v9 }
  0x11   :  { %v167_v55 = vadd.f32 %v140_v61, %v139_v60  ;;  %v168_v19 = vadd.f32 %v141_v62, %v140_v61  ;;  %v169_v18 = vadd.f32 %v142_v63, %v141_v62  ;;  %v170_v17 = vadd.f32 %v143_v6, %v142_v63 }
  0x12   :  { %v91_v47 = vunpack.c.l.bf16 %v43_v13  ;;  %v92_v44 = vunpack.c.l.bf16 %v44_v32  ;;  %v93_v43 = vunpack.c.l.bf16 %v45_v24  ;;  %v94_v42 = vunpack.c.l.bf16 %v46_v25 }
  0x13   :  { %v155_v41 = vadd.f32 %v122_v11, %v121_v10  ;;  %v156_v53 = vadd.f32 %v123_v12, %v122_v11  ;;  %v1546_v52 = vadd.f32 %v159_v33, %v129_v56  ;;  %v1548_v30 = vadd.f32 %v160_v37, %v130_v57  ;;  %v48_v57 = vld [vmem:[%s2144_s0 + $0x74] sm:$0x7] }
  0x14   :  { %v1550_v31 = vadd.f32 %v161_v38, %v131_v58  ;;  %v1552_v60 = vadd.f32 %v162_v39, %v132_v54  ;;  %v95_v61 = vunpack.c.l.bf16 %v47_v48  ;;  %v126_v5 = vadd.f32 %v84_v9, %v2172_v26  ;;  %v61_v48 = vld [vmem:[%s2144_s0 + $0xa8] sm:$0x7]  ;;  %v62_v58 = vld [vmem:[%s2144_s0 + $0xac] sm:$0x7] }
  0x15   :  { %v157_v4 = vadd.f32 %v124_v50, %v123_v12  ;;  %v158_v23 = vadd.f32 %v125_v59, %v124_v50  ;;  %v1556_v13 = vadd.f32 %v167_v55, %v141_v62  ;;  %v1558_v32 = vadd.f32 %v168_v19, %v142_v63  ;;  %v63_v63 = vld [vmem:[%s2144_s0 + $0xb0] sm:$0x7] }
  0x16   :  { %v1560_v10 = vadd.f32 %v169_v18, %v143_v6  ;;  %v1562_v56 = vadd.f32 %v170_v17, %v144_v7  ;;  %v133_v19 = vadd.f32 %v97_v40, %v91_v47  ;;  %v134_v18 = vadd.f32 %v98_v45, %v92_v44 }
  0x17   :  { %2188 = vst [vmem:[#allocation5_spill] sm:$0xff] %v1556_v13  ;;  %v135_v17 = vadd.f32 %v99_v46, %v93_v43  ;;  %v136_v62 = vadd.f32 %v100_v51, %v94_v42  ;;  %v179_v6 = vadd.f32 %v155_v41, %v123_v12  ;;  %v180_v7 = vadd.f32 %v156_v53, %v124_v50 }
  0x18   :  { %2189 = vst [vmem:[#allocation6_spill] sm:$0xff] %v1558_v32  ;;  %v181_v9 = vadd.f32 %v157_v4, %v125_v59  ;;  %v182_v11 = vadd.f32 %v158_v23, %v126_v5  ;;  %v96_v16 = vunpack.c.l.bf16 %v48_v57  ;;  %v109_v40 = vunpack.c.l.bf16 %v61_v48  ;;  %v66_v5 = vld [vmem:[%s2144_s0 + $0xbc] sm:$0x7] }
  0x19   :  { %v110_v34 = vunpack.c.l.bf16 %v62_v58  ;;  %v2190_v42 = vunpack.c.l.bf16 %v1460_v35  ;;  %v111_v44 = vunpack.c.l.bf16 %v63_v63  ;;  %v163_v45 = vadd.f32 %v134_v18, %v133_v19 }
  0x1a   :  { %v164_v41 = vadd.f32 %v135_v17, %v134_v18  ;;  %v165_v46 = vadd.f32 %v136_v62, %v135_v17  ;;  %v227_v47 = vrot.slane %v179_v6, 1  ;;  %v228_v23 = vrot.slane %v180_v7, 1 }
  0x1b   :  { %v137_v43 = vadd.f32 %v2190_v42, %v95_v61  ;;  %v112_v51 = vunpack.c.l.bf16 %v64_v14  ;;  %v113_v53 = vunpack.c.l.bf16 %v65_v15  ;;  %v229_v4 = vrot.slane %v181_v9, 1 }
  0x1c   :  { %v230_v12 = vrot.slane %v182_v11, 1  ;;  %v2191_v33 = vunpack.c.l.bf16 %v1465_v36  ;;  %v2192_v38 = vunpack.c.l.bf16 %v1419_v20  ;;  %v2193_v24 = vunpack.c.l.bf16 %v1424_v21 }
  0x1d   :  { %v166_v25 = vadd.f32 %v137_v43, %v136_v62  ;;  %v2194_v50 = vunpack.c.l.bf16 %v1429_v22  ;;  %v187_v54 = vadd.f32 %v163_v45, %v135_v17  ;;  %v188_v55 = vadd.f32 %v164_v41, %v136_v62 }
  0x1e   :  { %v138_v37 = vadd.f32 %v2191_v33, %v96_v16  ;;  %v145_v39 = vadd.f32 %v109_v40, %v2192_v38  ;;  %v146_v35 = vadd.f32 %v110_v34, %v2193_v24  ;;  %v189_v61 = vadd.f32 %v165_v46, %v137_v43 }
  0x1f   :  { %v147_v59 = vadd.f32 %v111_v44, %v2194_v50  ;;  %v275_v57 = vadd.f32 %v227_v47, %v179_v6  ;;  %v276_v36 = vadd.f32 %v228_v23, %v180_v7  ;;  %v299_v48 = vrot.slane %v179_v6, 2 }
  0x20   :  { %v300_v58 = vrot.slane %v180_v7, 2  ;;  %v277_v20 = vadd.f32 %v229_v4, %v181_v9  ;;  %v278_v19 = vadd.f32 %v230_v12, %v182_v11  ;;  %v301_v18 = vrot.slane %v181_v9, 2 }
  0x21   :  { %v302_v21 = vrot.slane %v182_v11, 2  ;;  %v2195_v63 = vunpack.c.l.bf16 %v1438_v27  ;;  %v190_v22 = vadd.f32 %v166_v25, %v138_v37  ;;  %v114_v15 = vunpack.c.l.bf16 %v66_v5 }
  0x22   :  { %v2196_v17 = vunpack.c.l.bf16 %v1443_v28  ;;  %v235_v16 = vrot.slane %v187_v54, 1  ;;  %v171_v40 = vadd.f32 %v146_v35, %v145_v39  ;;  %v236_v34 = vrot.slane %v188_v55, 1 }
  0x23   :  { %v148_v14 = vadd.f32 %v112_v51, %v2195_v63  ;;  %v347_v42 = vadd.f32 %v299_v48, %v275_v57  ;;  %v348_v43 = vadd.f32 %v300_v58, %v276_v36  ;;  %v172_v44 = vadd.f32 %v147_v59, %v146_v35 }
  0x24   :  { %v149_v62 = vadd.f32 %v113_v53, %v2196_v17  ;;  %v237_v6 = vrot.slane %v189_v61, 1  ;;  %v349_v7 = vadd.f32 %v301_v18, %v277_v20  ;;  %v350_v45 = vadd.f32 %v302_v21, %v278_v19  ;;  %v1621_v17 = vld [vmem:[%s2145_s1 + $0x1c] sm:$0x7] }
  0x25   :  { %v173_v41 = vadd.f32 %v148_v14, %v147_v59  ;;  %v238_v9 = vrot.slane %v190_v22, 1  ;;  %399 = vst [vmem:[#allocation1 + $0x20] ss:$2 sm:$0xff] %v347_v42  ;;  %v2197_v27 = vunpack.c.l.bf16 %v1448_v29  ;;  %v283_v47 = vadd.f32 %v235_v16, %v187_v54  ;;  %v1626_v16 = vld [vmem:[%s2145_s1 + $0x20] sm:$0x7] }
  0x26   :  { %v174_v46 = vadd.f32 %v149_v62, %v148_v14  ;;  %v307_v23 = vrot.slane %v187_v54, 2  ;;  %401 = vst [vmem:[#allocation1 + $0x21] ss:$2 sm:$0xff] %v348_v43  ;;  %v195_v28 = vadd.f32 %v171_v40, %v147_v59  ;;  %v284_v51 = vadd.f32 %v236_v34, %v188_v55  ;;  %v1631_v40 = vld [vmem:[%s2145_s1 + $0x24] sm:$0x7] }
  0x27   :  { %v150_v11 = vadd.f32 %v114_v15, %v2197_v27  ;;  %v308_v53 = vrot.slane %v188_v55, 2  ;;  %403 = vst [vmem:[#allocation1 + $0x30] ss:$2 sm:$0xff] %v349_v7  ;;  %v196_v4 = vadd.f32 %v172_v44, %v148_v14  ;;  %v285_v12 = vadd.f32 %v237_v6, %v189_v61  ;;  %v1616_v15 = vld [vmem:[%s2145_s1 + $0x18] sm:$0x7] }
  0x28   :  { %v309_v33 = vrot.slane %v189_v61, 2  ;;  %405 = vst [vmem:[#allocation1 + $0x31] ss:$2 sm:$0xff] %v350_v45  ;;  %v197_v37 = vadd.f32 %v173_v41, %v149_v62  ;;  %v286_v38 = vadd.f32 %v238_v9, %v190_v22  ;;  %v310_v39 = vrot.slane %v190_v22, 2  ;;  %v1636_v34 = vld [vmem:[%s2145_s1 + $0x28] sm:$0x7] }
  0x29   :  { %v198_v24 = vadd.f32 %v174_v46, %v150_v11  ;;  %v355_v35 = vadd.f32 %v307_v23, %v283_v47  ;;  %v243_v25 = vrot.slane %v195_v28, 1  ;;  %v356_v29 = vadd.f32 %v308_v53, %v284_v51  ;;  %v1641_v42 = vld [vmem:[%s2145_s1 + $0x30] sm:$0x7]  ;;  %v1648_v6 = vld [vmem:[%s2145_s1 + $0x34] sm:$0x7] }
  0x2a   :  { %v244_v50 = vrot.slane %v196_v4, 1  ;;  %v357_v5 = vadd.f32 %v309_v33, %v285_v12  ;;  %v245_v57 = vrot.slane %v197_v37, 1  ;;  %v358_v54 = vadd.f32 %v310_v39, %v286_v38  ;;  %2200 = vst [vmem:[#allocation9_spill] sm:$0xff] %v1641_v42  ;;  %v1653_v7 = vld [vmem:[%s2145_s1 + $0x38] sm:$0x7] }
  0x2b   :  { %v246_v59 = vrot.slane %v198_v24, 1  ;;  %v291_v55 = vadd.f32 %v243_v25, %v195_v28  ;;  %v315_v48 = vrot.slane %v195_v28, 2  ;;  %v316_v20 = vrot.slane %v196_v4, 2  ;;  %2202 = vst [vmem:[#allocation11_spill] sm:$0xff] %v1648_v6  ;;  %v1658_v45 = vld [vmem:[%s2145_s1 + $0x3c] sm:$0x7] }
  0x2c   :  { %v292_v61 = vadd.f32 %v244_v50, %v196_v4  ;;  %v293_v19 = vadd.f32 %v245_v57, %v197_v37  ;;  %v317_v18 = vrot.slane %v197_v37, 2  ;;  %v318_v63 = vrot.slane %v198_v24, 2  ;;  %2203 = vst [vmem:[#allocation12_spill] sm:$0xff] %v1653_v7  ;;  %v1663_v41 = vld [vmem:[%s2145_s1 + $0x40] sm:$0x7] }
  0x2d   :  { %v1609_v36 = vld.sshfl [vmem:[#allocation1 + $0x20] sm:$0xff pattern:$0x75316420]  ;;  %v294_v21 = vadd.f32 %v246_v59, %v198_v24  ;;  %v363_v14 = vadd.f32 %v315_v48, %v291_v55  ;;  %2204 = vst [vmem:[#allocation13_spill] sm:$0xff] %v1658_v45  ;;  %v1670_v27 = vld [vmem:[%s2145_s1 + $0x2c] sm:$0x7]  ;;  %v2171_v11 = vunpack.c.l.bf16 %v1616_v15  ;;  %v2164_v46 = vunpack.c.l.bf16 %v1621_v17 }
  0x2e   :  { %2198 = vst [vmem:[#allocation7_spill] sm:$0xff] %v1609_v36  ;;  %v364_v22 = vadd.f32 %v316_v20, %v292_v61  ;;  %v365_v62 = vadd.f32 %v317_v18, %v293_v19  ;;  %v1677_v47 = vld [vmem:[%s2145_s1 + $0x44] sm:$0x7]  ;;  %v482_v23 = vld [vmem:[%s2145_s1 + $0x60] sm:$0x7]  ;;  %v2170_v28 = vunpack.c.l.bf16 %v1626_v16  ;;  %v2169_v51 = vunpack.c.l.bf16 %v1631_v40 }
  0x2f   :  { %414 = vst [vmem:[#allocation1 + $0x20] ss:$2 sm:$0xff] %v355_v35  ;;  %v1611_v58 = vld.sshfl [vmem:[#allocation1 + $0x30] sm:$0xff pattern:$0x75316420]  ;;  %v366_v43 = vadd.f32 %v318_v63, %v294_v21  ;;  %v2168_v53 = vunpack.c.l.bf16 %v1636_v34  ;;  %v2162_v4 = vunpack.c.l.bf16 %v1641_v42  ;;  %v2163_v38 = vunpack.c.l.bf16 %v1648_v6 }
  0x30   :  { %2199 = vst [vmem:[#allocation8_spill] sm:$0xff] %v1611_v58  ;;  %v483_v12 = vld [vmem:[%s2145_s1 + $0x64] sm:$0x7]  ;;  %v484_v33 = vld [vmem:[%s2145_s1 + $0x68] sm:$0x7]  ;;  %v2165_v39 = vunpack.c.l.bf16 %v1653_v7  ;;  %v2166_v24 = vunpack.c.l.bf16 %v1658_v45  ;;  %v2167_v35 = vunpack.c.l.bf16 %v1663_v41  ;;  %v2173_v59 = vunpack.c.l.bf16 %v1677_v47 }
  0x31   :  { %415 = vst [vmem:[#allocation1 + $0x21] ss:$2 sm:$0xff] %v356_v29  ;;  %v485_v37 = vld [vmem:[%s2145_s1 + $0x6c] sm:$0x7]  ;;  %v486_v25 = vld [vmem:[%s2145_s1 + $0x70] sm:$0x7]  ;;  %v530_v55 = vunpack.c.l.bf16 %v482_v23  ;;  %v531_v19 = vunpack.c.l.bf16 %v483_v12  ;;  %v532_v18 = vunpack.c.l.bf16 %v484_v33  ;;  %v560_v63 = vadd.f32 %v2162_v4, %v2171_v11 }
  0x32   :  { %416 = vst [vmem:[#allocation1 + $0x30] ss:$2 sm:$0xff] %v357_v5  ;;  %v1705_v29 = vld [vmem:[%s2145_s1 + $0x74] sm:$0x7]  ;;  %v1710_v50 = vld [vmem:[%s2145_s1 + $0x78] sm:$0x7]  ;;  %v533_v21 = vunpack.c.l.bf16 %v485_v37  ;;  %v562_v23 = vadd.f32 %v2165_v39, %v2170_v28  ;;  %v563_v12 = vadd.f32 %v2166_v24, %v2169_v51  ;;  %v564_v33 = vadd.f32 %v2167_v35, %v2168_v53 }
  0x33   :  { %417 = vst [vmem:[#allocation1 + $0x31] ss:$2 sm:$0xff] %v358_v54  ;;  %v1715_v5 = vld [vmem:[%s2145_s1 + $0x7c] sm:$0x7]  ;;  %v1720_v57 = vld [vmem:[%s2145_s1 + $0x80] sm:$0x7]  ;;  %v2174_v54 = vunpack.c.l.bf16 %v1670_v27  ;;  %v534_v37 = vunpack.c.l.bf16 %v486_v25  ;;  %v535_v4 = vunpack.c.l.bf16 %v1705_v29  ;;  %v2212_v36 = vunpack.c.l.bf16 %v1710_v50 }
  0x34   :  { %2205 = vst [vmem:[#allocation14_spill] sm:$0xff] %v1663_v41  ;;  %v1727_v48 = vld [vmem:[%s2145_s1 + $0x84] sm:$0x7]  ;;  %v1732_v61 = vld [vmem:[%s2145_s1 + $0x88] sm:$0x7]  ;;  %v2215_v58 = vunpack.c.l.bf16 %v1720_v57  ;;  %vm1012_vm0 = vcmask 1045504  }
  0x35   :  { %2207 = vst [vmem:[#allocation16_spill] sm:$0xff] %v1670_v27  ;;  %v1737_v20 = vld [vmem:[%s2145_s1 + $0x8c] sm:$0x7]  ;;  %v1780_v39 = vld [vmem:[%s2145_s1 + $0x9c] sm:$0x7]  ;;  %v565_v29 = vadd.f32 %v2173_v59, %v2174_v54  ;;  %vm969_vm1 = vcmask 31744  }
  0x36   :  { %2208 = vst [vmem:[#allocation17_spill] sm:$0xff] %v1677_v47  ;;  %v1785_v24 = vld [vmem:[%s2145_s1 + $0xa0] sm:$0x7]  ;;  %v500_v25 = vld [vmem:[%s2145_s1 + $0xa8] sm:$0x7]  ;;  %v574_v41 = vadd.f32 %v2215_v58, %v532_v18  ;;  %vm999_vm2 = vcmask 97280  }
  0x37   :  { %2209 = vst [vmem:[#allocation18_spill] sm:$0xff] %v1710_v50  ;;  %v501_v28 = vld [vmem:[%s2145_s1 + $0xac] sm:$0x7]  ;;  %v502_v53 = vld [vmem:[%s2145_s1 + $0xb0] sm:$0x7]  ;;  %v548_v54 = vunpack.c.l.bf16 %v500_v25  ;;  %v2216_v25 = vunpack.c.l.bf16 %v1727_v48  ;;  %vm1196_vm4 = vcmask 1041409  }
  0x38   :  { %v1643_v44 = vld.sshfl [vmem:[#allocation1 + $0x20] sm:$0xff pattern:$0x75316420]  ;;  %2210 = vst [vmem:[#allocation19_spill] sm:$0xff] %v1715_v5  ;;  %v503_v51 = vld [vmem:[%s2145_s1 + $0xb4] sm:$0x7]  ;;  %v549_v50 = vunpack.c.l.bf16 %v501_v28  ;;  %v550_v45 = vunpack.c.l.bf16 %v502_v53  ;;  %v2222_v53 = vunpack.c.l.bf16 %v1780_v39 }
  0x39   :  { %2201 = vst [vmem:[#allocation10_spill] sm:$0xff] %v1643_v44  ;;  %v504_v11 = vld [vmem:[%s2145_s1 + $0xb8] sm:$0x7]  ;;  %v1820_v44 = vld [vmem:[%s2145_s1 + $0xa4] sm:$0x7]  ;;  %v575_v59 = vadd.f32 %v2216_v25, %v533_v21  ;;  %v551_v7 = vunpack.c.l.bf16 %v503_v51 }
  0x3a   :  { %426 = vst [vmem:[#allocation1 + $0x20] ss:$2 sm:$0xff] %v363_v14  ;;  %v1665_v9 = vld.sshfl [vmem:[#allocation1 + $0x30] sm:$0xff pattern:$0x75316420]  ;;  %v552_v6 = vunpack.c.l.bf16 %v504_v11 }
  0x3b   :  { %2206 = vst [vmem:[#allocation15_spill] sm:$0xff] %v1665_v9  ;;  %v1746_v14 = vld [vmem:[%s2145_s1 + $0x90] sm:$0x7]  ;;  %v572_v9 = vadd.f32 %v2212_v36, %v530_v55  ;;  %v2217_v36 = vunpack.c.l.bf16 %v1732_v61 }
  0x3c   :  { %427 = vst [vmem:[#allocation1 + $0x21] ss:$2 sm:$0xff] %v364_v22  ;;  %v1751_v22 = vld [vmem:[%s2145_s1 + $0x94] sm:$0x7]  ;;  %v2219_v18 = vunpack.c.l.bf16 %v1746_v14 }
  0x3d   :  { %428 = vst [vmem:[#allocation1 + $0x30] ss:$2 sm:$0xff] %v365_v62  ;;  %v1756_v62 = vld [vmem:[%s2145_s1 + $0x98] sm:$0x7]  ;;  %v576_v55 = vadd.f32 %v2217_v36, %v534_v37  ;;  %v604_v37 = vadd.f32 %v575_v59, %v574_v41  ;;  %v2220_v51 = vunpack.c.l.bf16 %v1751_v22 }
  0x3e   :  { %429 = vst [vmem:[#allocation1 + $0x31] ss:$2 sm:$0xff] %v366_v43  ;;  %v561_v43 = vadd.f32 %v2163_v38, %v2164_v46  ;;  %v596_v46 = vadd.f32 %v563_v12, %v562_v23  ;;  %v597_v38 = vadd.f32 %v564_v33, %v563_v12  ;;  %v584_v21 = vadd.f32 %v548_v54, %v2219_v18 }
  0x3f   :  { %2211 = vst [vmem:[#allocation20_spill] sm:$0xff] %v1732_v61  ;;  %v605_v28 = vadd.f32 %v576_v55, %v575_v59  ;;  %v585_v11 = vadd.f32 %v549_v50, %v2220_v51  ;;  %v1852_v50 = vadd.f32 %v604_v37, %v576_v55  ;;  %v21_v37 = vld [vmem:[%s2144_s0 + $0x8] sm:$0x7] }
  0x40   :  { %v594_v26 = vadd.f32 %v561_v43, %v560_v63  ;;  %v595_v35 = vadd.f32 %v562_v23, %v561_v43  ;;  %2213 = vst [vmem:[#allocation21_spill] sm:$0xff] %v1820_v44  ;;  %v505_v63 = vld [vmem:[%s2145_s1 + $0xbc] sm:$0x7]  ;;  %v2214_v43 = vunpack.c.l.bf16 %v1715_v5  ;;  %v620_v32 = vadd.f32 %v596_v46, %v564_v33 }
  0x41   :  { %v621_v13 = vadd.f32 %v597_v38, %v565_v29  ;;  %v547_v5 = vunpack.c.l.bf16 %v1820_v44  ;;  %v587_v38 = vadd.f32 %v551_v7, %v2222_v53 }
  0x42   :  { %v573_v47 = vadd.f32 %v2214_v43, %v531_v19  ;;  %v618_v42 = vadd.f32 %v594_v26, %v562_v23  ;;  %v619_v27 = vadd.f32 %v595_v35, %v563_v12  ;;  %v553_v19 = vunpack.c.l.bf16 %v505_v63 }
  0x43   :  { %v2218_v43 = vunpack.c.l.bf16 %v1737_v20  ;;  %v2221_v26 = vunpack.c.l.bf16 %v1756_v62  ;;  %v2223_v35 = vunpack.c.l.bf16 %v1785_v24  ;;  %v668_v33 = vrot.slane %v620_v32, 1 }
  0x44   :  { %v602_v25 = vadd.f32 %v573_v47, %v572_v9  ;;  %v603_v61 = vadd.f32 %v574_v41, %v573_v47  ;;  %v667_v12 = vrot.slane %v619_v27, 1  ;;  %v669_v54 = vrot.slane %v621_v13, 1 }
  0x45   :  { %v577_v58 = vadd.f32 %v2218_v43, %v535_v4  ;;  %v586_v46 = vadd.f32 %v550_v45, %v2221_v26  ;;  %v588_v23 = vadd.f32 %v552_v6, %v2223_v35  ;;  %v666_v4 = vrot.slane %v618_v42, 1 }
  0x46   :  { %v589_v9 = vadd.f32 %v553_v19, %v547_v5  ;;  %v1848_v47 = vadd.f32 %v602_v25, %v574_v41  ;;  %v1850_v29 = vadd.f32 %v603_v61, %v575_v59  ;;  %v610_v63 = vadd.f32 %v585_v11, %v584_v21  ;;  %v1863_v21 = vld.sshfl [vmem:[#allocation1 + $0x20] sm:$0xff pattern:$0x75316420] }
  0x47   :  { %v1854_v45 = vadd.f32 %v605_v28, %v577_v58  ;;  %v611_v7 = vadd.f32 %v586_v46, %v585_v11  ;;  %v612_v36 = vadd.f32 %v587_v38, %v586_v46  ;;  %v613_v43 = vadd.f32 %v588_v23, %v587_v38  ;;  %v19_v58 = vld [vmem:[%s2144_s0] sm:$0x7]  ;;  %v22_v28 = vld [vmem:[%s2144_s0 + $0xc] sm:$0x7]  ;;  %v23_v11 = vld [vmem:[%s2144_s0 + $0x10] sm:$0x7] }
  0x48   :  { %v714_v6 = vadd.f32 %v666_v4, %v618_v42  ;;  %v715_v18 = vadd.f32 %v667_v12, %v619_v27  ;;  %v716_v51 = vadd.f32 %v668_v33, %v620_v32  ;;  %v717_v26 = vadd.f32 %v669_v54, %v621_v13  ;;  %v1881_v4 = vld.sshfl [vmem:[#allocation1 + $0x30] sm:$0xff pattern:$0x75316420] }
  0x49   :  { %v738_v53 = vrot.slane %v618_v42, 2  ;;  %v739_v35 = vrot.slane %v619_v27, 2  ;;  %v740_v44 = vrot.slane %v620_v32, 2  ;;  %v741_v19 = vrot.slane %v621_v13, 2  ;;  %v20_v42 = vld [vmem:[%s2144_s0 + $0x4] sm:$0x7] }
  0x4a   :  { %v674_v41 = vrot.slane %v1848_v47, 1  ;;  %v675_v59 = vrot.slane %v1850_v29, 1  ;;  %v676_v61 = vrot.slane %v1852_v50, 1  ;;  %v677_v55 = vrot.slane %v1854_v45, 1  ;;  %v24_v54 = vld [vmem:[%s2144_s0 + $0x14] sm:$0x7] }
  0x4b   :  { %v1868_v32 = vadd.f32 %v610_v63, %v586_v46  ;;  %v1870_v13 = vadd.f32 %v611_v7, %v587_v38  ;;  %v786_v27 = vadd.f32 %v738_v53, %v714_v6  ;;  %v787_v25 = vadd.f32 %v739_v35, %v715_v18 }
  0x4c   :  { %v1883_v46 = vadd.f32 %v612_v36, %v588_v23  ;;  %v1885_v38 = vadd.f32 %v613_v43, %v589_v9  ;;  %v788_v12 = vadd.f32 %v740_v44, %v716_v51  ;;  %v789_v33 = vadd.f32 %v741_v19, %v717_v26 }
  0x4d   :  { %v722_v63 = vadd.f32 %v674_v41, %v1848_v47  ;;  %v723_v7 = vadd.f32 %v675_v59, %v1850_v29  ;;  %v724_v6 = vadd.f32 %v676_v61, %v1852_v50  ;;  %v725_v18 = vadd.f32 %v677_v55, %v1854_v45  ;;  %838 = vst [vmem:[#allocation1 + $0x20] ss:$2 sm:$0xff] %v786_v27 }
  0x4e   :  { %v746_v23 = vrot.slane %v1848_v47, 2  ;;  %v747_v9 = vrot.slane %v1850_v29, 2  ;;  %840 = vst [vmem:[#allocation1 + $0x21] ss:$2 sm:$0xff] %v787_v25  ;;  %v67_v44 = vunpack.c.l.bf16 %v19_v58  ;;  %v68_v36 = vunpack.c.l.bf16 %v20_v42 }
  0x4f   :  { %842 = vst [vmem:[#allocation1 + $0x30] ss:$2 sm:$0xff] %v788_v12  ;;  %v69_v43 = vunpack.c.l.bf16 %v21_v37  ;;  %v70_v51 = vunpack.c.l.bf16 %v22_v28  ;;  %v71_v26 = vunpack.c.l.bf16 %v23_v11  ;;  %v72_v53 = vunpack.c.l.bf16 %v24_v54 }
  0x50   :  { %v748_v35 = vrot.slane %v1852_v50, 2  ;;  %v749_v19 = vrot.slane %v1854_v45, 2  ;;  %844 = vst [vmem:[#allocation1 + $0x31] ss:$2 sm:$0xff] %v789_v33  ;;  %v2224_v41 = vunpack.c.l.bf16 %v1341_v0  ;;  %v2225_v47 = vunpack.c.l.bf16 %v1346_v1 }
  0x51   :  { %v2226_v29 = vunpack.c.l.bf16 %v1351_v2  ;;  %v2227_v58 = vunpack.c.l.bf16 %v1356_v3  ;;  %v2228_v27 = vunpack.c.l.bf16 %v1479_v49  ;;  %v2229_v50 = vunpack.c.l.bf16 %v1518_v8 }
  0x52   :  { %v115_v59 = vadd.f32 %v2224_v41, %v67_v44  ;;  %v116_v61 = vadd.f32 %v2225_v47, %v68_v36  ;;  %v682_v45 = vrot.slane %v1868_v32, 1  ;;  %v683_v0 = vrot.slane %v1870_v13, 1 }
  0x53   :  { %v117_v55 = vadd.f32 %v2226_v29, %v69_v43  ;;  %v118_v42 = vadd.f32 %v2227_v58, %v70_v51  ;;  %v119_v25 = vadd.f32 %v2228_v27, %v71_v26  ;;  %v120_v37 = vadd.f32 %v2229_v50, %v72_v53 }
  0x54   :  { %v794_v28 = vadd.f32 %v746_v23, %v722_v63  ;;  %v151_v11 = vadd.f32 %v116_v61, %v115_v59  ;;  %v795_v1 = vadd.f32 %v747_v9, %v723_v7  ;;  %v684_v54 = vrot.slane %v1883_v46, 1 }
  0x55   :  { %v152_v12 = vadd.f32 %v117_v55, %v116_v61  ;;  %v153_v33 = vadd.f32 %v118_v42, %v117_v55  ;;  %v154_v2 = vadd.f32 %v119_v25, %v118_v42  ;;  %v685_v3 = vrot.slane %v1885_v38, 1  ;;  %v1914_v43 = vld.sshfl [vmem:[#allocation1 + $0x20] sm:$0xff pattern:$0x75316420] }
  0x56   :  { %v796_v44 = vadd.f32 %v748_v35, %v724_v6  ;;  %v175_v49 = vadd.f32 %v151_v11, %v117_v55  ;;  %v797_v36 = vadd.f32 %v749_v19, %v725_v18  ;;  %v730_v53 = vadd.f32 %v682_v45, %v1868_v32  ;;  %853 = vst [vmem:[#allocation1 + $0x20] ss:$2 sm:$0xff] %v794_v28  ;;  %v459_v28 = vld [vmem:[%s2145_s1 + $0x4] sm:$0x7] }
  0x57   :  { %v176_v8 = vadd.f32 %v152_v12, %v118_v42  ;;  %v177_v51 = vadd.f32 %v153_v33, %v119_v25  ;;  %v178_v26 = vadd.f32 %v154_v2, %v120_v37  ;;  %v754_v63 = vrot.slane %v1868_v32, 2  ;;  %v1919_v41 = vld.sshfl [vmem:[#allocation1 + $0x30] sm:$0xff pattern:$0x75316420]  ;;  %854 = vst [vmem:[#allocation1 + $0x21] ss:$2 sm:$0xff] %v795_v1 }
  0x58   :  { %v223_v7 = vrot.slane %v175_v49, 1  ;;  %v295_v23 = vrot.slane %v175_v49, 2  ;;  %v731_v9 = vadd.f32 %v683_v0, %v1870_v13  ;;  %v732_v18 = vadd.f32 %v684_v54, %v1883_v46  ;;  %855 = vst [vmem:[#allocation1 + $0x30] ss:$2 sm:$0xff] %v796_v44 }
  0x59   :  { %v225_v6 = vrot.slane %v177_v51, 1  ;;  %v755_v35 = vrot.slane %v1870_v13, 2  ;;  %v226_v19 = vrot.slane %v178_v26, 1  ;;  %v297_v59 = vrot.slane %v177_v51, 2  ;;  %856 = vst [vmem:[#allocation1 + $0x31] ss:$2 sm:$0xff] %v797_v36 }
  0x5a   :  { %v756_v47 = vrot.slane %v1883_v46, 2  ;;  %v224_v61 = vrot.slane %v176_v8, 1  ;;  %v271_v29 = vadd.f32 %v223_v7, %v175_v49  ;;  %v733_v55 = vadd.f32 %v685_v3, %v1885_v38  ;;  %v458_v13 = vld [vmem:[%s2145_s1] sm:$0x7]  ;;  %v461_v3 = vld [vmem:[%s2145_s1 + $0xc] sm:$0x7] }
  0x5b   :  { %v273_v32 = vadd.f32 %v225_v6, %v177_v51  ;;  %v757_v58 = vrot.slane %v1885_v38, 2  ;;  %v802_v42 = vadd.f32 %v754_v63, %v730_v53  ;;  %v296_v25 = vrot.slane %v176_v8, 2  ;;  %v460_v38 = vld [vmem:[%s2145_s1 + $0x8] sm:$0x7] }
  0x5c   :  { %v272_v27 = vadd.f32 %v224_v61, %v176_v8  ;;  %v343_v50 = vadd.f32 %v295_v23, %v271_v29  ;;  %v803_v45 = vadd.f32 %v755_v35, %v731_v9  ;;  %v274_v0 = vadd.f32 %v226_v19, %v178_v26 }
  0x5d   :  { %v345_v37 = vadd.f32 %v297_v59, %v273_v32  ;;  %v298_v46 = vrot.slane %v178_v26, 2  ;;  %v804_v11 = vadd.f32 %v756_v47, %v732_v18  ;;  %v231_v1 = vrot.slane %v1546_v52, 1  ;;  %v462_v26 = vld [vmem:[%s2145_s1 + $0x10] sm:$0x7] }
  0x5e   :  { %391 = vst [vmem:[#allocation1] ss:$2 sm:$0xff] %v343_v50  ;;  %v805_v12 = vadd.f32 %v757_v58, %v733_v55  ;;  %v859_v33 = vld.sshfl [vmem:[#allocation1 + $0x20] sm:$0xff pattern:$0x75316420]  ;;  %v232_v2 = vrot.slane %v1548_v30, 1  ;;  %v344_v49 = vadd.f32 %v296_v25, %v272_v27  ;;  %v506_v53 = vunpack.c.l.bf16 %v458_v13 }
  0x5f   :  { %395 = vst [vmem:[#allocation1 + $0x10] ss:$2 sm:$0xff] %v345_v37  ;;  %v233_v54 = vrot.slane %v1550_v31, 1  ;;  %v891_v44 = vpack.c.bf16 %v859_v33, %v859_v33  ;;  %v234_v36 = vrot.slane %v1552_v60, 1  ;;  %v346_v51 = vadd.f32 %v298_v46, %v274_v0  ;;  %v476_v0 = vld [vmem:[%s2145_s1 + $0x48] sm:$0x7] }
  0x60   :  { %865 = vst [vmem:[#allocation1 + $0x20] ss:$2 sm:$0xff] %v802_v42  ;;  %v860_v8 = vld.sshfl [vmem:[#allocation1 + $0x30] sm:$0xff pattern:$0x75316420]  ;;  %v507_v63 = vunpack.c.l.bf16 %v459_v28  ;;  %v241_v9 = vrot.slane %v1560_v10, 1  ;;  %v508_v6 = vunpack.c.l.bf16 %v460_v38  ;;  %v509_v18 = vunpack.c.l.bf16 %v461_v3 }
  0x61   :  { %866 = vst [vmem:[#allocation1 + $0x21] ss:$2 sm:$0xff] %v803_v45  ;;  %v892_v7 = vpack.c.bf16 %v860_v8, %v860_v8  ;;  %v945_v23 = vunpack.c.l.b16 %v891_v44  ;;  %v279_v35 = vadd.f32 %v231_v1, %v1546_v52  ;;  %v887_v59 = vpack.c.bf16 %v1914_v43, %v1914_v43  ;;  %v463_v43 = vld [vmem:[%s2145_s1 + $0x14] sm:$0x7] }
  0x62   :  { %867 = vst [vmem:[#allocation1 + $0x30] ss:$2 sm:$0xff] %v804_v11  ;;  %v888_v47 = vpack.c.bf16 %v1919_v41, %v1919_v41  ;;  %v303_v32 = vrot.slane %v1546_v52, 2  ;;  %v281_v61 = vadd.f32 %v233_v54, %v1550_v31  ;;  %v510_v29 = vunpack.c.l.bf16 %v462_v26  ;;  %v479_v11 = vld [vmem:[%s2145_s1 + $0x54] sm:$0x7] }
  0x63   :  { %868 = vst [vmem:[#allocation1 + $0x31] ss:$2 sm:$0xff] %v805_v12  ;;  %v946_v19 = vunpack.c.l.b16 %v892_v7  ;;  %v280_v55 = vadd.f32 %v232_v2, %v1548_v30  ;;  %v304_v58 = vrot.slane %v1548_v30, 2  ;;  %v305_v42 = vrot.slane %v1550_v31, 2 }
  0x64   :  { %393 = vst [vmem:[#allocation1 + $0x1] ss:$2 sm:$0xff] %v344_v49  ;;  %v2230_v27 = vunpack.c.l.bf16 %v1616_v15  ;;  %v2231_v52 = vunpack.c.l.bf16 %v1621_v17  ;;  %v242_v37 = vrot.slane %v1562_v56, 1  ;;  %v282_v13 = vadd.f32 %v234_v36, %v1552_v60  ;;  %v477_v15 = vld [vmem:[%s2145_s1 + $0x4c] sm:$0x7]  ;;  %v2236_v49 = vld [vmem:[#allocation6_spill] sm:$0xff] }
  0x65   :  { %397 = vst [vmem:[#allocation1 + $0x11] ss:$2 sm:$0xff] %v346_v51  ;;  %v954_v50 = vpack.c.b16 %v946_v19, %v945_v23  ;;  %v306_v30 = vrot.slane %v1552_v60, 2  ;;  %v2232_v45 = vunpack.c.l.bf16 %v1626_v16  ;;  %v2233_v17 = vunpack.c.l.bf16 %v1631_v40  ;;  %v478_v16 = vld [vmem:[%s2145_s1 + $0x50] sm:$0x7] }
  0x66   :  { %v554_v41 = vadd.f32 %v2230_v27, %v506_v53  ;;  %v555_v25 = vadd.f32 %v2231_v52, %v507_v63  ;;  %v941_v28 = vunpack.c.l.b16 %v887_v59  ;;  %v942_v38 = vunpack.c.l.b16 %v888_v47  ;;  %v2235_v40 = vld [vmem:[#allocation5_spill] sm:$0xff]  ;;  %v480_v51 = vld [vmem:[%s2145_s1 + $0x58] sm:$0x7] }
  0x67   :  { %v556_v31 = vadd.f32 %v2232_v45, %v508_v6  ;;  %v557_v46 = vadd.f32 %v2233_v17, %v509_v18  ;;  %963 = vrot.lane.b32.xlu0 %v954_v50, %s1310_s16  ;;  %v351_v60 = vadd.f32 %v303_v32, %v279_v35  ;;  %v511_v1 = vunpack.c.l.bf16 %v463_v43  ;;  %v2239_v52 = vld [vmem:[#allocation9_spill] sm:$0xff]  ;;  %v2243_v17 = vld [vmem:[#allocation12_spill] sm:$0xff] }
  0x68   :  { %v2234_v12 = vunpack.c.l.bf16 %v1636_v34  ;;  %v239_v2 = vrot.slane %v2235_v40, 1  ;;  %v352_v54 = vadd.f32 %v304_v58, %v280_v55  ;;  %v289_v3 = vadd.f32 %v241_v9, %v1560_v10  ;;  %v2237_v9 = vld [vmem:[#allocation16_spill] sm:$0xff] }
  0x69   :  { %v590_v44 = vadd.f32 %v555_v25, %v554_v41  ;;  %v240_v36 = vrot.slane %v2236_v49, 1  ;;  %v353_v8 = vadd.f32 %v305_v42, %v281_v61  ;;  %v524_v26 = vunpack.c.l.bf16 %v476_v0  ;;  %v481_v41 = vld [vmem:[%s2145_s1 + $0x5c] sm:$0x7] }
  0x6a   :  { %v558_v33 = vadd.f32 %v2234_v12, %v510_v29  ;;  %v525_v53 = vunpack.c.l.bf16 %v477_v15  ;;  %v591_v63 = vadd.f32 %v556_v31, %v555_v25  ;;  %v354_v7 = vadd.f32 %v306_v30, %v282_v13  ;;  %v2241_v13 = vld [vmem:[#allocation11_spill] sm:$0xff] }
  0x6b   :  { %v1991_v23 = vld.sshfl [vmem:[#allocation1] sm:$0xff pattern:$0x75316420]  ;;  %v526_v34 = vunpack.c.l.bf16 %v478_v16  ;;  %v527_v6 = vunpack.c.l.bf16 %v479_v11  ;;  %v592_v18 = vadd.f32 %v557_v46, %v556_v31  ;;  %v952_v35 = vpack.c.b16 %v942_v38, %v941_v28 }
  0x6c   :  { %v1993_v19 = vld.sshfl [vmem:[#allocation1 + $0x10] sm:$0xff pattern:$0x75316420]  ;;  %410 = vst [vmem:[#allocation1] ss:$2 sm:$0xff] %v351_v60  ;;  %v2238_v59 = vunpack.c.l.bf16 %v2237_v9  ;;  %v593_v32 = vadd.f32 %v558_v33, %v557_v46  ;;  %v287_v61 = vadd.f32 %v239_v2, %v2235_v40  ;;  %v311_v29 = vrot.slane %v2235_v40, 2 }
  0x6d   :  { %411 = vst [vmem:[#allocation1 + $0x1] ss:$2 sm:$0xff] %v352_v54  ;;  %v528_v55 = vunpack.c.l.bf16 %v480_v51  ;;  %v614_v58 = vadd.f32 %v590_v44, %v556_v31  ;;  %v288_v42 = vadd.f32 %v240_v36, %v2236_v49  ;;  %v312_v43 = vrot.slane %v2236_v49, 2  ;;  %v2245_v60 = vld [vmem:[#allocation13_spill] sm:$0xff]  ;;  %v2247_v2 = vld [vmem:[#allocation14_spill] sm:$0xff] }
  0x6e   :  { %v559_v47 = vadd.f32 %v2238_v59, %v511_v1  ;;  %412 = vst [vmem:[#allocation1 + $0x10] ss:$2 sm:$0xff] %v353_v8  ;;  %v313_v27 = vrot.slane %v1560_v10, 2  ;;  %v2240_v25 = vunpack.c.l.bf16 %v2239_v52  ;;  %v2242_v30 = vunpack.c.l.bf16 %v2241_v13 }
  0x6f   :  { %v615_v0 = vadd.f32 %v591_v63, %v557_v46  ;;  %413 = vst [vmem:[#allocation1 + $0x11] ss:$2 sm:$0xff] %v354_v7  ;;  %v290_v31 = vadd.f32 %v242_v37, %v1562_v56  ;;  %v314_v15 = vrot.slane %v1562_v56, 2  ;;  %v2244_v28 = vunpack.c.l.bf16 %v2243_v17  ;;  %959 = vrot.lane.b32.xlu0 %v952_v35, %s1310_s16  ;;  %v2249_v7 = vld [vmem:[#allocation17_spill] sm:$0xff] }
  0x70   :  { %v566_v50 = vadd.f32 %v524_v26, %v2240_v25  ;;  %v567_v45 = vadd.f32 %v525_v53, %v2242_v30  ;;  %v616_v10 = vadd.f32 %v592_v18, %v558_v33  ;;  %v2246_v16 = vunpack.c.l.bf16 %v2245_v60  ;;  %v2261_v60 = vld [vmem:[#allocation20_spill] sm:$0xff] }
  0x71   :  { %v568_v38 = vadd.f32 %v526_v34, %v2244_v28  ;;  %v617_v1 = vadd.f32 %v593_v32, %v559_v47  ;;  %v359_v12 = vadd.f32 %v311_v29, %v287_v61  ;;  %v529_v40 = vunpack.c.l.bf16 %v481_v41  ;;  %v2251_v47 = vld [vmem:[#allocation18_spill] sm:$0xff] }
  0x72   :  { %v569_v11 = vadd.f32 %v527_v6, %v2246_v16  ;;  %v2248_v54 = vunpack.c.l.bf16 %v2247_v2  ;;  %v360_v44 = vadd.f32 %v312_v43, %v288_v42  ;;  %v662_v49 = vrot.slane %v614_v58, 1  ;;  %v2254_v43 = vld [vmem:[#allocation19_spill] sm:$0xff] }
  0x73   :  { %v598_v37 = vadd.f32 %v567_v45, %v566_v50  ;;  %v361_v36 = vadd.f32 %v313_v27, %v289_v3  ;;  %v663_v56 = vrot.slane %v615_v0, 1  ;;  %v599_v8 = vadd.f32 %v568_v38, %v567_v45 }
  0x74   :  { %v570_v46 = vadd.f32 %v528_v55, %v2248_v54  ;;  %v664_v51 = vrot.slane %v616_v10, 1  ;;  %v362_v26 = vadd.f32 %v314_v15, %v290_v31  ;;  %v2018_v33 = vld.sshfl [vmem:[#allocation1] sm:$0xff pattern:$0x75316420]  ;;  %v600_v53 = vadd.f32 %v569_v11, %v568_v38 }
  0x75   :  { %v665_v63 = vrot.slane %v617_v1, 1  ;;  %422 = vst [vmem:[#allocation1] ss:$2 sm:$0xff] %v359_v12  ;;  %v2250_v34 = vunpack.c.l.bf16 %v2249_v7  ;;  %v710_v9 = vadd.f32 %v662_v49, %v614_v58  ;;  %v734_v59 = vrot.slane %v614_v58, 2 }
  0x76   :  { %v601_v18 = vadd.f32 %v570_v46, %v569_v11  ;;  %v2022_v35 = vld.sshfl [vmem:[#allocation1 + $0x10] sm:$0xff pattern:$0x75316420]  ;;  %423 = vst [vmem:[#allocation1 + $0x1] ss:$2 sm:$0xff] %v360_v44  ;;  %v2252_v3 = vunpack.c.l.bf16 %v2251_v47  ;;  %v2253_v32 = vunpack.c.l.bf16 %v1746_v14  ;;  %v622_v29 = vadd.f32 %v598_v37, %v568_v38 }
  0x77   :  { %v571_v6 = vadd.f32 %v529_v40, %v2250_v34  ;;  %424 = vst [vmem:[#allocation1 + $0x10] ss:$2 sm:$0xff] %v361_v36  ;;  %v711_v55 = vadd.f32 %v663_v56, %v615_v0  ;;  %v735_v42 = vrot.slane %v615_v0, 2  ;;  %v2255_v27 = vunpack.c.l.bf16 %v2254_v43 }
  0x78   :  { %v578_v61 = vadd.f32 %v2253_v32, %v2252_v3  ;;  %v2256_v41 = vunpack.c.l.bf16 %v1751_v22  ;;  %v623_v25 = vadd.f32 %v599_v8, %v569_v11  ;;  %v712_v50 = vadd.f32 %v664_v51, %v616_v10  ;;  %425 = vst [vmem:[#allocation1 + $0x11] ss:$2 sm:$0xff] %v362_v26 }
  0x79   :  { %v736_v13 = vrot.slane %v616_v10, 2  ;;  %v2257_v58 = vunpack.c.l.bf16 %v1720_v57  ;;  %v2258_v30 = vunpack.c.l.bf16 %v1756_v62  ;;  %v624_v14 = vadd.f32 %v600_v53, %v570_v46 }
  0x7a   :  { %v579_v52 = vadd.f32 %v2256_v41, %v2255_v27  ;;  %v713_v31 = vadd.f32 %v665_v63, %v617_v1  ;;  %v737_v15 = vrot.slane %v617_v1, 2  ;;  %v2259_v17 = vunpack.c.l.bf16 %v1727_v48 }
  0x7b   :  { %v580_v45 = vadd.f32 %v2258_v30, %v2257_v58  ;;  %v2260_v0 = vunpack.c.l.bf16 %v1780_v39  ;;  %v625_v38 = vadd.f32 %v601_v18, %v571_v6  ;;  %v782_v22 = vadd.f32 %v734_v59, %v710_v9 }
  0x7c   :  { %v2262_v16 = vunpack.c.l.bf16 %v2261_v60  ;;  %v2263_v10 = vunpack.c.l.bf16 %v1785_v24  ;;  %v670_v12 = vrot.slane %v622_v29, 1  ;;  %v783_v57 = vadd.f32 %v735_v42, %v711_v55 }
  0x7d   :  { %v581_v28 = vadd.f32 %v2260_v0, %v2259_v17  ;;  %v606_v40 = vadd.f32 %v579_v52, %v578_v61  ;;  %v671_v62 = vrot.slane %v623_v25, 1  ;;  %v784_v2 = vadd.f32 %v736_v13, %v712_v50  ;;  %v2044_v46 = vld.sshfl [vmem:[#allocation1] sm:$0xff pattern:$0x75316420] }
  0x7e   :  { %v582_v11 = vadd.f32 %v2263_v10, %v2262_v16  ;;  %v607_v54 = vadd.f32 %v580_v45, %v579_v52  ;;  %v672_v1 = vrot.slane %v624_v14, 1  ;;  %v785_v48 = vadd.f32 %v737_v15, %v713_v31  ;;  %830 = vst [vmem:[#allocation1] ss:$2 sm:$0xff] %v782_v22  ;;  %v871_v13 = vld.sshfl [vmem:[#allocation1 + $0x20] sm:$0xff pattern:$0x75316420] }
  0x7f   :  { %v608_v44 = vadd.f32 %v581_v28, %v580_v45  ;;  %v673_v39 = vrot.slane %v625_v38, 1  ;;  %v2264_v49 = vunpack.c.l.bf16 %v1737_v20  ;;  %v2050_v56 = vld.sshfl [vmem:[#allocation1 + $0x10] sm:$0xff pattern:$0x75316420]  ;;  %v718_v8 = vadd.f32 %v670_v12, %v622_v29  ;;  %832 = vst [vmem:[#allocation1 + $0x1] ss:$2 sm:$0xff] %v783_v57 }
  0x80   :  { %v609_v24 = vadd.f32 %v582_v11, %v581_v28  ;;  %v742_v51 = vrot.slane %v622_v29, 2  ;;  %v630_v26 = vadd.f32 %v606_v40, %v580_v45  ;;  %v719_v53 = vadd.f32 %v671_v62, %v623_v25  ;;  %834 = vst [vmem:[#allocation1 + $0x10] ss:$2 sm:$0xff] %v784_v2  ;;  %v872_v45 = vld.sshfl [vmem:[#allocation1 + $0x30] sm:$0xff pattern:$0x75316420] }
  0x81   :  { %v583_v36 = vadd.f32 %v547_v5, %v2264_v49  ;;  %v743_v63 = vrot.slane %v623_v25, 2  ;;  %v631_v7 = vadd.f32 %v607_v54, %v581_v28  ;;  %v720_v34 = vadd.f32 %v672_v1, %v624_v14  ;;  %836 = vst [vmem:[#allocation1 + $0x11] ss:$2 sm:$0xff] %v785_v48  ;;  %v1218_v0 = vld [vmem:[%s2146_s2] sm:$0xf] }
  0x82   :  { %v744_v6 = vrot.slane %v624_v14, 2  ;;  %v632_v18 = vadd.f32 %v608_v44, %v582_v11  ;;  %v721_v9 = vadd.f32 %v673_v39, %v625_v38  ;;  %v745_v20 = vrot.slane %v625_v38, 2  ;;  %v1226_v28 = vld [vmem:[%s2146_s2] sm:$0x30] }
  0x83   :  { %v633_v59 = vadd.f32 %v609_v24, %v583_v36  ;;  %v790_v47 = vadd.f32 %v742_v51, %v718_v8  ;;  %v678_v5 = vrot.slane %v630_v26, 1  ;;  %v791_v3 = vadd.f32 %v743_v63, %v719_v53 }
  0x84   :  { %v679_v32 = vrot.slane %v631_v7, 1  ;;  %v792_v61 = vadd.f32 %v744_v6, %v720_v34  ;;  %v680_v55 = vrot.slane %v632_v18, 1  ;;  %v793_v29 = vadd.f32 %v745_v20, %v721_v9  ;;  %v2267_v20 = vld [vmem:[#allocation15_spill] sm:$0xff] }
  0x85   :  { %v681_v43 = vrot.slane %v633_v59, 1  ;;  %v726_v27 = vadd.f32 %v678_v5, %v630_v26  ;;  %v750_v41 = vrot.slane %v630_v26, 2  ;;  %v751_v50 = vrot.slane %v631_v7, 2 }
  0x86   :  { %v845_v42 = vld.sshfl [vmem:[#allocation1] sm:$0xff pattern:$0x75316420]  ;;  %v727_v25 = vadd.f32 %v679_v32, %v631_v7  ;;  %v728_v58 = vadd.f32 %v680_v55, %v632_v18  ;;  %v752_v30 = vrot.slane %v632_v18, 2  ;;  %v895_v14 = vpack.c.bf16 %v871_v13, %v871_v13  ;;  %v2266_v18 = vld [vmem:[#allocation10_spill] sm:$0xff] }
  0x87   :  { %849 = vst [vmem:[#allocation1] ss:$2 sm:$0xff] %v790_v47  ;;  %v729_v31 = vadd.f32 %v681_v43, %v633_v59  ;;  %v753_v15 = vrot.slane %v633_v59, 2  ;;  %v896_v17 = vpack.c.bf16 %v872_v45, %v872_v45  ;;  %v798_v38 = vadd.f32 %v750_v41, %v726_v27  ;;  %v2268_v55 = vld [vmem:[#allocation7_spill] sm:$0xff] }
  0x88   :  { %v846_v52 = vld.sshfl [vmem:[#allocation1 + $0x10] sm:$0xff pattern:$0x75316420]  ;;  %850 = vst [vmem:[#allocation1 + $0x1] ss:$2 sm:$0xff] %v791_v3  ;;  %v949_v22 = vunpack.c.l.b16 %v895_v14  ;;  %v1219_v60 = vor.u32 %v1226_v28, %v1218_v0  ;;  %v799_v16 = vadd.f32 %v751_v50, %v727_v25  ;;  %v800_v11 = vadd.f32 %v752_v30, %v728_v58 }
  0x89   :  { %851 = vst [vmem:[#allocation1 + $0x10] ss:$2 sm:$0xff] %v792_v61  ;;  %v950_v10 = vunpack.c.l.b16 %v896_v17  ;;  %v801_v57 = vadd.f32 %v753_v15, %v729_v31  ;;  %v885_v26 = vpack.c.bf16 %v845_v42, %v845_v42  ;;  %v886_v53 = vpack.c.bf16 %v846_v52, %v846_v52  ;;  %v2269_v42 = vld [vmem:[#allocation8_spill] sm:$0xff] }
  0x8a   :  { %852 = vst [vmem:[#allocation1 + $0x11] ss:$2 sm:$0xff] %v793_v29  ;;  %v1014_v12 = vsel %vm1012_vm0, %v1219_v60, 0  ;;  %v452_v9 = vpack.c.bf16 %v2266_v18, %v2266_v18  ;;  %v453_v59 = vpack.c.bf16 %v2267_v20, %v2267_v20  ;;  %v448_v29 = vpack.c.bf16 %v2268_v55, %v2268_v55 }
  0x8b   :  { %v956_v62 = vpack.c.b16 %v950_v10, %v949_v22  ;;  %1228 = vmatpush.bf16.msra.mxu2 %v1014_v12  ;;  %1227 = vmatpush.bf16.msra.mxu1 %v1014_v12  ;;  %v939_v7 = vunpack.c.l.b16 %v885_v26  ;;  %v940_v34 = vunpack.c.l.b16 %v886_v53  ;;  %v449_v43 = vpack.c.bf16 %v2269_v42, %v2269_v42 }
  0x8c   :  { %1023 = vmatpush.bf16.msra.mxu0 %v1014_v12  ;;  %1229 = vmatpush.bf16.msra.mxu3 %v1014_v12  ;;  %v915_v47 = vunpack.c.l.b16 %v452_v9  ;;  %v916_v5 = vunpack.c.l.b16 %v453_v59  ;;  %v911_v27 = vunpack.c.l.b16 %v448_v29  ;;  %v456_v58 = vpack.c.bf16 %v1863_v21, %v1863_v21 }
  0x8d   :  { %967 = vrot.lane.b32.xlu2 %v956_v62, %s1310_s16  ;;  %v951_v6 = vpack.c.b16 %v940_v34, %v939_v7  ;;  %v912_v41 = vunpack.c.l.b16 %v449_v43  ;;  %v457_v30 = vpack.c.bf16 %v1881_v4, %v1881_v4  ;;  %v450_v17 = vpack.c.bf16 %v2018_v33, %v2018_v33 }
  0x8e   :  { %v924_v3 = vpack.c.b16 %v916_v5, %v915_v47  ;;  %v919_v45 = vunpack.c.l.b16 %v456_v58  ;;  %v451_v0 = vpack.c.bf16 %v2022_v35, %v2022_v35  ;;  %v454_v4 = vpack.c.bf16 %v2044_v46, %v2044_v46 }
  0x8f   :  { %v857_v40 = vld.sshfl [vmem:[#allocation1] sm:$0xff pattern:$0x75316420]  ;;  %v922_v25 = vpack.c.b16 %v912_v41, %v911_v27  ;;  %v920_v14 = vunpack.c.l.b16 %v457_v30  ;;  %v913_v28 = vunpack.c.l.b16 %v450_v17  ;;  %v446_v33 = vpack.c.bf16 %v1991_v23, %v1991_v23 }
  0x90   :  { %861 = vst [vmem:[#allocation1] ss:$2 sm:$0xff] %v798_v38  ;;  %v889_v2 = vpack.c.bf16 %v857_v40, %v857_v40  ;;  %v914_v38 = vunpack.c.l.b16 %v451_v0  ;;  %v917_v10 = vunpack.c.l.b16 %v454_v4  ;;  %v447_v35 = vpack.c.bf16 %v1993_v19, %v1993_v19  ;;  %v1233_v23 = vld [vmem:[%s2147_s3] ss:$0 sm:$0xff]  ;;  %s1312_s3 = smov [#allocation2]  }
  0x91   :  { %v858_v54 = vld.sshfl [vmem:[#allocation1 + $0x10] sm:$0xff pattern:$0x75316420]  ;;  %862 = vst [vmem:[#allocation1 + $0x1] ss:$2 sm:$0xff] %v799_v16  ;;  %v926_v31 = vpack.c.b16 %v920_v14, %v919_v45  ;;  %v455_v16 = vpack.c.bf16 %v2050_v56, %v2050_v56  ;;  %v909_v40 = vunpack.c.l.b16 %v446_v33  ;;  %s1205_s28 = sshll.u32 %s1312_s3, 4  ;;  %s1206_s28 = int_to_ptr.vmem [resolvable:$true] %s1205_s28 }
  0x92   :  { %863 = vst [vmem:[#allocation1 + $0x10] ss:$2 sm:$0xff] %v800_v11  ;;  %v890_v1 = vpack.c.bf16 %v858_v54, %v858_v54  ;;  %v943_v48 = vunpack.c.l.b16 %v889_v2  ;;  %v923_v21 = vpack.c.b16 %v914_v38, %v913_v28  ;;  %v910_v62 = vunpack.c.l.b16 %v447_v35 }
  0x93   :  { %864 = vst [vmem:[#allocation1 + $0x11] ss:$2 sm:$0xff] %v801_v57  ;;  %v918_v11 = vunpack.c.l.b16 %v455_v16 }
  0x94   :  { %v944_v44 = vunpack.c.l.b16 %v890_v1  ;;  %v921_v46 = vpack.c.b16 %v910_v62, %v909_v40 }
  0x95   :  { %v925_v12 = vpack.c.b16 %v918_v11, %v917_v10 }
  0x96   :  { %v953_v39 = vpack.c.b16 %v944_v44, %v943_v48 }
  0x98   :  { %v869_v49 = vld.sshfl [vmem:[#allocation1] sm:$0xff pattern:$0x75316420]  ;;  %961 = vrot.lane.b32.xlu2 %v953_v39, %s1310_s16 }
  0x99   :  { %v893_v37 = vpack.c.bf16 %v869_v49, %v869_v49 }
  0x9a   :  { %v870_v36 = vld.sshfl [vmem:[#allocation1 + $0x10] sm:$0xff pattern:$0x75316420] }
  0x9b   :  { %v894_v24 = vpack.c.bf16 %v870_v36, %v870_v36  ;;  %v947_v8 = vunpack.c.l.b16 %v893_v37 }
  0x9d   :  { %v948_v51 = vunpack.c.l.b16 %v894_v24 }
  0x9f   :  { %v955_v63 = vpack.c.b16 %v948_v51, %v947_v8 }
  0xa1   :  { %965 = vrot.lane.b32.xlu1 %v955_v63, %s1310_s16 }
  0xa9   :  { %957 = vrot.lane.b32.xlu1 %v951_v6, %s1310_s16 }
  0xd9   :  { %v964_v32 = vpop.permute.xlu0 %963 }
  0xda   :  { %v981_v61 = vsel %vm969_vm1, %v924_v3, %v964_v32 }
  0xdb   :  { %1223 = vmatmul.msk.bf16.vlgmr.msra.gmra.mxu2 %vm999_vm2, %v981_v61 }
  0xe1   :  { %v960_v52 = vpop.permute.xlu0 %959 }
  0xe2   :  { %v975_v50 = vsel %vm969_vm1, %v922_v25, %v960_v52 }
  0xe3   :  { %1221 = vmatmul.msk.bf16.vlgmr.msra.gmra.mxu1 %vm999_vm2, %v975_v50 }
  0xe7   :  { %v968_v13 = vpop.permute.xlu2 %967 }
  0xe8   :  { %v987_v15 = vsel %vm969_vm1, %v926_v31, %v968_v13 }
  0xe9   :  { %1225 = vmatmul.msk.bf16.vlgmr.msra.gmra.mxu3 %vm999_vm2, %v987_v15 }
  0xf2   :  { %v962_v22 = vpop.permute.xlu2 %961 }
  0xf3   :  { %v978_v60 = vsel %vm969_vm1, %v923_v21, %v962_v22 }
  0xf4   :  { %1222 = vmatmul.msk.bf16.gmra.mxu1 %vm999_vm2, %v978_v60 }
 0x113   :  { %v966_v57 = vpop.permute.xlu1 %965 }
 0x114   :  { %v984_v2 = vsel %vm969_vm1, %v925_v12, %v966_v57 }
 0x115   :  { %1224 = vmatmul.msk.bf16.gmra.mxu2 %vm999_vm2, %v984_v2 }
 0x11b   :  { %v958_v54 = vpop.permute.xlu1 %957 }
 0x11c   :  { %v972_v56 = vsel %vm969_vm1, %v921_v46, %v958_v54 }
 0x11d   :  { %1220 = vmatmul.msk.bf16.vlgmr.msra.gmra.mxu0 %vm999_vm2, %v972_v56 }
 0x15e   :  { %v1040_v44 = vpop.f32.mrf.mxu2 }
 0x15f   :  { %v1041_v39 = vadd.f32 %v1233_v23, %v1040_v44 }
 0x160   :  { %v1030_v1 = vpop.f32.mrf.mxu1 }
 0x161   :  { %v1031_v63 = vadd.f32 %v1233_v23, %v1030_v1 }
 0x166   :  { %v1042_v49 = vpop.f32.mrf.mxu2 }
 0x167   :  { %v1043_v37 = vadd.f32 %v1233_v23, %v1042_v49 }
 0x168   :  { %v1032_v19 = vpop.f32.mrf.mxu1 }
 0x169   :  { %v1033_v48 = vadd.f32 %v1233_v23, %v1032_v19 }
 0x16b   :  { %1061 = vmax.xlane.f32.xlu2 %v1033_v48 }
 0x16c   :  { %v1050_v36 = vpop.f32.mrf.mxu3 }
 0x16d   :  { %v2101_v24 = vadd.f32 %v1233_v23, %v1050_v36 }
 0x171   :  { %v1035_v34 = vpop.f32.mrf.mxu1 }
 0x172   :  { %v1036_v18 = vadd.f32 %v1233_v23, %v1035_v34 }
 0x173   :  { %1067 = vmax.xlane.f32.xlu2 %v1041_v39 }
 0x174   :  { %v1052_v5 = vpop.f32.mrf.mxu3 }
 0x175   :  { %v2107_v3 = vadd.f32 %v1233_v23, %v1052_v5 }
 0x179   :  { %v1037_v20 = vpop.f32.mrf.mxu1 }
 0x17a   :  { %v2104_v47 = vadd.f32 %v1233_v23, %v1037_v20 }
 0x17b   :  { %1069 = vmax.xlane.f32.xlu2 %v1043_v37 }
 0x183   :  { %1075 = vmax.xlane.f32.xlu2 %v2101_v24 }
 0x198   :  { %v1045_v26 = vpop.f32.mrf.mxu2 }
 0x199   :  { %v1046_v59 = vadd.f32 %v1233_v23, %v1045_v26 }
 0x19a   :  { %v1025_v8 = vpop.f32.mrf.mxu0 }
 0x19b   :  { %v1026_v51 = vadd.f32 %v1233_v23, %v1025_v8 }
 0x19d   :  { %1055 = vmax.xlane.f32.xlu0 %v1026_v51 }
 0x1a0   :  { %v1047_v6 = vpop.f32.mrf.mxu2 }
 0x1a1   :  { %v1048_v9 = vadd.f32 %v1233_v23, %v1047_v6 }
 0x1a2   :  { %v1027_v53 = vpop.f32.mrf.mxu0 }
 0x1a3   :  { %v1028_v7 = vadd.f32 %v1233_v23, %v1027_v53 }
 0x1a5   :  { %1057 = vmax.xlane.f32.xlu1 %v1028_v7  ;;  %1059 = vmax.xlane.f32.xlu0 %v1031_v63 }
 0x1ad   :  { %1063 = vmax.xlane.f32.xlu1 %v1036_v18  ;;  %1073 = vmax.xlane.f32.xlu0 %v1048_v9 }
 0x1b5   :  { %1065 = vmax.xlane.f32.xlu0 %v2104_v47  ;;  %1071 = vmax.xlane.f32.xlu1 %v1046_v59 }
 0x1bd   :  { %1077 = vmax.xlane.f32.xlu1 %v2107_v3 }
 0x1de   :  { %v1062_v32 = vpop.xlane.xlu2 %1061 }
 0x1df   :  { %v1082_v52 = vsub.f32 %v1033_v48, %v1062_v32 }
 0x1e1   :  { %v1097_v58 = vmul.f32 1.442695, %v1082_v52 }
 0x1e6   :  { %v1068_v61 = vpop.xlane.xlu2 %1067 }
 0x1e7   :  { %v1085_v55 = vsub.f32 %v1041_v39, %v1068_v61 }
 0x1e9   :  { %v1103_v29 = vmul.f32 1.442695, %v1085_v55  ;;  %v1311_v55 = vmov 48.0  }
 0x1eb   :  { %1234 = vpow2.f32 %v1103_v29 }
 0x1ee   :  { %v1070_v25 = vpop.xlane.xlu2 %1069 }
 0x1ef   :  { %v1086_v31 = vsub.f32 %v1043_v37, %v1070_v25 }
 0x1f1   :  { %v2110_v42 = vpop.eup %1234  ;;  %v1105_v17 = vmul.f32 1.442695, %v1086_v31 }
 0x1f2   :  { %1127 = vadd.xlane.f32.xlu1 %v2110_v42 }
 0x1f6   :  { %v1076_v28 = vpop.xlane.xlu2 %1075 }
 0x1f7   :  { %v1089_v16 = vsub.f32 %v2101_v24, %v1076_v28 }
 0x1f9   :  { %v1111_v33 = vmul.f32 1.442695, %v1089_v16 }
 0x210   :  { %v1056_v43 = vpop.xlane.xlu0 %1055 }
 0x211   :  { %v1079_v27 = vsub.f32 %v1026_v51, %v1056_v43 }
 0x213   :  { %v1091_v41 = vmul.f32 1.442695, %v1079_v27 }
 0x215   :  { %1236 = vpow2.f32 %v1091_v41 }
 0x216   :  { %1238 = vpow2.f32 %v1097_v58 }
 0x218   :  { %v1058_v50 = vpop.xlane.xlu1 %1057  ;;  %v1060_v13 = vpop.xlane.xlu0 %1059 }
 0x219   :  { %v1081_v30 = vsub.f32 %v1031_v63, %v1060_v13  ;;  %v1080_v15 = vsub.f32 %v1028_v7, %v1058_v50 }
 0x21b   :  { %v2113_v45 = vpop.eup %1236  ;;  %v1095_v14 = vmul.f32 1.442695, %v1081_v30  ;;  %v1093_v21 = vmul.f32 1.442695, %v1080_v15 }
 0x21c   :  { %1115 = vadd.xlane.f32.xlu2 %v2113_v45  ;;  %v2116_v60 = vpop.eup %1238 }
 0x21d   :  { %1240 = vpow2.f32 %v1095_v14 }
 0x21e   :  { %1242 = vpow2.f32 %v1105_v17 }
 0x220   :  { %v1064_v0 = vpop.xlane.xlu1 %1063  ;;  %v1074_v22 = vpop.xlane.xlu0 %1073 }
 0x221   :  { %v1083_v38 = vsub.f32 %v1036_v18, %v1064_v0  ;;  %v1088_v11 = vsub.f32 %v1048_v9, %v1074_v22 }
 0x223   :  { %v1099_v4 = vmul.f32 1.442695, %v1083_v38  ;;  %v2119_v10 = vpop.eup %1240  ;;  %v1109_v57 = vmul.f32 1.442695, %v1088_v11 }
 0x224   :  { %1121 = vadd.xlane.f32.xlu2 %v2116_v60  ;;  %1119 = vadd.xlane.f32.xlu0 %v2119_v10  ;;  %v1243_v12 = vpop.eup %1242 }
 0x225   :  { %1244 = vpow2.f32 %v1099_v4 }
 0x226   :  { %1246 = vpow2.f32 %v1093_v21 }
 0x227   :  { %1248 = vpow2.f32 %v1111_v33 }
 0x228   :  { %v1072_v35 = vpop.xlane.xlu1 %1071  ;;  %v1066_v2 = vpop.xlane.xlu0 %1065  ;;  %1250 = vpow2.f32 %v1109_v57 }
 0x229   :  { %v1087_v40 = vsub.f32 %v1046_v59, %v1072_v35  ;;  %v1084_v56 = vsub.f32 %v2104_v47, %v1066_v2 }
 0x22b   :  { %v2123_v62 = vpop.eup %1244  ;;  %v1107_v46 = vmul.f32 1.442695, %v1087_v40  ;;  %v1101_v48 = vmul.f32 1.442695, %v1084_v56 }
 0x22c   :  { %v1247_v54 = vpop.eup %1246  ;;  %1129 = vadd.xlane.f32.xlu2 %v1243_v12  ;;  %1123 = vadd.xlane.f32.xlu1 %v2123_v62 }
 0x22d   :  { %1117 = vadd.xlane.f32.xlu0 %v1247_v54  ;;  %1252 = vpow2.f32 %v1107_v46  ;;  %v2127_v23 = vpop.eup %1248 }
 0x22e   :  { %v1251_v44 = vpop.eup %1250 }
 0x230   :  { %v1078_v1 = vpop.xlane.xlu1 %1077 }
 0x231   :  { %v1090_v19 = vsub.f32 %v2107_v3, %v1078_v1 }
 0x233   :  { %v1113_v39 = vmul.f32 1.442695, %v1090_v19  ;;  %v1253_v49 = vpop.eup %1252 }
 0x234   :  { %1135 = vadd.xlane.f32.xlu2 %v2127_v23  ;;  %1131 = vadd.xlane.f32.xlu1 %v1253_v49 }
 0x235   :  { %1254 = vpow2.f32 %v1113_v39  ;;  %1133 = vadd.xlane.f32.xlu0 %v1251_v44 }
 0x236   :  { %1256 = vpow2.f32 %v1101_v48 }
 0x23b   :  { %v2131_v37 = vpop.eup %1254 }
 0x23c   :  { %v1257_v36 = vpop.eup %1256  ;;  %1137 = vadd.xlane.f32.xlu1 %v2131_v37 }
 0x23d   :  { %1125 = vadd.xlane.f32.xlu0 %v1257_v36 }
 0x265   :  { %v1128_v8 = vpop.xlane.xlu1 %1127 }
 0x28f   :  { %v1116_v24 = vpop.xlane.xlu2 %1115 }
 0x290   :  { %1258 = vrcp.f32 %v1116_v24 }
 0x296   :  { %v1259_v34 = vpop.eup %1258 }
 0x297   :  { %v1122_v51 = vpop.xlane.xlu2 %1121  ;;  %v1120_v26 = vpop.xlane.xlu0 %1119  ;;  %v1151_v47 = vmul.f32 %v1259_v34, %v2113_v45 }
 0x29f   :  { %v1124_v53 = vpop.xlane.xlu1 %1123  ;;  %v1130_v7 = vpop.xlane.xlu2 %1129 }
 0x2a0   :  { %v1118_v63 = vpop.xlane.xlu0 %1117 }
 0x2a1   :  { %1260 = vrcp.f32 %v1118_v63 }
 0x2a2   :  { %1262 = vrcp.f32 %v1130_v7 }
 0x2a3   :  { %1264 = vrcp.f32 %v1120_v26 }
 0x2a4   :  { %1266 = vrcp.f32 %v1128_v8 }
 0x2a5   :  { %1268 = vrcp.f32 %v1122_v51 }
 0x2a7   :  { %v1261_v6 = vpop.eup %1260  ;;  %v1132_v20 = vpop.xlane.xlu1 %1131 }
 0x2a8   :  { %v1152_v18 = vmul.f32 %v1261_v6, %v1247_v54  ;;  %v1134_v9 = vpop.xlane.xlu0 %1133  ;;  %v1263_v59 = vpop.eup %1262 }
 0x2a9   :  { %1270 = vrcp.f32 %v1134_v9  ;;  %v1265_v5 = vpop.eup %1264  ;;  %v1136_v3 = vpop.xlane.xlu2 %1135  ;;  %v1158_v29 = vmul.f32 %v1263_v59, %v1243_v12 }
 0x2aa   :  { %1272 = vrcp.f32 %v1132_v20  ;;  %v1267_v32 = vpop.eup %1266  ;;  %v1163_v61 = vadd.f32 %v1152_v18, %v1151_v47  ;;  %v1153_v27 = vmul.f32 %v1265_v5, %v2119_v10 }
 0x2ab   :  { %1274 = vrcp.f32 %v1311_v55  ;;  %v1269_v43 = vpop.eup %1268  ;;  %v1157_v52 = vmul.f32 %v1267_v32, %v2110_v42 }
 0x2ac   :  { %1276 = vrcp.f32 %v1124_v53  ;;  %v1164_v50 = vadd.f32 %v1163_v61, %v1153_v27  ;;  %v1154_v31 = vmul.f32 %v1269_v43, %v2116_v60 }
 0x2ad   :  { %1278 = vrcp.f32 %v1136_v3  ;;  %v1174_v30 = vadd.f32 %v1158_v29, %v1157_v52 }
 0x2ae   :  { %v1165_v38 = vadd.f32 %v1164_v50, %v1154_v31 }
 0x2af   :  { %v1271_v41 = vpop.eup %1270  ;;  %v1138_v58 = vpop.xlane.xlu1 %1137 }
 0x2b0   :  { %v1273_v25 = vpop.eup %1272  ;;  %v1126_v13 = vpop.xlane.xlu0 %1125  ;;  %v1160_v17 = vmul.f32 %v1271_v41, %v1251_v44 }
 0x2b1   :  { %v1159_v45 = vmul.f32 %v1273_v25, %v1253_v49  ;;  %1280 = vrcp.f32 %v1126_v13  ;;  %v1275_v14 = vpop.eup %1274 }
 0x2b2   :  { %1282 = vrcp.f32 %v1138_v58  ;;  %v1277_v15 = vpop.eup %1276  ;;  %v1186_v21 = vmul.f32 48.0, %v1275_v14  ;;  %vm1190_vm3 = vweird.f32 %v1275_v14 }
 0x2b3   :  { %v1175_v0 = vadd.f32 %v1174_v30, %v1159_v45  ;;  %v1279_v28 = vpop.eup %1278  ;;  %v1155_v42 = vmul.f32 %v1277_v15, %v2123_v62 }
 0x2b4   :  { %v1161_v16 = vmul.f32 %v1279_v28, %v2127_v23  ;;  %v1187_v60 = vsub.f32 1.0, %v1186_v21 }
 0x2b5   :  { %v1176_v22 = vadd.f32 %v1175_v0, %v1160_v17  ;;  %v1166_v11 = vadd.f32 %v1165_v38, %v1155_v42 }
 0x2b6   :  { %v1188_v54 = vmul.f32 %v1275_v14, %v1187_v60 }
 0x2b7   :  { %v1281_v4 = vpop.eup %1280  ;;  %v1177_v35 = vadd.f32 %v1176_v22, %v1161_v16 }
 0x2b8   :  { %v1283_v10 = vpop.eup %1282  ;;  %v1156_v33 = vmul.f32 %v1281_v4, %v1257_v36  ;;  %v1189_v62 = vadd.f32 %v1275_v14, %v1188_v54 }
 0x2b9   :  { %v1162_v12 = vmul.f32 %v1283_v10, %v2131_v37 }
 0x2ba   :  { %v1167_v57 = vadd.f32 %v1166_v11, %v1156_v33  ;;  %v1191_v36 = vsel %vm1190_vm3, %v1275_v14, %v1189_v62 }
 0x2bb   :  { %v1178_v40 = vadd.f32 %v1177_v35, %v1162_v12 }
 0x2bc   :  { %v1168_v2 = vrot.slane %v1167_v57, 4 }
 0x2bd   :  { %v1179_v46 = vrot.slane %v1178_v40, 4 }
 0x2be   :  { %v1169_v56 = vadd.f32 %v1168_v2, %v1167_v57 }
 0x2bf   :  { %v1180_v1 = vadd.f32 %v1179_v46, %v1178_v40 }
 0x2c0   :  { %v1170_v19 = vrot.slane %v1169_v56, 2 }
 0x2c1   :  { %v1181_v48 = vrot.slane %v1180_v1, 2 }
 0x2c2   :  { %v1171_v44 = vadd.f32 %v1170_v19, %v1169_v56 }
 0x2c3   :  { %v1182_v23 = vadd.f32 %v1181_v48, %v1180_v1 }
 0x2c4   :  { %v1172_v39 = vrot.slane %v1171_v44, 1 }
 0x2c5   :  { %v1183_v49 = vrot.slane %v1182_v23, 1 }
 0x2c6   :  { %v1173_v24 = vadd.f32 %v1172_v39, %v1171_v44 }
 0x2c7   :  { %v1184_v8 = vadd.f32 %v1183_v49, %v1182_v23 }
 0x2c8   :  { %v1192_v37 = vmul.f32 %v1191_v36, %v1173_v24 }
 0x2c9   :  { %v1193_v51 = vmul.f32 %v1191_v36, %v1184_v8 }
 0x2cb   :  { %v1197_v26 = vsel %vm1196_vm4, %v1193_v51, %v1192_v37 }
 0x2cc   :  { %1199 = vst [vmem:[#allocation2] sm:$0x3] %v1197_v26 }
 0x2cd   :  { %1210 = dma.vmem_to_hbm [thread:$0]  %s1206_s28, 32, %s1208_s5, [#allocation3]  }
 0x2ce   :  { %1308 = dma.done.wait [#allocation3], 32  }
 0x2cf   :  { %1309 = vsyncadd [#allocation3], 4294967264 }
 0x2d0   :  { %1215 = vsyncpa [#allocation3], 1 }

// kernel: tpu_custom_call.1
= control target key start
LH: loop header
LB: loop body
LE: loop exit
PB: predicated region body
PF: predicated region fallthrough
CT: control target
= control target key end

     0   :  { %s2144_s0 = inlined_call_operand.vmem [shape: bf16[2,4,6,6,4], index: 0, kind: input, shape index: {}]   ;;  %s2145_s1 = inlined_call_operand.vmem [shape: bf16[2,4,6,6,8], index: 1, kind: input, shape index: {}]   ;;  %s2146_s2 = inlined_call_operand.vmem [shape: bf16[12,128], index: 2, kind: input, shape index: {}]   ;;  %s2147_s3 = inlined_call_operand.vmem [shape: f32[1,128], index: 3, kind: input, shape index: {}]   ;;  %s2148_s4 = inlined_call_operand.hbm [shape: f32[2,128], index: 4, kind: output, shape index: {}]  }
   0x1   :  { %v1341_v0 = vld [vmem:[%s2144_s0 + $0x18] sm:$0x7]  ;;  %v1346_v1 = vld [vmem:[%s2144_s0 + $0x1c] sm:$0x7]  ;;  %v1351_v2 = vld [vmem:[%s2144_s0 + $0x20] sm:$0x7] }
   0x2   :  { %v1356_v3 = vld [vmem:[%s2144_s0 + $0x24] sm:$0x7]  ;;  %v1361_v4 = vld [vmem:[%s2144_s0 + $0x30] sm:$0x7]  ;;  %v1366_v5 = vld [vmem:[%s2144_s0 + $0x34] sm:$0x7]  ;;  %v2151_v17 = vunpack.c.l.bf16 %v1341_v0  ;;  %v2150_v18 = vunpack.c.l.bf16 %v1346_v1  ;;  %v2149_v19 = vunpack.c.l.bf16 %v1351_v2 }
   0x3   :  { %v1371_v6 = vld [vmem:[%s2144_s0 + $0x38] sm:$0x7]  ;;  %v1376_v7 = vld [vmem:[%s2144_s0 + $0x3c] sm:$0x7]  ;;  %v1381_v8 = vld [vmem:[%s2144_s0 + $0x40] sm:$0x7]  ;;  %v2161_v23 = vunpack.c.l.bf16 %v1356_v3  ;;  %v79_v24 = vunpack.c.l.bf16 %v1361_v4  ;;  %v80_v25 = vunpack.c.l.bf16 %v1366_v5 }
   0x4   :  { %v37_v9 = vld [vmem:[%s2144_s0 + $0x48] sm:$0x7]  ;;  %v38_v10 = vld [vmem:[%s2144_s0 + $0x4c] sm:$0x7]  ;;  %v39_v11 = vld [vmem:[%s2144_s0 + $0x50] sm:$0x7]  ;;  %v81_v26 = vunpack.c.l.bf16 %v1371_v6  ;;  %v82_v30 = vunpack.c.l.bf16 %v1376_v7  ;;  %v83_v31 = vunpack.c.l.bf16 %v1381_v8 }
   0x5   :  { %v40_v12 = vld [vmem:[%s2144_s0 + $0x54] sm:$0x7]  ;;  %v41_v13 = vld [vmem:[%s2144_s0 + $0x58] sm:$0x7]  ;;  %v1406_v15 = vld [vmem:[%s2144_s0 + $0x7c] sm:$0x7]  ;;  %v85_v32 = vunpack.c.l.bf16 %v37_v9  ;;  %v86_v33 = vunpack.c.l.bf16 %v38_v10  ;;  %v87_v37 = vunpack.c.l.bf16 %v39_v11 }
   0x6   :  { %v1401_v14 = vld [vmem:[%s2144_s0 + $0x78] sm:$0x7]  ;;  %v1411_v16 = vld [vmem:[%s2144_s0 + $0x80] sm:$0x7]  ;;  %v1419_v20 = vld [vmem:[%s2144_s0 + $0x90] sm:$0x7]  ;;  %v88_v38 = vunpack.c.l.bf16 %v40_v12  ;;  %v89_v39 = vunpack.c.l.bf16 %v41_v13  ;;  %v98_v45 = vunpack.c.l.bf16 %v1406_v15 }
   0x7   :  { %v1424_v21 = vld [vmem:[%s2144_s0 + $0x94] sm:$0x7]  ;;  %v1429_v22 = vld [vmem:[%s2144_s0 + $0x98] sm:$0x7]  ;;  %v1438_v27 = vld [vmem:[%s2144_s0 + $0x9c] sm:$0x7]  ;;  %v97_v40 = vunpack.c.l.bf16 %v1401_v14  ;;  %v2157_v41 = vunpack.c.l.bf16 %v1419_v20  ;;  %v99_v46 = vunpack.c.l.bf16 %v1411_v16 }
   0x8   :  { %v1443_v28 = vld [vmem:[%s2144_s0 + $0xa0] sm:$0x7]  ;;  %v1448_v29 = vld [vmem:[%s2144_s0 + $0xa4] sm:$0x7]  ;;  %v1460_v35 = vld [vmem:[%s2144_s0 + $0x88] sm:$0x7]  ;;  %v2156_v42 = vunpack.c.l.bf16 %v1424_v21  ;;  %v2155_v43 = vunpack.c.l.bf16 %v1429_v22  ;;  %v2154_v44 = vunpack.c.l.bf16 %v1438_v27 }
   0x9   :  { %v1455_v34 = vld [vmem:[%s2144_s0 + $0x84] sm:$0x7]  ;;  %v1465_v36 = vld [vmem:[%s2144_s0 + $0x8c] sm:$0x7]  ;;  %v2153_v47 = vunpack.c.l.bf16 %v1443_v28  ;;  %v2152_v48 = vunpack.c.l.bf16 %v1448_v29 }
   0xa   :  { %9 = vsyncpa [#allocation3], 0  ;;  %v1479_v49 = vld [vmem:[%s2144_s0 + $0x28] sm:$0x7]  ;;  %v42_v50 = vld [vmem:[%s2144_s0 + $0x5c] sm:$0x7]  ;;  %v100_v51 = vunpack.c.l.bf16 %v1455_v34  ;;  %v2159_v52 = vunpack.c.l.bf16 %v1460_v35  ;;  %v2158_v53 = vunpack.c.l.bf16 %v1465_v36  ;;  %v127_v54 = vadd.f32 %v85_v32, %v79_v24 }
   0xb   :  { %v128_v55 = vadd.f32 %v86_v33, %v80_v25  ;;  %v129_v56 = vadd.f32 %v87_v37, %v81_v26  ;;  %v130_v57 = vadd.f32 %v88_v38, %v82_v30  ;;  %v131_v58 = vadd.f32 %v89_v39, %v83_v31  ;;  %v36_v59 = vld [vmem:[%s2144_s0 + $0x44] sm:$0x7]  ;;  %v1518_v8 = vld [vmem:[%s2144_s0 + $0x2c] sm:$0x7]  ;;  %v43_v13 = vld [vmem:[%s2144_s0 + $0x60] sm:$0x7] }
   0xc   :  { %v139_v60 = vadd.f32 %v2157_v41, %v97_v40  ;;  %v140_v61 = vadd.f32 %v2156_v42, %v98_v45  ;;  %v141_v62 = vadd.f32 %v2155_v43, %v99_v46  ;;  %v142_v63 = vadd.f32 %v2154_v44, %v100_v51  ;;  %v44_v32 = vld [vmem:[%s2144_s0 + $0x64] sm:$0x7]  ;;  %v64_v14 = vld [vmem:[%s2144_s0 + $0xb4] sm:$0x7]  ;;  %v65_v15 = vld [vmem:[%s2144_s0 + $0xb8] sm:$0x7] }
   0xd   :  { %v2160_v4 = vunpack.c.l.bf16 %v1479_v49  ;;  %v90_v5 = vunpack.c.l.bf16 %v42_v50  ;;  %v143_v6 = vadd.f32 %v2153_v47, %v2159_v52  ;;  %v144_v7 = vadd.f32 %v2152_v48, %v2158_v53  ;;  %v47_v48 = vld [vmem:[%s2144_s0 + $0x70] sm:$0x7]  ;;  %s1310_s16 = smov 4   ;;  %s1207_s5 = sshll.u32 %s2148_s4, 4  ;;  %s1208_s5 = int_to_ptr.hbm [resolvable:$true] %s1207_s5 }
   0xe   :  { %v84_v9 = vunpack.c.l.bf16 %v36_v59  ;;  %v121_v10 = vadd.f32 %v79_v24, %v2151_v17  ;;  %v122_v11 = vadd.f32 %v80_v25, %v2150_v18  ;;  %v123_v12 = vadd.f32 %v81_v26, %v2149_v19  ;;  %v45_v24 = vld [vmem:[%s2144_s0 + $0x68] sm:$0x7]  ;;  %v46_v25 = vld [vmem:[%s2144_s0 + $0x6c] sm:$0x7] }
   0xf   :  { %v159_v33 = vadd.f32 %v128_v55, %v127_v54  ;;  %v160_v37 = vadd.f32 %v129_v56, %v128_v55  ;;  %v161_v38 = vadd.f32 %v130_v57, %v129_v56  ;;  %v162_v39 = vadd.f32 %v131_v58, %v130_v57 }
  0x10   :  { %v2172_v26 = vunpack.c.l.bf16 %v1518_v8  ;;  %v124_v50 = vadd.f32 %v82_v30, %v2161_v23  ;;  %v125_v59 = vadd.f32 %v83_v31, %v2160_v4  ;;  %v132_v54 = vadd.f32 %v90_v5, %v84_v9 }
  0x11   :  { %v167_v55 = vadd.f32 %v140_v61, %v139_v60  ;;  %v168_v19 = vadd.f32 %v141_v62, %v140_v61  ;;  %v169_v18 = vadd.f32 %v142_v63, %v141_v62  ;;  %v170_v17 = vadd.f32 %v143_v6, %v142_v63 }
  0x12   :  { %v91_v47 = vunpack.c.l.bf16 %v43_v13  ;;  %v92_v44 = vunpack.c.l.bf16 %v44_v32  ;;  %v93_v43 = vunpack.c.l.bf16 %v45_v24  ;;  %v94_v42 = vunpack.c.l.bf16 %v46_v25 }
  0x13   :  { %v155_v41 = vadd.f32 %v122_v11, %v121_v10  ;;  %v156_v53 = vadd.f32 %v123_v12, %v122_v11  ;;  %v1546_v52 = vadd.f32 %v159_v33, %v129_v56  ;;  %v1548_v30 = vadd.f32 %v160_v37, %v130_v57  ;;  %v48_v57 = vld [vmem:[%s2144_s0 + $0x74] sm:$0x7] }
  0x14   :  { %v1550_v31 = vadd.f32 %v161_v38, %v131_v58  ;;  %v1552_v60 = vadd.f32 %v162_v39, %v132_v54  ;;  %v95_v61 = vunpack.c.l.bf16 %v47_v48  ;;  %v126_v5 = vadd.f32 %v84_v9, %v2172_v26  ;;  %v61_v48 = vld [vmem:[%s2144_s0 + $0xa8] sm:$0x7]  ;;  %v62_v58 = vld [vmem:[%s2144_s0 + $0xac] sm:$0x7] }
  0x15   :  { %v157_v4 = vadd.f32 %v124_v50, %v123_v12  ;;  %v158_v23 = vadd.f32 %v125_v59, %v124_v50  ;;  %v1556_v13 = vadd.f32 %v167_v55, %v141_v62  ;;  %v1558_v32 = vadd.f32 %v168_v19, %v142_v63  ;;  %v63_v63 = vld [vmem:[%s2144_s0 + $0xb0] sm:$0x7] }
  0x16   :  { %v1560_v10 = vadd.f32 %v169_v18, %v143_v6  ;;  %v1562_v56 = vadd.f32 %v170_v17, %v144_v7  ;;  %v133_v19 = vadd.f32 %v97_v40, %v91_v47  ;;  %v134_v18 = vadd.f32 %v98_v45, %v92_v44 }
  0x17   :  { %2188 = vst [vmem:[#allocation5_spill] sm:$0xff] %v1556_v13  ;;  %v135_v17 = vadd.f32 %v99_v46, %v93_v43  ;;  %v136_v62 = vadd.f32 %v100_v51, %v94_v42  ;;  %v179_v6 = vadd.f32 %v155_v41, %v123_v12  ;;  %v180_v7 = vadd.f32 %v156_v53, %v124_v50 }
  0x18   :  { %2189 = vst [vmem:[#allocation6_spill] sm:$0xff] %v1558_v32  ;;  %v181_v9 = vadd.f32 %v157_v4, %v125_v59  ;;  %v182_v11 = vadd.f32 %v158_v23, %v126_v5  ;;  %v96_v16 = vunpack.c.l.bf16 %v48_v57  ;;  %v109_v40 = vunpack.c.l.bf16 %v61_v48  ;;  %v66_v5 = vld [vmem:[%s2144_s0 + $0xbc] sm:$0x7] }
  0x19   :  { %v110_v34 = vunpack.c.l.bf16 %v62_v58  ;;  %v2190_v42 = vunpack.c.l.bf16 %v1460_v35  ;;  %v111_v44 = vunpack.c.l.bf16 %v63_v63  ;;  %v163_v45 = vadd.f32 %v134_v18, %v133_v19 }
  0x1a   :  { %v164_v41 = vadd.f32 %v135_v17, %v134_v18  ;;  %v165_v46 = vadd.f32 %v136_v62, %v135_v17  ;;  %v227_v47 = vrot.slane %v179_v6, 1  ;;  %v228_v23 = vrot.slane %v180_v7, 1 }
  0x1b   :  { %v137_v43 = vadd.f32 %v2190_v42, %v95_v61  ;;  %v112_v51 = vunpack.c.l.bf16 %v64_v14  ;;  %v113_v53 = vunpack.c.l.bf16 %v65_v15  ;;  %v229_v4 = vrot.slane %v181_v9, 1 }
  0x1c   :  { %v230_v12 = vrot.slane %v182_v11, 1  ;;  %v2191_v33 = vunpack.c.l.bf16 %v1465_v36  ;;  %v2192_v38 = vunpack.c.l.bf16 %v1419_v20  ;;  %v2193_v24 = vunpack.c.l.bf16 %v1424_v21 }
  0x1d   :  { %v166_v25 = vadd.f32 %v137_v43, %v136_v62  ;;  %v2194_v50 = vunpack.c.l.bf16 %v1429_v22  ;;  %v187_v54 = vadd.f32 %v163_v45, %v135_v17  ;;  %v188_v55 = vadd.f32 %v164_v41, %v136_v62 }
  0x1e   :  { %v138_v37 = vadd.f32 %v2191_v33, %v96_v16  ;;  %v145_v39 = vadd.f32 %v109_v40, %v2192_v38  ;;  %v146_v35 = vadd.f32 %v110_v34, %v2193_v24  ;;  %v189_v61 = vadd.f32 %v165_v46, %v137_v43 }
  0x1f   :  { %v147_v59 = vadd.f32 %v111_v44, %v2194_v50  ;;  %v275_v57 = vadd.f32 %v227_v47, %v179_v6  ;;  %v276_v36 = vadd.f32 %v228_v23, %v180_v7  ;;  %v299_v48 = vrot.slane %v179_v6, 2 }
  0x20   :  { %v300_v58 = vrot.slane %v180_v7, 2  ;;  %v277_v20 = vadd.f32 %v229_v4, %v181_v9  ;;  %v278_v19 = vadd.f32 %v230_v12, %v182_v11  ;;  %v301_v18 = vrot.slane %v181_v9, 2 }
  0x21   :  { %v302_v21 = vrot.slane %v182_v11, 2  ;;  %v2195_v63 = vunpack.c.l.bf16 %v1438_v27  ;;  %v190_v22 = vadd.f32 %v166_v25, %v138_v37  ;;  %v114_v15 = vunpack.c.l.bf16 %v66_v5 }
  0x22   :  { %v2196_v17 = vunpack.c.l.bf16 %v1443_v28  ;;  %v235_v16 = vrot.slane %v187_v54, 1  ;;  %v171_v40 = vadd.f32 %v146_v35, %v145_v39  ;;  %v236_v34 = vrot.slane %v188_v55, 1 }
  0x23   :  { %v148_v14 = vadd.f32 %v112_v51, %v2195_v63  ;;  %v347_v42 = vadd.f32 %v299_v48, %v275_v57  ;;  %v348_v43 = vadd.f32 %v300_v58, %v276_v36  ;;  %v172_v44 = vadd.f32 %v147_v59, %v146_v35 }
  0x24   :  { %v149_v62 = vadd.f32 %v113_v53, %v2196_v17  ;;  %v237_v6 = vrot.slane %v189_v61, 1  ;;  %v349_v7 = vadd.f32 %v301_v18, %v277_v20  ;;  %v350_v45 = vadd.f32 %v302_v21, %v278_v19  ;;  %v1621_v17 = vld [vmem:[%s2145_s1 + $0x1c] sm:$0x7] }
  0x25   :  { %v173_v41 = vadd.f32 %v148_v14, %v147_v59  ;;  %v238_v9 = vrot.slane %v190_v22, 1  ;;  %399 = vst [vmem:[#allocation1 + $0x20] ss:$2 sm:$0xff] %v347_v42  ;;  %v2197_v27 = vunpack.c.l.bf16 %v1448_v29  ;;  %v283_v47 = vadd.f32 %v235_v16, %v187_v54  ;;  %v1626_v16 = vld [vmem:[%s2145_s1 + $0x20] sm:$0x7] }
  0x26   :  { %v174_v46 = vadd.f32 %v149_v62, %v148_v14  ;;  %v307_v23 = vrot.slane %v187_v54, 2  ;;  %401 = vst [vmem:[#allocation1 + $0x21] ss:$2 sm:$0xff] %v348_v43  ;;  %v195_v28 = vadd.f32 %v171_v40, %v147_v59  ;;  %v284_v51 = vadd.f32 %v236_v34, %v188_v55  ;;  %v1631_v40 = vld [vmem:[%s2145_s1 + $0x24] sm:$0x7] }
  0x27   :  { %v150_v11 = vadd.f32 %v114_v15, %v2197_v27  ;;  %v308_v53 = vrot.slane %v188_v55, 2  ;;  %403 = vst [vmem:[#allocation1 + $0x30] ss:$2 sm:$0xff] %v349_v7  ;;  %v196_v4 = vadd.f32 %v172_v44, %v148_v14  ;;  %v285_v12 = vadd.f32 %v237_v6, %v189_v61  ;;  %v1616_v15 = vld [vmem:[%s2145_s1 + $0x18] sm:$0x7] }
  0x28   :  { %v309_v33 = vrot.slane %v189_v61, 2  ;;  %405 = vst [vmem:[#allocation1 + $0x31] ss:$2 sm:$0xff] %v350_v45  ;;  %v197_v37 = vadd.f32 %v173_v41, %v149_v62  ;;  %v286_v38 = vadd.f32 %v238_v9, %v190_v22  ;;  %v310_v39 = vrot.slane %v190_v22, 2  ;;  %v1636_v34 = vld [vmem:[%s2145_s1 + $0x28] sm:$0x7] }
  0x29   :  { %v198_v24 = vadd.f32 %v174_v46, %v150_v11  ;;  %v355_v35 = vadd.f32 %v307_v23, %v283_v47  ;;  %v243_v25 = vrot.slane %v195_v28, 1  ;;  %v356_v29 = vadd.f32 %v308_v53, %v284_v51  ;;  %v1641_v42 = vld [vmem:[%s2145_s1 + $0x30] sm:$0x7]  ;;  %v1648_v6 = vld [vmem:[%s2145_s1 + $0x34] sm:$0x7] }
  0x2a   :  { %v244_v50 = vrot.slane %v196_v4, 1  ;;  %v357_v5 = vadd.f32 %v309_v33, %v285_v12  ;;  %v245_v57 = vrot.slane %v197_v37, 1  ;;  %v358_v54 = vadd.f32 %v310_v39, %v286_v38  ;;  %2200 = vst [vmem:[#allocation9_spill] sm:$0xff] %v1641_v42  ;;  %v1653_v7 = vld [vmem:[%s2145_s1 + $0x38] sm:$0x7] }
  0x2b   :  { %v246_v59 = vrot.slane %v198_v24, 1  ;;  %v291_v55 = vadd.f32 %v243_v25, %v195_v28  ;;  %v315_v48 = vrot.slane %v195_v28, 2  ;;  %v316_v20 = vrot.slane %v196_v4, 2  ;;  %2202 = vst [vmem:[#allocation11_spill] sm:$0xff] %v1648_v6  ;;  %v1658_v45 = vld [vmem:[%s2145_s1 + $0x3c] sm:$0x7] }
  0x2c   :  { %v292_v61 = vadd.f32 %v244_v50, %v196_v4  ;;  %v293_v19 = vadd.f32 %v245_v57, %v197_v37  ;;  %v317_v18 = vrot.slane %v197_v37, 2  ;;  %v318_v63 = vrot.slane %v198_v24, 2  ;;  %2203 = vst [vmem:[#allocation12_spill] sm:$0xff] %v1653_v7  ;;  %v1663_v41 = vld [vmem:[%s2145_s1 + $0x40] sm:$0x7] }
  0x2d   :  { %v1609_v36 = vld.sshfl [vmem:[#allocation1 + $0x20] sm:$0xff pattern:$0x75316420]  ;;  %v294_v21 = vadd.f32 %v246_v59, %v198_v24  ;;  %v363_v14 = vadd.f32 %v315_v48, %v291_v55  ;;  %2204 = vst [vmem:[#allocation13_spill] sm:$0xff] %v1658_v45  ;;  %v1670_v27 = vld [vmem:[%s2145_s1 + $0x2c] sm:$0x7]  ;;  %v2171_v11 = vunpack.c.l.bf16 %v1616_v15  ;;  %v2164_v46 = vunpack.c.l.bf16 %v1621_v17 }
  0x2e   :  { %2198 = vst [vmem:[#allocation7_spill] sm:$0xff] %v1609_v36  ;;  %v364_v22 = vadd.f32 %v316_v20, %v292_v61  ;;  %v365_v62 = vadd.f32 %v317_v18, %v293_v19  ;;  %v1677_v47 = vld [vmem:[%s2145_s1 + $0x44] sm:$0x7]  ;;  %v482_v23 = vld [vmem:[%s2145_s1 + $0x60] sm:$0x7]  ;;  %v2170_v28 = vunpack.c.l.bf16 %v1626_v16  ;;  %v2169_v51 = vunpack.c.l.bf16 %v1631_v40 }
  0x2f   :  { %414 = vst [vmem:[#allocation1 + $0x20] ss:$2 sm:$0xff] %v355_v35  ;;  %v1611_v58 = vld.sshfl [vmem:[#allocation1 + $0x30] sm:$0xff pattern:$0x75316420]  ;;  %v366_v43 = vadd.f32 %v318_v63, %v294_v21  ;;  %v2168_v53 = vunpack.c.l.bf16 %v1636_v34  ;;  %v2162_v4 = vunpack.c.l.bf16 %v1641_v42  ;;  %v2163_v38 = vunpack.c.l.bf16 %v1648_v6 }
  0x30   :  { %2199 = vst [vmem:[#allocation8_spill] sm:$0xff] %v1611_v58  ;;  %v483_v12 = vld [vmem:[%s2145_s1 + $0x64] sm:$0x7]  ;;  %v484_v33 = vld [vmem:[%s2145_s1 + $0x68] sm:$0x7]  ;;  %v2165_v39 = vunpack.c.l.bf16 %v1653_v7  ;;  %v2166_v24 = vunpack.c.l.bf16 %v1658_v45  ;;  %v2167_v35 = vunpack.c.l.bf16 %v1663_v41  ;;  %v2173_v59 = vunpack.c.l.bf16 %v1677_v47 }
  0x31   :  { %415 = vst [vmem:[#allocation1 + $0x21] ss:$2 sm:$0xff] %v356_v29  ;;  %v485_v37 = vld [vmem:[%s2145_s1 + $0x6c] sm:$0x7]  ;;  %v486_v25 = vld [vmem:[%s2145_s1 + $0x70] sm:$0x7]  ;;  %v530_v55 = vunpack.c.l.bf16 %v482_v23  ;;  %v531_v19 = vunpack.c.l.bf16 %v483_v12  ;;  %v532_v18 = vunpack.c.l.bf16 %v484_v33  ;;  %v560_v63 = vadd.f32 %v2162_v4, %v2171_v11 }
  0x32   :  { %416 = vst [vmem:[#allocation1 + $0x30] ss:$2 sm:$0xff] %v357_v5  ;;  %v1705_v29 = vld [vmem:[%s2145_s1 + $0x74] sm:$0x7]  ;;  %v1710_v50 = vld [vmem:[%s2145_s1 + $0x78] sm:$0x7]  ;;  %v533_v21 = vunpack.c.l.bf16 %v485_v37  ;;  %v562_v23 = vadd.f32 %v2165_v39, %v2170_v28  ;;  %v563_v12 = vadd.f32 %v2166_v24, %v2169_v51  ;;  %v564_v33 = vadd.f32 %v2167_v35, %v2168_v53 }
  0x33   :  { %417 = vst [vmem:[#allocation1 + $0x31] ss:$2 sm:$0xff] %v358_v54  ;;  %v1715_v5 = vld [vmem:[%s2145_s1 + $0x7c] sm:$0x7]  ;;  %v1720_v57 = vld [vmem:[%s2145_s1 + $0x80] sm:$0x7]  ;;  %v2174_v54 = vunpack.c.l.bf16 %v1670_v27  ;;  %v534_v37 = vunpack.c.l.bf16 %v486_v25  ;;  %v535_v4 = vunpack.c.l.bf16 %v1705_v29  ;;  %v2212_v36 = vunpack.c.l.bf16 %v1710_v50 }
  0x34   :  { %2205 = vst [vmem:[#allocation14_spill] sm:$0xff] %v1663_v41  ;;  %v1727_v48 = vld [vmem:[%s2145_s1 + $0x84] sm:$0x7]  ;;  %v1732_v61 = vld [vmem:[%s2145_s1 + $0x88] sm:$0x7]  ;;  %v2215_v58 = vunpack.c.l.bf16 %v1720_v57  ;;  %vm1012_vm0 = vcmask 1045504  }
  0x35   :  { %2207 = vst [vmem:[#allocation16_spill] sm:$0xff] %v1670_v27  ;;  %v1737_v20 = vld [vmem:[%s2145_s1 + $0x8c] sm:$0x7]  ;;  %v1780_v39 = vld [vmem:[%s2145_s1 + $0x9c] sm:$0x7]  ;;  %v565_v29 = vadd.f32 %v2173_v59, %v2174_v54  ;;  %vm969_vm1 = vcmask 31744  }
  0x36   :  { %2208 = vst [vmem:[#allocation17_spill] sm:$0xff] %v1677_v47  ;;  %v1785_v24 = vld [vmem:[%s2145_s1 + $0xa0] sm:$0x7]  ;;  %v500_v25 = vld [vmem:[%s2145_s1 + $0xa8] sm:$0x7]  ;;  %v574_v41 = vadd.f32 %v2215_v58, %v532_v18  ;;  %vm999_vm2 = vcmask 97280  }
  0x37   :  { %2209 = vst [vmem:[#allocation18_spill] sm:$0xff] %v1710_v50  ;;  %v501_v28 = vld [vmem:[%s2145_s1 + $0xac] sm:$0x7]  ;;  %v502_v53 = vld [vmem:[%s2145_s1 + $0xb0] sm:$0x7]  ;;  %v548_v54 = vunpack.c.l.bf16 %v500_v25  ;;  %v2216_v25 = vunpack.c.l.bf16 %v1727_v48  ;;  %vm1196_vm4 = vcmask 1041409  }
  0x38   :  { %v1643_v44 = vld.sshfl [vmem:[#allocation1 + $0x20] sm:$0xff pattern:$0x75316420]  ;;  %2210 = vst [vmem:[#allocation19_spill] sm:$0xff] %v1715_v5  ;;  %v503_v51 = vld [vmem:[%s2145_s1 + $0xb4] sm:$0x7]  ;;  %v549_v50 = vunpack.c.l.bf16 %v501_v28  ;;  %v550_v45 = vunpack.c.l.bf16 %v502_v53  ;;  %v2222_v53 = vunpack.c.l.bf16 %v1780_v39 }
  0x39   :  { %2201 = vst [vmem:[#allocation10_spill] sm:$0xff] %v1643_v44  ;;  %v504_v11 = vld [vmem:[%s2145_s1 + $0xb8] sm:$0x7]  ;;  %v1820_v44 = vld [vmem:[%s2145_s1 + $0xa4] sm:$0x7]  ;;  %v575_v59 = vadd.f32 %v2216_v25, %v533_v21  ;;  %v551_v7 = vunpack.c.l.bf16 %v503_v51 }
  0x3a   :  { %426 = vst [vmem:[#allocation1 + $0x20] ss:$2 sm:$0xff] %v363_v14  ;;  %v1665_v9 = vld.sshfl [vmem:[#allocation1 + $0x30] sm:$0xff pattern:$0x75316420]  ;;  %v552_v6 = vunpack.c.l.bf16 %v504_v11 }
  0x3b   :  { %2206 = vst [vmem:[#allocation15_spill] sm:$0xff] %v1665_v9  ;;  %v1746_v14 = vld [vmem:[%s2145_s1 + $0x90] sm:$0x7]  ;;  %v572_v9 = vadd.f32 %v2212_v36, %v530_v55  ;;  %v2217_v36 = vunpack.c.l.bf16 %v1732_v61 }
  0x3c   :  { %427 = vst [vmem:[#allocation1 + $0x21] ss:$2 sm:$0xff] %v364_v22  ;;  %v1751_v22 = vld [vmem:[%s2145_s1 + $0x94] sm:$0x7]  ;;  %v2219_v18 = vunpack.c.l.bf16 %v1746_v14 }
  0x3d   :  { %428 = vst [vmem:[#allocation1 + $0x30] ss:$2 sm:$0xff] %v365_v62  ;;  %v1756_v62 = vld [vmem:[%s2145_s1 + $0x98] sm:$0x7]  ;;  %v576_v55 = vadd.f32 %v2217_v36, %v534_v37  ;;  %v604_v37 = vadd.f32 %v575_v59, %v574_v41  ;;  %v2220_v51 = vunpack.c.l.bf16 %v1751_v22 }
  0x3e   :  { %429 = vst [vmem:[#allocation1 + $0x31] ss:$2 sm:$0xff] %v366_v43  ;;  %v561_v43 = vadd.f32 %v2163_v38, %v2164_v46  ;;  %v596_v46 = vadd.f32 %v563_v12, %v562_v23  ;;  %v597_v38 = vadd.f32 %v564_v33, %v563_v12  ;;  %v584_v21 = vadd.f32 %v548_v54, %v2219_v18 }
  0x3f   :  { %2211 = vst [vmem:[#allocation20_spill] sm:$0xff] %v1732_v61  ;;  %v605_v28 = vadd.f32 %v576_v55, %v575_v59  ;;  %v585_v11 = vadd.f32 %v549_v50, %v2220_v51  ;;  %v1852_v50 = vadd.f32 %v604_v37, %v576_v55  ;;  %v21_v37 = vld [vmem:[%s2144_s0 + $0x8] sm:$0x7] }
  0x40   :  { %v594_v26 = vadd.f32 %v561_v43, %v560_v63  ;;  %v595_v35 = vadd.f32 %v562_v23, %v561_v43  ;;  %2213 = vst [vmem:[#allocation21_spill] sm:$0xff] %v1820_v44  ;;  %v505_v63 = vld [vmem:[%s2145_s1 + $0xbc] sm:$0x7]  ;;  %v2214_v43 = vunpack.c.l.bf16 %v1715_v5  ;;  %v620_v32 = vadd.f32 %v596_v46, %v564_v33 }
  0x41   :  { %v621_v13 = vadd.f32 %v597_v38, %v565_v29  ;;  %v547_v5 = vunpack.c.l.bf16 %v1820_v44  ;;  %v587_v38 = vadd.f32 %v551_v7, %v2222_v53 }
  0x42   :  { %v573_v47 = vadd.f32 %v2214_v43, %v531_v19  ;;  %v618_v42 = vadd.f32 %v594_v26, %v562_v23  ;;  %v619_v27 = vadd.f32 %v595_v35, %v563_v12  ;;  %v553_v19 = vunpack.c.l.bf16 %v505_v63 }
  0x43   :  { %v2218_v43 = vunpack.c.l.bf16 %v1737_v20  ;;  %v2221_v26 = vunpack.c.l.bf16 %v1756_v62  ;;  %v2223_v35 = vunpack.c.l.bf16 %v1785_v24  ;;  %v668_v33 = vrot.slane %v620_v32, 1 }
  0x44   :  { %v602_v25 = vadd.f32 %v573_v47, %v572_v9  ;;  %v603_v61 = vadd.f32 %v574_v41, %v573_v47  ;;  %v667_v12 = vrot.slane %v619_v27, 1  ;;  %v669_v54 = vrot.slane %v621_v13, 1 }
  0x45   :  { %v577_v58 = vadd.f32 %v2218_v43, %v535_v4  ;;  %v586_v46 = vadd.f32 %v550_v45, %v2221_v26  ;;  %v588_v23 = vadd.f32 %v552_v6, %v2223_v35  ;;  %v666_v4 = vrot.slane %v618_v42, 1 }
  0x46   :  { %v589_v9 = vadd.f32 %v553_v19, %v547_v5  ;;  %v1848_v47 = vadd.f32 %v602_v25, %v574_v41  ;;  %v1850_v29 = vadd.f32 %v603_v61, %v575_v59  ;;  %v610_v63 = vadd.f32 %v585_v11, %v584_v21  ;;  %v1863_v21 = vld.sshfl [vmem:[#allocation1 + $0x20] sm:$0xff pattern:$0x75316420] }
  0x47   :  { %v1854_v45 = vadd.f32 %v605_v28, %v577_v58  ;;  %v611_v7 = vadd.f32 %v586_v46, %v585_v11  ;;  %v612_v36 = vadd.f32 %v587_v38, %v586_v46  ;;  %v613_v43 = vadd.f32 %v588_v23, %v587_v38  ;;  %v19_v58 = vld [vmem:[%s2144_s0] sm:$0x7]  ;;  %v22_v28 = vld [vmem:[%s2144_s0 + $0xc] sm:$0x7]  ;;  %v23_v11 = vld [vmem:[%s2144_s0 + $0x10] sm:$0x7] }
  0x48   :  { %v714_v6 = vadd.f32 %v666_v4, %v618_v42  ;;  %v715_v18 = vadd.f32 %v667_v12, %v619_v27  ;;  %v716_v51 = vadd.f32 %v668_v33, %v620_v32  ;;  %v717_v26 = vadd.f32 %v669_v54, %v621_v13  ;;  %v1881_v4 = vld.sshfl [vmem:[#allocation1 + $0x30] sm:$0xff pattern:$0x75316420] }
  0x49   :  { %v738_v53 = vrot.slane %v618_v42, 2  ;;  %v739_v35 = vrot.slane %v619_v27, 2  ;;  %v740_v44 = vrot.slane %v620_v32, 2  ;;  %v741_v19 = vrot.slane %v621_v13, 2  ;;  %v20_v42 = vld [vmem:[%s2144_s0 + $0x4] sm:$0x7] }
  0x4a   :  { %v674_v41 = vrot.slane %v1848_v47, 1  ;;  %v675_v59 = vrot.slane %v1850_v29, 1  ;;  %v676_v61 = vrot.slane %v1852_v50, 1  ;;  %v677_v55 = vrot.slane %v1854_v45, 1  ;;  %v24_v54 = vld [vmem:[%s2144_s0 + $0x14] sm:$0x7] }
  0x4b   :  { %v1868_v32 = vadd.f32 %v610_v63, %v586_v46  ;;  %v1870_v13 = vadd.f32 %v611_v7, %v587_v38  ;;  %v786_v27 = vadd.f32 %v738_v53, %v714_v6  ;;  %v787_v25 = vadd.f32 %v739_v35, %v715_v18 }
  0x4c   :  { %v1883_v46 = vadd.f32 %v612_v36, %v588_v23  ;;  %v1885_v38 = vadd.f32 %v613_v43, %v589_v9  ;;  %v788_v12 = vadd.f32 %v740_v44, %v716_v51  ;;  %v789_v33 = vadd.f32 %v741_v19, %v717_v26 }
  0x4d   :  { %v722_v63 = vadd.f32 %v674_v41, %v1848_v47  ;;  %v723_v7 = vadd.f32 %v675_v59, %v1850_v29  ;;  %v724_v6 = vadd.f32 %v676_v61, %v1852_v50  ;;  %v725_v18 = vadd.f32 %v677_v55, %v1854_v45  ;;  %838 = vst [vmem:[#allocation1 + $0x20] ss:$2 sm:$0xff] %v786_v27 }
  0x4e   :  { %v746_v23 = vrot.slane %v1848_v47, 2  ;;  %v747_v9 = vrot.slane %v1850_v29, 2  ;;  %840 = vst [vmem:[#allocation1 + $0x21] ss:$2 sm:$0xff] %v787_v25  ;;  %v67_v44 = vunpack.c.l.bf16 %v19_v58  ;;  %v68_v36 = vunpack.c.l.bf16 %v20_v42 }
  0x4f   :  { %842 = vst [vmem:[#allocation1 + $0x30] ss:$2 sm:$0xff] %v788_v12  ;;  %v69_v43 = vunpack.c.l.bf16 %v21_v37  ;;  %v70_v51 = vunpack.c.l.bf16 %v22_v28  ;;  %v71_v26 = vunpack.c.l.bf16 %v23_v11  ;;  %v72_v53 = vunpack.c.l.bf16 %v24_v54 }
  0x50   :  { %v748_v35 = vrot.slane %v1852_v50, 2  ;;  %v749_v19 = vrot.slane %v1854_v45, 2  ;;  %844 = vst [vmem:[#allocation1 + $0x31] ss:$2 sm:$0xff] %v789_v33  ;;  %v2224_v41 = vunpack.c.l.bf16 %v1341_v0  ;;  %v2225_v47 = vunpack.c.l.bf16 %v1346_v1 }
  0x51   :  { %v2226_v29 = vunpack.c.l.bf16 %v1351_v2  ;;  %v2227_v58 = vunpack.c.l.bf16 %v1356_v3  ;;  %v2228_v27 = vunpack.c.l.bf16 %v1479_v49  ;;  %v2229_v50 = vunpack.c.l.bf16 %v1518_v8 }
  0x52   :  { %v115_v59 = vadd.f32 %v2224_v41, %v67_v44  ;;  %v116_v61 = vadd.f32 %v2225_v47, %v68_v36  ;;  %v682_v45 = vrot.slane %v1868_v32, 1  ;;  %v683_v0 = vrot.slane %v1870_v13, 1 }
  0x53   :  { %v117_v55 = vadd.f32 %v2226_v29, %v69_v43  ;;  %v118_v42 = vadd.f32 %v2227_v58, %v70_v51  ;;  %v119_v25 = vadd.f32 %v2228_v27, %v71_v26  ;;  %v120_v37 = vadd.f32 %v2229_v50, %v72_v53 }
  0x54   :  { %v794_v28 = vadd.f32 %v746_v23, %v722_v63  ;;  %v151_v11 = vadd.f32 %v116_v61, %v115_v59  ;;  %v795_v1 = vadd.f32 %v747_v9, %v723_v7  ;;  %v684_v54 = vrot.slane %v1883_v46, 1 }
  0x55   :  { %v152_v12 = vadd.f32 %v117_v55, %v116_v61  ;;  %v153_v33 = vadd.f32 %v118_v42, %v117_v55  ;;  %v154_v2 = vadd.f32 %v119_v25, %v118_v42  ;;  %v685_v3 = vrot.slane %v1885_v38, 1  ;;  %v1914_v43 = vld.sshfl [vmem:[#allocation1 + $0x20] sm:$0xff pattern:$0x75316420] }
  0x56   :  { %v796_v44 = vadd.f32 %v748_v35, %v724_v6  ;;  %v175_v49 = vadd.f32 %v151_v11, %v117_v55  ;;  %v797_v36 = vadd.f32 %v749_v19, %v725_v18  ;;  %v730_v53 = vadd.f32 %v682_v45, %v1868_v32  ;;  %853 = vst [vmem:[#allocation1 + $0x20] ss:$2 sm:$0xff] %v794_v28  ;;  %v459_v28 = vld [vmem:[%s2145_s1 + $0x4] sm:$0x7] }
  0x57   :  { %v176_v8 = vadd.f32 %v152_v12, %v118_v42  ;;  %v177_v51 = vadd.f32 %v153_v33, %v119_v25  ;;  %v178_v26 = vadd.f32 %v154_v2, %v120_v37  ;;  %v754_v63 = vrot.slane %v1868_v32, 2  ;;  %v1919_v41 = vld.sshfl [vmem:[#allocation1 + $0x30] sm:$0xff pattern:$0x75316420]  ;;  %854 = vst [vmem:[#allocation1 + $0x21] ss:$2 sm:$0xff] %v795_v1 }
  0x58   :  { %v223_v7 = vrot.slane %v175_v49, 1  ;;  %v295_v23 = vrot.slane %v175_v49, 2  ;;  %v731_v9 = vadd.f32 %v683_v0, %v1870_v13  ;;  %v732_v18 = vadd.f32 %v684_v54, %v1883_v46  ;;  %855 = vst [vmem:[#allocation1 + $0x30] ss:$2 sm:$0xff] %v796_v44 }
  0x59   :  { %v225_v6 = vrot.slane %v177_v51, 1  ;;  %v755_v35 = vrot.slane %v1870_v13, 2  ;;  %v226_v19 = vrot.slane %v178_v26, 1  ;;  %v297_v59 = vrot.slane %v177_v51, 2  ;;  %856 = vst [vmem:[#allocation1 + $0x31] ss:$2 sm:$0xff] %v797_v36 }
  0x5a   :  { %v756_v47 = vrot.slane %v1883_v46, 2  ;;  %v224_v61 = vrot.slane %v176_v8, 1  ;;  %v271_v29 = vadd.f32 %v223_v7, %v175_v49  ;;  %v733_v55 = vadd.f32 %v685_v3, %v1885_v38  ;;  %v458_v13 = vld [vmem:[%s2145_s1] sm:$0x7]  ;;  %v461_v3 = vld [vmem:[%s2145_s1 + $0xc] sm:$0x7] }
  0x5b   :  { %v273_v32 = vadd.f32 %v225_v6, %v177_v51  ;;  %v757_v58 = vrot.slane %v1885_v38, 2  ;;  %v802_v42 = vadd.f32 %v754_v63, %v730_v53  ;;  %v296_v25 = vrot.slane %v176_v8, 2  ;;  %v460_v38 = vld [vmem:[%s2145_s1 + $0x8] sm:$0x7] }
  0x5c   :  { %v272_v27 = vadd.f32 %v224_v61, %v176_v8  ;;  %v343_v50 = vadd.f32 %v295_v23, %v271_v29  ;;  %v803_v45 = vadd.f32 %v755_v35, %v731_v9  ;;  %v274_v0 = vadd.f32 %v226_v19, %v178_v26 }
  0x5d   :  { %v345_v37 = vadd.f32 %v297_v59, %v273_v32  ;;  %v298_v46 = vrot.slane %v178_v26, 2  ;;  %v804_v11 = vadd.f32 %v756_v47, %v732_v18  ;;  %v231_v1 = vrot.slane %v1546_v52, 1  ;;  %v462_v26 = vld [vmem:[%s2145_s1 + $0x10] sm:$0x7] }
  0x5e   :  { %391 = vst [vmem:[#allocation1] ss:$2 sm:$0xff] %v343_v50  ;;  %v805_v12 = vadd.f32 %v757_v58, %v733_v55  ;;  %v859_v33 = vld.sshfl [vmem:[#allocation1 + $0x20] sm:$0xff pattern:$0x75316420]  ;;  %v232_v2 = vrot.slane %v1548_v30, 1  ;;  %v344_v49 = vadd.f32 %v296_v25, %v272_v27  ;;  %v506_v53 = vunpack.c.l.bf16 %v458_v13 }
  0x5f   :  { %395 = vst [vmem:[#allocation1 + $0x10] ss:$2 sm:$0xff] %v345_v37  ;;  %v233_v54 = vrot.slane %v1550_v31, 1  ;;  %v891_v44 = vpack.c.bf16 %v859_v33, %v859_v33  ;;  %v234_v36 = vrot.slane %v1552_v60, 1  ;;  %v346_v51 = vadd.f32 %v298_v46, %v274_v0  ;;  %v476_v0 = vld [vmem:[%s2145_s1 + $0x48] sm:$0x7] }
  0x60   :  { %865 = vst [vmem:[#allocation1 + $0x20] ss:$2 sm:$0xff] %v802_v42  ;;  %v860_v8 = vld.sshfl [vmem:[#allocation1 + $0x30] sm:$0xff pattern:$0x75316420]  ;;  %v507_v63 = vunpack.c.l.bf16 %v459_v28  ;;  %v241_v9 = vrot.slane %v1560_v10, 1  ;;  %v508_v6 = vunpack.c.l.bf16 %v460_v38  ;;  %v509_v18 = vunpack.c.l.bf16 %v461_v3 }
  0x61   :  { %866 = vst [vmem:[#allocation1 + $0x21] ss:$2 sm:$0xff] %v803_v45  ;;  %v892_v7 = vpack.c.bf16 %v860_v8, %v860_v8  ;;  %v945_v23 = vunpack.c.l.b16 %v891_v44  ;;  %v279_v35 = vadd.f32 %v231_v1, %v1546_v52  ;;  %v887_v59 = vpack.c.bf16 %v1914_v43, %v1914_v43  ;;  %v463_v43 = vld [vmem:[%s2145_s1 + $0x14] sm:$0x7] }
  0x62   :  { %867 = vst [vmem:[#allocation1 + $0x30] ss:$2 sm:$0xff] %v804_v11  ;;  %v888_v47 = vpack.c.bf16 %v1919_v41, %v1919_v41  ;;  %v303_v32 = vrot.slane %v1546_v52, 2  ;;  %v281_v61 = vadd.f32 %v233_v54, %v1550_v31  ;;  %v510_v29 = vunpack.c.l.bf16 %v462_v26  ;;  %v479_v11 = vld [vmem:[%s2145_s1 + $0x54] sm:$0x7] }
  0x63   :  { %868 = vst [vmem:[#allocation1 + $0x31] ss:$2 sm:$0xff] %v805_v12  ;;  %v946_v19 = vunpack.c.l.b16 %v892_v7  ;;  %v280_v55 = vadd.f32 %v232_v2, %v1548_v30  ;;  %v304_v58 = vrot.slane %v1548_v30, 2  ;;  %v305_v42 = vrot.slane %v1550_v31, 2 }
  0x64   :  { %393 = vst [vmem:[#allocation1 + $0x1] ss:$2 sm:$0xff] %v344_v49  ;;  %v2230_v27 = vunpack.c.l.bf16 %v1616_v15  ;;  %v2231_v52 = vunpack.c.l.bf16 %v1621_v17  ;;  %v242_v37 = vrot.slane %v1562_v56, 1  ;;  %v282_v13 = vadd.f32 %v234_v36, %v1552_v60  ;;  %v477_v15 = vld [vmem:[%s2145_s1 + $0x4c] sm:$0x7]  ;;  %v2236_v49 = vld [vmem:[#allocation6_spill] sm:$0xff] }
  0x65   :  { %397 = vst [vmem:[#allocation1 + $0x11] ss:$2 sm:$0xff] %v346_v51  ;;  %v954_v50 = vpack.c.b16 %v946_v19, %v945_v23  ;;  %v306_v30 = vrot.slane %v1552_v60, 2  ;;  %v2232_v45 = vunpack.c.l.bf16 %v1626_v16  ;;  %v2233_v17 = vunpack.c.l.bf16 %v1631_v40  ;;  %v478_v16 = vld [vmem:[%s2145_s1 + $0x50] sm:$0x7] }
  0x66   :  { %v554_v41 = vadd.f32 %v2230_v27, %v506_v53  ;;  %v555_v25 = vadd.f32 %v2231_v52, %v507_v63  ;;  %v941_v28 = vunpack.c.l.b16 %v887_v59  ;;  %v942_v38 = vunpack.c.l.b16 %v888_v47  ;;  %v2235_v40 = vld [vmem:[#allocation5_spill] sm:$0xff]  ;;  %v480_v51 = vld [vmem:[%s2145_s1 + $0x58] sm:$0x7] }
  0x67   :  { %v556_v31 = vadd.f32 %v2232_v45, %v508_v6  ;;  %v557_v46 = vadd.f32 %v2233_v17, %v509_v18  ;;  %963 = vrot.lane.b32.xlu0 %v954_v50, %s1310_s16  ;;  %v351_v60 = vadd.f32 %v303_v32, %v279_v35  ;;  %v511_v1 = vunpack.c.l.bf16 %v463_v43  ;;  %v2239_v52 = vld [vmem:[#allocation9_spill] sm:$0xff]  ;;  %v2243_v17 = vld [vmem:[#allocation12_spill] sm:$0xff] }
  0x68   :  { %v2234_v12 = vunpack.c.l.bf16 %v1636_v34  ;;  %v239_v2 = vrot.slane %v2235_v40, 1  ;;  %v352_v54 = vadd.f32 %v304_v58, %v280_v55  ;;  %v289_v3 = vadd.f32 %v241_v9, %v1560_v10  ;;  %v2237_v9 = vld [vmem:[#allocation16_spill] sm:$0xff] }
  0x69   :  { %v590_v44 = vadd.f32 %v555_v25, %v554_v41  ;;  %v240_v36 = vrot.slane %v2236_v49, 1  ;;  %v353_v8 = vadd.f32 %v305_v42, %v281_v61  ;;  %v524_v26 = vunpack.c.l.bf16 %v476_v0  ;;  %v481_v41 = vld [vmem:[%s2145_s1 + $0x5c] sm:$0x7] }
  0x6a   :  { %v558_v33 = vadd.f32 %v2234_v12, %v510_v29  ;;  %v525_v53 = vunpack.c.l.bf16 %v477_v15  ;;  %v591_v63 = vadd.f32 %v556_v31, %v555_v25  ;;  %v354_v7 = vadd.f32 %v306_v30, %v282_v13  ;;  %v2241_v13 = vld [vmem:[#allocation11_spill] sm:$0xff] }
  0x6b   :  { %v1991_v23 = vld.sshfl [vmem:[#allocation1] sm:$0xff pattern:$0x75316420]  ;;  %v526_v34 = vunpack.c.l.bf16 %v478_v16  ;;  %v527_v6 = vunpack.c.l.bf16 %v479_v11  ;;  %v592_v18 = vadd.f32 %v557_v46, %v556_v31  ;;  %v952_v35 = vpack.c.b16 %v942_v38, %v941_v28 }
  0x6c   :  { %v1993_v19 = vld.sshfl [vmem:[#allocation1 + $0x10] sm:$0xff pattern:$0x75316420]  ;;  %410 = vst [vmem:[#allocation1] ss:$2 sm:$0xff] %v351_v60  ;;  %v2238_v59 = vunpack.c.l.bf16 %v2237_v9  ;;  %v593_v32 = vadd.f32 %v558_v33, %v557_v46  ;;  %v287_v61 = vadd.f32 %v239_v2, %v2235_v40  ;;  %v311_v29 = vrot.slane %v2235_v40, 2 }
  0x6d   :  { %411 = vst [vmem:[#allocation1 + $0x1] ss:$2 sm:$0xff] %v352_v54  ;;  %v528_v55 = vunpack.c.l.bf16 %v480_v51  ;;  %v614_v58 = vadd.f32 %v590_v44, %v556_v31  ;;  %v288_v42 = vadd.f32 %v240_v36, %v2236_v49  ;;  %v312_v43 = vrot.slane %v2236_v49, 2  ;;  %v2245_v60 = vld [vmem:[#allocation13_spill] sm:$0xff]  ;;  %v2247_v2 = vld [vmem:[#allocation14_spill] sm:$0xff] }
  0x6e   :  { %v559_v47 = vadd.f32 %v2238_v59, %v511_v1  ;;  %412 = vst [vmem:[#allocation1 + $0x10] ss:$2 sm:$0xff] %v353_v8  ;;  %v313_v27 = vrot.slane %v1560_v10, 2  ;;  %v2240_v25 = vunpack.c.l.bf16 %v2239_v52  ;;  %v2242_v30 = vunpack.c.l.bf16 %v2241_v13 }
  0x6f   :  { %v615_v0 = vadd.f32 %v591_v63, %v557_v46  ;;  %413 = vst [vmem:[#allocation1 + $0x11] ss:$2 sm:$0xff] %v354_v7  ;;  %v290_v31 = vadd.f32 %v242_v37, %v1562_v56  ;;  %v314_v15 = vrot.slane %v1562_v56, 2  ;;  %v2244_v28 = vunpack.c.l.bf16 %v2243_v17  ;;  %959 = vrot.lane.b32.xlu0 %v952_v35, %s1310_s16  ;;  %v2249_v7 = vld [vmem:[#allocation17_spill] sm:$0xff] }
  0x70   :  { %v566_v50 = vadd.f32 %v524_v26, %v2240_v25  ;;  %v567_v45 = vadd.f32 %v525_v53, %v2242_v30  ;;  %v616_v10 = vadd.f32 %v592_v18, %v558_v33  ;;  %v2246_v16 = vunpack.c.l.bf16 %v2245_v60  ;;  %v2261_v60 = vld [vmem:[#allocation20_spill] sm:$0xff] }
  0x71   :  { %v568_v38 = vadd.f32 %v526_v34, %v2244_v28  ;;  %v617_v1 = vadd.f32 %v593_v32, %v559_v47  ;;  %v359_v12 = vadd.f32 %v311_v29, %v287_v61  ;;  %v529_v40 = vunpack.c.l.bf16 %v481_v41  ;;  %v2251_v47 = vld [vmem:[#allocation18_spill] sm:$0xff] }
  0x72   :  { %v569_v11 = vadd.f32 %v527_v6, %v2246_v16  ;;  %v2248_v54 = vunpack.c.l.bf16 %v2247_v2  ;;  %v360_v44 = vadd.f32 %v312_v43, %v288_v42  ;;  %v662_v49 = vrot.slane %v614_v58, 1  ;;  %v2254_v43 = vld [vmem:[#allocation19_spill] sm:$0xff] }
  0x73   :  { %v598_v37 = vadd.f32 %v567_v45, %v566_v50  ;;  %v361_v36 = vadd.f32 %v313_v27, %v289_v3  ;;  %v663_v56 = vrot.slane %v615_v0, 1  ;;  %v599_v8 = vadd.f32 %v568_v38, %v567_v45 }
  0x74   :  { %v570_v46 = vadd.f32 %v528_v55, %v2248_v54  ;;  %v664_v51 = vrot.slane %v616_v10, 1  ;;  %v362_v26 = vadd.f32 %v314_v15, %v290_v31  ;;  %v2018_v33 = vld.sshfl [vmem:[#allocation1] sm:$0xff pattern:$0x75316420]  ;;  %v600_v53 = vadd.f32 %v569_v11, %v568_v38 }
  0x75   :  { %v665_v63 = vrot.slane %v617_v1, 1  ;;  %422 = vst [vmem:[#allocation1] ss:$2 sm:$0xff] %v359_v12  ;;  %v2250_v34 = vunpack.c.l.bf16 %v2249_v7  ;;  %v710_v9 = vadd.f32 %v662_v49, %v614_v58  ;;  %v734_v59 = vrot.slane %v614_v58, 2 }
  0x76   :  { %v601_v18 = vadd.f32 %v570_v46, %v569_v11  ;;  %v2022_v35 = vld.sshfl [vmem:[#allocation1 + $0x10] sm:$0xff pattern:$0x75316420]  ;;  %423 = vst [vmem:[#allocation1 + $0x1] ss:$2 sm:$0xff] %v360_v44  ;;  %v2252_v3 = vunpack.c.l.bf16 %v2251_v47  ;;  %v2253_v32 = vunpack.c.l.bf16 %v1746_v14  ;;  %v622_v29 = vadd.f32 %v598_v37, %v568_v38 }
  0x77   :  { %v571_v6 = vadd.f32 %v529_v40, %v2250_v34  ;;  %424 = vst [vmem:[#allocation1 + $0x10] ss:$2 sm:$0xff] %v361_v36  ;;  %v711_v55 = vadd.f32 %v663_v56, %v615_v0  ;;  %v735_v42 = vrot.slane %v615_v0, 2  ;;  %v2255_v27 = vunpack.c.l.bf16 %v2254_v43 }
  0x78   :  { %v578_v61 = vadd.f32 %v2253_v32, %v2252_v3  ;;  %v2256_v41 = vunpack.c.l.bf16 %v1751_v22  ;;  %v623_v25 = vadd.f32 %v599_v8, %v569_v11  ;;  %v712_v50 = vadd.f32 %v664_v51, %v616_v10  ;;  %425 = vst [vmem:[#allocation1 + $0x11] ss:$2 sm:$0xff] %v362_v26 }
  0x79   :  { %v736_v13 = vrot.slane %v616_v10, 2  ;;  %v2257_v58 = vunpack.c.l.bf16 %v1720_v57  ;;  %v2258_v30 = vunpack.c.l.bf16 %v1756_v62  ;;  %v624_v14 = vadd.f32 %v600_v53, %v570_v46 }
  0x7a   :  { %v579_v52 = vadd.f32 %v2256_v41, %v2255_v27  ;;  %v713_v31 = vadd.f32 %v665_v63, %v617_v1  ;;  %v737_v15 = vrot.slane %v617_v1, 2  ;;  %v2259_v17 = vunpack.c.l.bf16 %v1727_v48 }
  0x7b   :  { %v580_v45 = vadd.f32 %v2258_v30, %v2257_v58  ;;  %v2260_v0 = vunpack.c.l.bf16 %v1780_v39  ;;  %v625_v38 = vadd.f32 %v601_v18, %v571_v6  ;;  %v782_v22 = vadd.f32 %v734_v59, %v710_v9 }
  0x7c   :  { %v2262_v16 = vunpack.c.l.bf16 %v2261_v60  ;;  %v2263_v10 = vunpack.c.l.bf16 %v1785_v24  ;;  %v670_v12 = vrot.slane %v622_v29, 1  ;;  %v783_v57 = vadd.f32 %v735_v42, %v711_v55 }
  0x7d   :  { %v581_v28 = vadd.f32 %v2260_v0, %v2259_v17  ;;  %v606_v40 = vadd.f32 %v579_v52, %v578_v61  ;;  %v671_v62 = vrot.slane %v623_v25, 1  ;;  %v784_v2 = vadd.f32 %v736_v13, %v712_v50  ;;  %v2044_v46 = vld.sshfl [vmem:[#allocation1] sm:$0xff pattern:$0x75316420] }
  0x7e   :  { %v582_v11 = vadd.f32 %v2263_v10, %v2262_v16  ;;  %v607_v54 = vadd.f32 %v580_v45, %v579_v52  ;;  %v672_v1 = vrot.slane %v624_v14, 1  ;;  %v785_v48 = vadd.f32 %v737_v15, %v713_v31  ;;  %830 = vst [vmem:[#allocation1] ss:$2 sm:$0xff] %v782_v22  ;;  %v871_v13 = vld.sshfl [vmem:[#allocation1 + $0x20] sm:$0xff pattern:$0x75316420] }
  0x7f   :  { %v608_v44 = vadd.f32 %v581_v28, %v580_v45  ;;  %v673_v39 = vrot.slane %v625_v38, 1  ;;  %v2264_v49 = vunpack.c.l.bf16 %v1737_v20  ;;  %v2050_v56 = vld.sshfl [vmem:[#allocation1 + $0x10] sm:$0xff pattern:$0x75316420]  ;;  %v718_v8 = vadd.f32 %v670_v12, %v622_v29  ;;  %832 = vst [vmem:[#allocation1 + $0x1] ss:$2 sm:$0xff] %v783_v57 }
  0x80   :  { %v609_v24 = vadd.f32 %v582_v11, %v581_v28  ;;  %v742_v51 = vrot.slane %v622_v29, 2  ;;  %v630_v26 = vadd.f32 %v606_v40, %v580_v45  ;;  %v719_v53 = vadd.f32 %v671_v62, %v623_v25  ;;  %834 = vst [vmem:[#allocation1 + $0x10] ss:$2 sm:$0xff] %v784_v2  ;;  %v872_v45 = vld.sshfl [vmem:[#allocation1 + $0x30] sm:$0xff pattern:$0x75316420] }
  0x81   :  { %v583_v36 = vadd.f32 %v547_v5, %v2264_v49  ;;  %v743_v63 = vrot.slane %v623_v25, 2  ;;  %v631_v7 = vadd.f32 %v607_v54, %v581_v28  ;;  %v720_v34 = vadd.f32 %v672_v1, %v624_v14  ;;  %836 = vst [vmem:[#allocation1 + $0x11] ss:$2 sm:$0xff] %v785_v48  ;;  %v1218_v0 = vld [vmem:[%s2146_s2] sm:$0xf] }
  0x82   :  { %v744_v6 = vrot.slane %v624_v14, 2  ;;  %v632_v18 = vadd.f32 %v608_v44, %v582_v11  ;;  %v721_v9 = vadd.f32 %v673_v39, %v625_v38  ;;  %v745_v20 = vrot.slane %v625_v38, 2  ;;  %v1226_v28 = vld [vmem:[%s2146_s2] sm:$0x30] }
  0x83   :  { %v633_v59 = vadd.f32 %v609_v24, %v583_v36  ;;  %v790_v47 = vadd.f32 %v742_v51, %v718_v8  ;;  %v678_v5 = vrot.slane %v630_v26, 1  ;;  %v791_v3 = vadd.f32 %v743_v63, %v719_v53 }
  0x84   :  { %v679_v32 = vrot.slane %v631_v7, 1  ;;  %v792_v61 = vadd.f32 %v744_v6, %v720_v34  ;;  %v680_v55 = vrot.slane %v632_v18, 1  ;;  %v793_v29 = vadd.f32 %v745_v20, %v721_v9  ;;  %v2267_v20 = vld [vmem:[#allocation15_spill] sm:$0xff] }
  0x85   :  { %v681_v43 = vrot.slane %v633_v59, 1  ;;  %v726_v27 = vadd.f32 %v678_v5, %v630_v26  ;;  %v750_v41 = vrot.slane %v630_v26, 2  ;;  %v751_v50 = vrot.slane %v631_v7, 2 }
  0x86   :  { %v845_v42 = vld.sshfl [vmem:[#allocation1] sm:$0xff pattern:$0x75316420]  ;;  %v727_v25 = vadd.f32 %v679_v32, %v631_v7  ;;  %v728_v58 = vadd.f32 %v680_v55, %v632_v18  ;;  %v752_v30 = vrot.slane %v632_v18, 2  ;;  %v895_v14 = vpack.c.bf16 %v871_v13, %v871_v13  ;;  %v2266_v18 = vld [vmem:[#allocation10_spill] sm:$0xff] }
  0x87   :  { %849 = vst [vmem:[#allocation1] ss:$2 sm:$0xff] %v790_v47  ;;  %v729_v31 = vadd.f32 %v681_v43, %v633_v59  ;;  %v753_v15 = vrot.slane %v633_v59, 2  ;;  %v896_v17 = vpack.c.bf16 %v872_v45, %v872_v45  ;;  %v798_v38 = vadd.f32 %v750_v41, %v726_v27  ;;  %v2268_v55 = vld [vmem:[#allocation7_spill] sm:$0xff] }
  0x88   :  { %v846_v52 = vld.sshfl [vmem:[#allocation1 + $0x10] sm:$0xff pattern:$0x75316420]  ;;  %850 = vst [vmem:[#allocation1 + $0x1] ss:$2 sm:$0xff] %v791_v3  ;;  %v949_v22 = vunpack.c.l.b16 %v895_v14  ;;  %v1219_v60 = vor.u32 %v1226_v28, %v1218_v0  ;;  %v799_v16 = vadd.f32 %v751_v50, %v727_v25  ;;  %v800_v11 = vadd.f32 %v752_v30, %v728_v58 }
  0x89   :  { %851 = vst [vmem:[#allocation1 + $0x10] ss:$2 sm:$0xff] %v792_v61  ;;  %v950_v10 = vunpack.c.l.b16 %v896_v17  ;;  %v801_v57 = vadd.f32 %v753_v15, %v729_v31  ;;  %v885_v26 = vpack.c.bf16 %v845_v42, %v845_v42  ;;  %v886_v53 = vpack.c.bf16 %v846_v52, %v846_v52  ;;  %v2269_v42 = vld [vmem:[#allocation8_spill] sm:$0xff] }
  0x8a   :  { %852 = vst [vmem:[#allocation1 + $0x11] ss:$2 sm:$0xff] %v793_v29  ;;  %v1014_v12 = vsel %vm1012_vm0, %v1219_v60, 0  ;;  %v452_v9 = vpack.c.bf16 %v2266_v18, %v2266_v18  ;;  %v453_v59 = vpack.c.bf16 %v2267_v20, %v2267_v20  ;;  %v448_v29 = vpack.c.bf16 %v2268_v55, %v2268_v55 }
  0x8b   :  { %v956_v62 = vpack.c.b16 %v950_v10, %v949_v22  ;;  %1228 = vmatpush.bf16.msra.mxu2 %v1014_v12  ;;  %1227 = vmatpush.bf16.msra.mxu1 %v1014_v12  ;;  %v939_v7 = vunpack.c.l.b16 %v885_v26  ;;  %v940_v34 = vunpack.c.l.b16 %v886_v53  ;;  %v449_v43 = vpack.c.bf16 %v2269_v42, %v2269_v42 }
  0x8c   :  { %1023 = vmatpush.bf16.msra.mxu0 %v1014_v12  ;;  %1229 = vmatpush.bf16.msra.mxu3 %v1014_v12  ;;  %v915_v47 = vunpack.c.l.b16 %v452_v9  ;;  %v916_v5 = vunpack.c.l.b16 %v453_v59  ;;  %v911_v27 = vunpack.c.l.b16 %v448_v29  ;;  %v456_v58 = vpack.c.bf16 %v1863_v21, %v1863_v21 }
  0x8d   :  { %967 = vrot.lane.b32.xlu2 %v956_v62, %s1310_s16  ;;  %v951_v6 = vpack.c.b16 %v940_v34, %v939_v7  ;;  %v912_v41 = vunpack.c.l.b16 %v449_v43  ;;  %v457_v30 = vpack.c.bf16 %v1881_v4, %v1881_v4  ;;  %v450_v17 = vpack.c.bf16 %v2018_v33, %v2018_v33 }
  0x8e   :  { %v924_v3 = vpack.c.b16 %v916_v5, %v915_v47  ;;  %v919_v45 = vunpack.c.l.b16 %v456_v58  ;;  %v451_v0 = vpack.c.bf16 %v2022_v35, %v2022_v35  ;;  %v454_v4 = vpack.c.bf16 %v2044_v46, %v2044_v46 }
  0x8f   :  { %v857_v40 = vld.sshfl [vmem:[#allocation1] sm:$0xff pattern:$0x75316420]  ;;  %v922_v25 = vpack.c.b16 %v912_v41, %v911_v27  ;;  %v920_v14 = vunpack.c.l.b16 %v457_v30  ;;  %v913_v28 = vunpack.c.l.b16 %v450_v17  ;;  %v446_v33 = vpack.c.bf16 %v1991_v23, %v1991_v23 }
  0x90   :  { %861 = vst [vmem:[#allocation1] ss:$2 sm:$0xff] %v798_v38  ;;  %v889_v2 = vpack.c.bf16 %v857_v40, %v857_v40  ;;  %v914_v38 = vunpack.c.l.b16 %v451_v0  ;;  %v917_v10 = vunpack.c.l.b16 %v454_v4  ;;  %v447_v35 = vpack.c.bf16 %v1993_v19, %v1993_v19  ;;  %v1233_v23 = vld [vmem:[%s2147_s3] ss:$0 sm:$0xff]  ;;  %s1312_s3 = smov [#allocation2]  }
  0x91   :  { %v858_v54 = vld.sshfl [vmem:[#allocation1 + $0x10] sm:$0xff pattern:$0x75316420]  ;;  %862 = vst [vmem:[#allocation1 + $0x1] ss:$2 sm:$0xff] %v799_v16  ;;  %v926_v31 = vpack.c.b16 %v920_v14, %v919_v45  ;;  %v455_v16 = vpack.c.bf16 %v2050_v56, %v2050_v56  ;;  %v909_v40 = vunpack.c.l.b16 %v446_v33  ;;  %s1205_s28 = sshll.u32 %s1312_s3, 4  ;;  %s1206_s28 = int_to_ptr.vmem [resolvable:$true] %s1205_s28 }
  0x92   :  { %863 = vst [vmem:[#allocation1 + $0x10] ss:$2 sm:$0xff] %v800_v11  ;;  %v890_v1 = vpack.c.bf16 %v858_v54, %v858_v54  ;;  %v943_v48 = vunpack.c.l.b16 %v889_v2  ;;  %v923_v21 = vpack.c.b16 %v914_v38, %v913_v28  ;;  %v910_v62 = vunpack.c.l.b16 %v447_v35 }
  0x93   :  { %864 = vst [vmem:[#allocation1 + $0x11] ss:$2 sm:$0xff] %v801_v57  ;;  %v918_v11 = vunpack.c.l.b16 %v455_v16 }
  0x94   :  { %v944_v44 = vunpack.c.l.b16 %v890_v1  ;;  %v921_v46 = vpack.c.b16 %v910_v62, %v909_v40 }
  0x95   :  { %v925_v12 = vpack.c.b16 %v918_v11, %v917_v10 }
  0x96   :  { %v953_v39 = vpack.c.b16 %v944_v44, %v943_v48 }
  0x98   :  { %v869_v49 = vld.sshfl [vmem:[#allocation1] sm:$0xff pattern:$0x75316420]  ;;  %961 = vrot.lane.b32.xlu2 %v953_v39, %s1310_s16 }
  0x99   :  { %v893_v37 = vpack.c.bf16 %v869_v49, %v869_v49 }
  0x9a   :  { %v870_v36 = vld.sshfl [vmem:[#allocation1 + $0x10] sm:$0xff pattern:$0x75316420] }
  0x9b   :  { %v894_v24 = vpack.c.bf16 %v870_v36, %v870_v36  ;;  %v947_v8 = vunpack.c.l.b16 %v893_v37 }
  0x9d   :  { %v948_v51 = vunpack.c.l.b16 %v894_v24 }
  0x9f   :  { %v955_v63 = vpack.c.b16 %v948_v51, %v947_v8 }
  0xa1   :  { %965 = vrot.lane.b32.xlu1 %v955_v63, %s1310_s16 }
  0xa9   :  { %957 = vrot.lane.b32.xlu1 %v951_v6, %s1310_s16 }
  0xd9   :  { %v964_v32 = vpop.permute.xlu0 %963 }
  0xda   :  { %v981_v61 = vsel %vm969_vm1, %v924_v3, %v964_v32 }
  0xdb   :  { %1223 = vmatmul.msk.bf16.vlgmr.msra.gmra.mxu2 %vm999_vm2, %v981_v61 }
  0xe1   :  { %v960_v52 = vpop.permute.xlu0 %959 }
  0xe2   :  { %v975_v50 = vsel %vm969_vm1, %v922_v25, %v960_v52 }
  0xe3   :  { %1221 = vmatmul.msk.bf16.vlgmr.msra.gmra.mxu1 %vm999_vm2, %v975_v50 }
  0xe7   :  { %v968_v13 = vpop.permute.xlu2 %967 }
  0xe8   :  { %v987_v15 = vsel %vm969_vm1, %v926_v31, %v968_v13 }
  0xe9   :  { %1225 = vmatmul.msk.bf16.vlgmr.msra.gmra.mxu3 %vm999_vm2, %v987_v15 }
  0xf2   :  { %v962_v22 = vpop.permute.xlu2 %961 }
  0xf3   :  { %v978_v60 = vsel %vm969_vm1, %v923_v21, %v962_v22 }
  0xf4   :  { %1222 = vmatmul.msk.bf16.gmra.mxu1 %vm999_vm2, %v978_v60 }
 0x113   :  { %v966_v57 = vpop.permute.xlu1 %965 }
 0x114   :  { %v984_v2 = vsel %vm969_vm1, %v925_v12, %v966_v57 }
 0x115   :  { %1224 = vmatmul.msk.bf16.gmra.mxu2 %vm999_vm2, %v984_v2 }
 0x11b   :  { %v958_v54 = vpop.permute.xlu1 %957 }
 0x11c   :  { %v972_v56 = vsel %vm969_vm1, %v921_v46, %v958_v54 }
 0x11d   :  { %1220 = vmatmul.msk.bf16.vlgmr.msra.gmra.mxu0 %vm999_vm2, %v972_v56 }
 0x15e   :  { %v1040_v44 = vpop.f32.mrf.mxu2 }
 0x15f   :  { %v1041_v39 = vadd.f32 %v1233_v23, %v1040_v44 }
 0x160   :  { %v1030_v1 = vpop.f32.mrf.mxu1 }
 0x161   :  { %v1031_v63 = vadd.f32 %v1233_v23, %v1030_v1 }
 0x166   :  { %v1042_v49 = vpop.f32.mrf.mxu2 }
 0x167   :  { %v1043_v37 = vadd.f32 %v1233_v23, %v1042_v49 }
 0x168   :  { %v1032_v19 = vpop.f32.mrf.mxu1 }
 0x169   :  { %v1033_v48 = vadd.f32 %v1233_v23, %v1032_v19 }
 0x16b   :  { %1061 = vmax.xlane.f32.xlu2 %v1033_v48 }
 0x16c   :  { %v1050_v36 = vpop.f32.mrf.mxu3 }
 0x16d   :  { %v2101_v24 = vadd.f32 %v1233_v23, %v1050_v36 }
 0x171   :  { %v1035_v34 = vpop.f32.mrf.mxu1 }
 0x172   :  { %v1036_v18 = vadd.f32 %v1233_v23, %v1035_v34 }
 0x173   :  { %1067 = vmax.xlane.f32.xlu2 %v1041_v39 }
 0x174   :  { %v1052_v5 = vpop.f32.mrf.mxu3 }
 0x175   :  { %v2107_v3 = vadd.f32 %v1233_v23, %v1052_v5 }
 0x179   :  { %v1037_v20 = vpop.f32.mrf.mxu1 }
 0x17a   :  { %v2104_v47 = vadd.f32 %v1233_v23, %v1037_v20 }
 0x17b   :  { %1069 = vmax.xlane.f32.xlu2 %v1043_v37 }
 0x183   :  { %1075 = vmax.xlane.f32.xlu2 %v2101_v24 }
 0x198   :  { %v1045_v26 = vpop.f32.mrf.mxu2 }
 0x199   :  { %v1046_v59 = vadd.f32 %v1233_v23, %v1045_v26 }
 0x19a   :  { %v1025_v8 = vpop.f32.mrf.mxu0 }
 0x19b   :  { %v1026_v51 = vadd.f32 %v1233_v23, %v1025_v8 }
 0x19d   :  { %1055 = vmax.xlane.f32.xlu0 %v1026_v51 }
 0x1a0   :  { %v1047_v6 = vpop.f32.mrf.mxu2 }
 0x1a1   :  { %v1048_v9 = vadd.f32 %v1233_v23, %v1047_v6 }
 0x1a2   :  { %v1027_v53 = vpop.f32.mrf.mxu0 }
 0x1a3   :  { %v1028_v7 = vadd.f32 %v1233_v23, %v1027_v53 }
 0x1a5   :  { %1057 = vmax.xlane.f32.xlu1 %v1028_v7  ;;  %1059 = vmax.xlane.f32.xlu0 %v1031_v63 }
 0x1ad   :  { %1063 = vmax.xlane.f32.xlu1 %v1036_v18  ;;  %1073 = vmax.xlane.f32.xlu0 %v1048_v9 }
 0x1b5   :  { %1065 = vmax.xlane.f32.xlu0 %v2104_v47  ;;  %1071 = vmax.xlane.f32.xlu1 %v1046_v59 }
 0x1bd   :  { %1077 = vmax.xlane.f32.xlu1 %v2107_v3 }
 0x1de   :  { %v1062_v32 = vpop.xlane.xlu2 %1061 }
 0x1df   :  { %v1082_v52 = vsub.f32 %v1033_v48, %v1062_v32 }
 0x1e1   :  { %v1097_v58 = vmul.f32 1.442695, %v1082_v52 }
 0x1e6   :  { %v1068_v61 = vpop.xlane.xlu2 %1067 }
 0x1e7   :  { %v1085_v55 = vsub.f32 %v1041_v39, %v1068_v61 }
 0x1e9   :  { %v1103_v29 = vmul.f32 1.442695, %v1085_v55  ;;  %v1311_v55 = vmov 48.0  }
 0x1eb   :  { %1234 = vpow2.f32 %v1103_v29 }
 0x1ee   :  { %v1070_v25 = vpop.xlane.xlu2 %1069 }
 0x1ef   :  { %v1086_v31 = vsub.f32 %v1043_v37, %v1070_v25 }
 0x1f1   :  { %v2110_v42 = vpop.eup %1234  ;;  %v1105_v17 = vmul.f32 1.442695, %v1086_v31 }
 0x1f2   :  { %1127 = vadd.xlane.f32.xlu1 %v2110_v42 }
 0x1f6   :  { %v1076_v28 = vpop.xlane.xlu2 %1075 }
 0x1f7   :  { %v1089_v16 = vsub.f32 %v2101_v24, %v1076_v28 }
 0x1f9   :  { %v1111_v33 = vmul.f32 1.442695, %v1089_v16 }
 0x210   :  { %v1056_v43 = vpop.xlane.xlu0 %1055 }
 0x211   :  { %v1079_v27 = vsub.f32 %v1026_v51, %v1056_v43 }
 0x213   :  { %v1091_v41 = vmul.f32 1.442695, %v1079_v27 }
 0x215   :  { %1236 = vpow2.f32 %v1091_v41 }
 0x216   :  { %1238 = vpow2.f32 %v1097_v58 }
 0x218   :  { %v1058_v50 = vpop.xlane.xlu1 %1057  ;;  %v1060_v13 = vpop.xlane.xlu0 %1059 }
 0x219   :  { %v1081_v30 = vsub.f32 %v1031_v63, %v1060_v13  ;;  %v1080_v15 = vsub.f32 %v1028_v7, %v1058_v50 }
 0x21b   :  { %v2113_v45 = vpop.eup %1236  ;;  %v1095_v14 = vmul.f32 1.442695, %v1081_v30  ;;  %v1093_v21 = vmul.f32 1.442695, %v1080_v15 }
 0x21c   :  { %1115 = vadd.xlane.f32.xlu2 %v2113_v45  ;;  %v2116_v60 = vpop.eup %1238 }
 0x21d   :  { %1240 = vpow2.f32 %v1095_v14 }
 0x21e   :  { %1242 = vpow2.f32 %v1105_v17 }
 0x220   :  { %v1064_v0 = vpop.xlane.xlu1 %1063  ;;  %v1074_v22 = vpop.xlane.xlu0 %1073 }
 0x221   :  { %v1083_v38 = vsub.f32 %v1036_v18, %v1064_v0  ;;  %v1088_v11 = vsub.f32 %v1048_v9, %v1074_v22 }
 0x223   :  { %v1099_v4 = vmul.f32 1.442695, %v1083_v38  ;;  %v2119_v10 = vpop.eup %1240  ;;  %v1109_v57 = vmul.f32 1.442695, %v1088_v11 }
 0x224   :  { %1121 = vadd.xlane.f32.xlu2 %v2116_v60  ;;  %1119 = vadd.xlane.f32.xlu0 %v2119_v10  ;;  %v1243_v12 = vpop.eup %1242 }
 0x225   :  { %1244 = vpow2.f32 %v1099_v4 }
 0x226   :  { %1246 = vpow2.f32 %v1093_v21 }
 0x227   :  { %1248 = vpow2.f32 %v1111_v33 }
 0x228   :  { %v1072_v35 = vpop.xlane.xlu1 %1071  ;;  %v1066_v2 = vpop.xlane.xlu0 %1065  ;;  %1250 = vpow2.f32 %v1109_v57 }
 0x229   :  { %v1087_v40 = vsub.f32 %v1046_v59, %v1072_v35  ;;  %v1084_v56 = vsub.f32 %v2104_v47, %v1066_v2 }
 0x22b   :  { %v2123_v62 = vpop.eup %1244  ;;  %v1107_v46 = vmul.f32 1.442695, %v1087_v40  ;;  %v1101_v48 = vmul.f32 1.442695, %v1084_v56 }
 0x22c   :  { %v1247_v54 = vpop.eup %1246  ;;  %1129 = vadd.xlane.f32.xlu2 %v1243_v12  ;;  %1123 = vadd.xlane.f32.xlu1 %v2123_v62 }
 0x22d   :  { %1117 = vadd.xlane.f32.xlu0 %v1247_v54  ;;  %1252 = vpow2.f32 %v1107_v46  ;;  %v2127_v23 = vpop.eup %1248 }
 0x22e   :  { %v1251_v44 = vpop.eup %1250 }
 0x230   :  { %v1078_v1 = vpop.xlane.xlu1 %1077 }
 0x231   :  { %v1090_v19 = vsub.f32 %v2107_v3, %v1078_v1 }
 0x233   :  { %v1113_v39 = vmul.f32 1.442695, %v1090_v19  ;;  %v1253_v49 = vpop.eup %1252 }
 0x234   :  { %1135 = vadd.xlane.f32.xlu2 %v2127_v23  ;;  %1131 = vadd.xlane.f32.xlu1 %v1253_v49 }
 0x235   :  { %1254 = vpow2.f32 %v1113_v39  ;;  %1133 = vadd.xlane.f32.xlu0 %v1251_v44 }
 0x236   :  { %1256 = vpow2.f32 %v1101_v48 }
 0x23b   :  { %v2131_v37 = vpop.eup %1254 }
 0x23c   :  { %v1257_v36 = vpop.eup %1256  ;;  %1137 = vadd.xlane.f32.xlu1 %v2131_v37 }
 0x23d   :  { %1125 = vadd.xlane.f32.xlu0 %v1257_v36 }
 0x265   :  { %v1128_v8 = vpop.xlane.xlu1 %1127 }
 0x28f   :  { %v1116_v24 = vpop.xlane.xlu2 %1115 }
 0x290   :  { %1258 = vrcp.f32 %v1116_v24 }
 0x296   :  { %v1259_v34 = vpop.eup %1258 }
 0x297   :  { %v1122_v51 = vpop.xlane.xlu2 %1121  ;;  %v1120_v26 = vpop.xlane.xlu0 %1119  ;;  %v1151_v47 = vmul.f32 %v1259_v34, %v2113_v45 }
 0x29f   :  { %v1124_v53 = vpop.xlane.xlu1 %1123  ;;  %v1130_v7 = vpop.xlane.xlu2 %1129 }
 0x2a0   :  { %v1118_v63 = vpop.xlane.xlu0 %1117 }
 0x2a1   :  { %1260 = vrcp.f32 %v1118_v63 }
 0x2a2   :  { %1262 = vrcp.f32 %v1130_v7 }
 0x2a3   :  { %1264 = vrcp.f32 %v1120_v26 }
 0x2a4   :  { %1266 = vrcp.f32 %v1128_v8 }
 0x2a5   :  { %1268 = vrcp.f32 %v1122_v51 }
 0x2a7   :  { %v1261_v6 = vpop.eup %1260  ;;  %v1132_v20 = vpop.xlane.xlu1 %1131 }
 0x2a8   :  { %v1152_v18 = vmul.f32 %v1261_v6, %v1247_v54  ;;  %v1134_v9 = vpop.xlane.xlu0 %1133  ;;  %v1263_v59 = vpop.eup %1262 }
 0x2a9   :  { %1270 = vrcp.f32 %v1134_v9  ;;  %v1265_v5 = vpop.eup %1264  ;;  %v1136_v3 = vpop.xlane.xlu2 %1135  ;;  %v1158_v29 = vmul.f32 %v1263_v59, %v1243_v12 }
 0x2aa   :  { %1272 = vrcp.f32 %v1132_v20  ;;  %v1267_v32 = vpop.eup %1266  ;;  %v1163_v61 = vadd.f32 %v1152_v18, %v1151_v47  ;;  %v1153_v27 = vmul.f32 %v1265_v5, %v2119_v10 }
 0x2ab   :  { %1274 = vrcp.f32 %v1311_v55  ;;  %v1269_v43 = vpop.eup %1268  ;;  %v1157_v52 = vmul.f32 %v1267_v32, %v2110_v42 }
 0x2ac   :  { %1276 = vrcp.f32 %v1124_v53  ;;  %v1164_v50 = vadd.f32 %v1163_v61, %v1153_v27  ;;  %v1154_v31 = vmul.f32 %v1269_v43, %v2116_v60 }
 0x2ad   :  { %1278 = vrcp.f32 %v1136_v3  ;;  %v1174_v30 = vadd.f32 %v1158_v29, %v1157_v52 }
 0x2ae   :  { %v1165_v38 = vadd.f32 %v1164_v50, %v1154_v31 }
 0x2af   :  { %v1271_v41 = vpop.eup %1270  ;;  %v1138_v58 = vpop.xlane.xlu1 %1137 }
 0x2b0   :  { %v1273_v25 = vpop.eup %1272  ;;  %v1126_v13 = vpop.xlane.xlu0 %1125  ;;  %v1160_v17 = vmul.f32 %v1271_v41, %v1251_v44 }
 0x2b1   :  { %v1159_v45 = vmul.f32 %v1273_v25, %v1253_v49  ;;  %1280 = vrcp.f32 %v1126_v13  ;;  %v1275_v14 = vpop.eup %1274 }
 0x2b2   :  { %1282 = vrcp.f32 %v1138_v58  ;;  %v1277_v15 = vpop.eup %1276  ;;  %v1186_v21 = vmul.f32 48.0, %v1275_v14  ;;  %vm1190_vm3 = vweird.f32 %v1275_v14 }
 0x2b3   :  { %v1175_v0 = vadd.f32 %v1174_v30, %v1159_v45  ;;  %v1279_v28 = vpop.eup %1278  ;;  %v1155_v42 = vmul.f32 %v1277_v15, %v2123_v62 }
 0x2b4   :  { %v1161_v16 = vmul.f32 %v1279_v28, %v2127_v23  ;;  %v1187_v60 = vsub.f32 1.0, %v1186_v21 }
 0x2b5   :  { %v1176_v22 = vadd.f32 %v1175_v0, %v1160_v17  ;;  %v1166_v11 = vadd.f32 %v1165_v38, %v1155_v42 }
 0x2b6   :  { %v1188_v54 = vmul.f32 %v1275_v14, %v1187_v60 }
 0x2b7   :  { %v1281_v4 = vpop.eup %1280  ;;  %v1177_v35 = vadd.f32 %v1176_v22, %v1161_v16 }
 0x2b8   :  { %v1283_v10 = vpop.eup %1282  ;;  %v1156_v33 = vmul.f32 %v1281_v4, %v1257_v36  ;;  %v1189_v62 = vadd.f32 %v1275_v14, %v1188_v54 }
 0x2b9   :  { %v1162_v12 = vmul.f32 %v1283_v10, %v2131_v37 }
 0x2ba   :  { %v1167_v57 = vadd.f32 %v1166_v11, %v1156_v33  ;;  %v1191_v36 = vsel %vm1190_vm3, %v1275_v14, %v1189_v62 }
 0x2bb   :  { %v1178_v40 = vadd.f32 %v1177_v35, %v1162_v12 }
 0x2bc   :  { %v1168_v2 = vrot.slane %v1167_v57, 4 }
 0x2bd   :  { %v1179_v46 = vrot.slane %v1178_v40, 4 }
 0x2be   :  { %v1169_v56 = vadd.f32 %v1168_v2, %v1167_v57 }
 0x2bf   :  { %v1180_v1 = vadd.f32 %v1179_v46, %v1178_v40 }
 0x2c0   :  { %v1170_v19 = vrot.slane %v1169_v56, 2 }
 0x2c1   :  { %v1181_v48 = vrot.slane %v1180_v1, 2 }
 0x2c2   :  { %v1171_v44 = vadd.f32 %v1170_v19, %v1169_v56 }
 0x2c3   :  { %v1182_v23 = vadd.f32 %v1181_v48, %v1180_v1 }
 0x2c4   :  { %v1172_v39 = vrot.slane %v1171_v44, 1 }
 0x2c5   :  { %v1183_v49 = vrot.slane %v1182_v23, 1 }
 0x2c6   :  { %v1173_v24 = vadd.f32 %v1172_v39, %v1171_v44 }
 0x2c7   :  { %v1184_v8 = vadd.f32 %v1183_v49, %v1182_v23 }
 0x2c8   :  { %v1192_v37 = vmul.f32 %v1191_v36, %v1173_v24 }
 0x2c9   :  { %v1193_v51 = vmul.f32 %v1191_v36, %v1184_v8 }
 0x2cb   :  { %v1197_v26 = vsel %vm1196_vm4, %v1193_v51, %v1192_v37 }
 0x2cc   :  { %1199 = vst [vmem:[#allocation2] sm:$0x3] %v1197_v26 }
 0x2cd   :  { %1210 = dma.vmem_to_hbm [thread:$0]  %s1206_s28, 32, %s1208_s5, [#allocation3]  }
 0x2ce   :  { %1308 = dma.done.wait [#allocation3], 32  }
 0x2cf   :  { %1309 = vsyncadd [#allocation3], 4294967264 }
 0x2d0   :  { %1215 = vsyncpa [#allocation3], 1 }

</bundles_post_ra>
